<compile_context>
chip_gen: v5e
topology: v5e:2x2
jax: 0.10.0
libtpu: 0.0.40
codegen_flags: <defaults>
</compile_context>

<pallas_src>
import functools
import math

import jax
import jax.numpy as jnp
from jax import lax
from jax.experimental import pallas as pl
from jax.experimental.pallas import tpu as pltpu


def _round_up(x, m):
    return (x + m - 1) // m * m


def _pad_gates_matrix(w_t, h, h_pad):
    """(H, 4H) gate-stacked weight -> (H_pad, 4*H_pad), padding each gate block."""
    w4 = w_t.reshape(h, 4, h)
    w4 = jnp.pad(w4, ((0, h_pad - h), (0, 0), (0, h_pad - h)))
    return w4.reshape(h_pad, 4 * h_pad)


def _pad_gates_bias(b, h, h_pad):
    """(1, 4H) combined bias -> (1, 4*H_pad), padding each gate block with zeros."""
    b4 = b.reshape(4, h)
    b4 = jnp.pad(b4, ((0, 0), (0, h_pad - h)))
    return b4.reshape(1, 4 * h_pad)


def _choose_blocks(batch, h_pad, seq_len):
    """Pick (bb, b_pad, tb) under a ~40 MiB VMEM working-set budget (fits v7x)."""
    b_pad = _round_up(batch, 8)
    # Batch block: whole padded batch, capped at 128 rows.  128 rows fully
    # feed the v5e MXU; batches > 128 get >=2 blocks, which the "parallel"
    # grid axis can shard across v7x's two TensorCores.
    nb = math.ceil(b_pad / 128)
    bb = _round_up(math.ceil(b_pad / nb), 8)
    b_pad = nb * bb

    g = 4 * h_pad
    budget = 40 * 1024 * 1024
    # Fixed: 2 resident bf16 weights (double-buffered by default), f32 bias,
    # f32 h/c state scratch.
    fixed = 2 * 2 * (h_pad * g * 2) + g * 4 + 2 * bb * h_pad * 4
    # Per time step: f32 gx scratch row + double-buffered bf16 x and y blocks.
    per_t = bb * (g * 4 + 2 * h_pad * 2 * 2 + 2 * h_pad * 2 * 2)
    tb_max = max(1, (budget - fixed) // per_t)
    tb = int(max(1, min(seq_len, 32, tb_max)))
    return bb, b_pad, tb


def _lstm_layer_kernel(x_ref, w_ih_ref, w_hh_ref, bias_ref,
                       y_ref, h_out_ref, c_out_ref,
                       gx_sc, h_sc, c_sc,
                       *, tb, seq_len, t_pad, hidden, unroll):
    """One LSTM layer over one (batch block, time block) grid cell.

    x_ref:    (tb, bb, H)  bf16 layer input for this time block
    w_ih_ref: (H, 4H)      bf16 input->gates weight (resident)
    w_hh_ref: (H, 4H)      bf16 hidden->gates weight (resident)
    bias_ref: (1, 4H)      f32 combined bias b_ih + b_hh (resident)
    y_ref:    (tb, bb, H)  bf16 hidden outputs for this time block
    h_out_ref, c_out_ref: (bb, H) f32 final state (written on last time block)
    gx_sc:    (tb, bb, 4H) f32 precomputed x@W_ih + bias for this block
    h_sc, c_sc: (bb, H)    f32 state carried across the sequential time axis
    """
    t_blk = pl.program_id(1)
    nt = pl.num_programs(1)
    bb = h_sc.shape[0]
    g = 4 * hidden

    # Correctness relies on the time grid axis being "arbitrary" (sequential)
    # so h_sc/c_sc carry in order across time blocks.  Never mark it parallel.
    @pl.when(t_blk == 0)
    def _():
        h_sc[...] = jnp.zeros_like(h_sc)
        c_sc[...] = jnp.zeros_like(c_sc)

    # Fused input->gates matmul for the whole time block: one (tb*bb, H) x
    # (H, 4H) bf16 MXU matmul (f32 accumulate) + folded bias, into VMEM
    # scratch.  The wide f32 gx tensor never touches HBM.
    x_flat = x_ref[...].reshape(tb * bb, hidden)
    gx = jnp.dot(x_flat, w_ih_ref[...], preferred_element_type=jnp.float32)
    gx_sc[...] = (gx + bias_ref[...]).reshape(tb, bb, g)

    # Hoisted: bf16 hidden weight stays in VMEM/vregs for all steps.
    whh = w_hh_ref[...]

    def make_step(masked):
        def step(s, carry):
            h_prev = h_sc[...]
            c_prev = c_sc[...]

            # Serial critical path: one small (bb, H) x (H, 4H) bf16 matmul
            # on the MXU (f32 accumulate) plus the precomputed gate slab.
            gates = gx_sc[s] + jnp.dot(h_prev.astype(jnp.bfloat16), whh,
                                       preferred_element_type=jnp.float32)

            # PyTorch gate order: input, forget, cell(g), output.
            # hidden is a multiple of 128, so each slice is lane-aligned.
            i_g = jax.nn.sigmoid(gates[:, 0 * hidden:1 * hidden])
            f_g = jax.nn.sigmoid(gates[:, 1 * hidden:2 * hidden])
            g_g = jnp.tanh(gates[:, 2 * hidden:3 * hidden])
            o_g = jax.nn.sigmoid(gates[:, 3 * hidden:4 * hidden])

            c_new = f_g * c_prev + i_g * g_g
            h_new = o_g * jnp.tanh(c_new)

            if masked:
                # Only the last time block can contain t >= seq_len: keep the
                # state unchanged on padded steps.
                valid = (t_blk * tb + s) < seq_len
                h_new = jnp.where(valid, h_new, h_prev)
                c_new = jnp.where(valid, c_new, c_prev)

            h_sc[...] = h_new
            c_sc[...] = c_new
            y_ref[s] = h_new.astype(y_ref.dtype)
            return carry
        return step

    if t_pad == seq_len:
        # No time padding anywhere: single unmasked path.
        lax.fori_loop(0, tb, make_step(False), 0, unroll=unroll)
    else:
        # Padding exists only in the last time block — keep the two
        # jnp.where selects off the common per-step critical path.
        @pl.when(t_blk < nt - 1)
        def _():
            lax.fori_loop(0, tb, make_step(False), 0, unroll=unroll)

        @pl.when(t_blk == nt - 1)
        def _():
            lax.fori_loop(0, tb, make_step(True), 0, unroll=unroll)

    # Only flush the final state once.
    @pl.when(t_blk == nt - 1)
    def _():
        h_out_ref[...] = h_sc[...].astype(h_out_ref.dtype)
        c_out_ref[...] = c_sc[...].astype(c_out_ref.dtype)


def lstm_layer(x_seq, w_ih, w_hh, bias, seq_len, tb, bb, unroll):
    """Run one full LSTM layer (input matmul + recurrence) as a Pallas kernel.

    x_seq: (T_pad, B_pad, H_pad) bf16
    w_ih, w_hh: (H_pad, 4*H_pad) bf16 ;  bias: (1, 4*H_pad) f32
    Returns y_seq (T_pad, B_pad, H_pad) bf16, h_final, c_final (B_pad, H_pad) f32.
    """
    t_pad, b_pad, h_pad = x_seq.shape
    g = 4 * h_pad
    nt = t_pad // tb
    nb = b_pad // bb

    kernel = functools.partial(_lstm_layer_kernel, tb=tb, seq_len=seq_len,
                               t_pad=t_pad, hidden=h_pad, unroll=unroll)

    grid_spec = pltpu.PrefetchScalarGridSpec(
        num_scalar_prefetch=0,
        grid=(nb, nt),
        in_specs=[
            pl.BlockSpec((tb, bb, h_pad), lambda b, t: (t, b, 0)),  # x block
            # Resident weights (constant index map -> not re-DMA'd).
            # TODO(synk): pipeline_mode=pl.Buffered(1) would also single-buffer
            # them, halving their VMEM footprint at large H.
            pl.BlockSpec((h_pad, g), lambda b, t: (0, 0)),          # W_ih
            pl.BlockSpec((h_pad, g), lambda b, t: (0, 0)),          # W_hh
            pl.BlockSpec((1, g), lambda b, t: (0, 0)),              # bias
        ],
        out_specs=[
            pl.BlockSpec((tb, bb, h_pad), lambda b, t: (t, b, 0)),  # y block
            pl.BlockSpec((bb, h_pad), lambda b, t: (b, 0)),         # h_final
            pl.BlockSpec((bb, h_pad), lambda b, t: (b, 0)),         # c_final
        ],
        scratch_shapes=[
            pltpu.VMEM((tb, bb, g), jnp.float32),     # gx for this time block
            pltpu.VMEM((bb, h_pad), jnp.float32),     # h state
            pltpu.VMEM((bb, h_pad), jnp.float32),     # c state
        ],
    )

    return pl.pallas_call(
        kernel,
        out_shape=(
            jax.ShapeDtypeStruct((t_pad, b_pad, h_pad), jnp.bfloat16),
            jax.ShapeDtypeStruct((b_pad, h_pad), jnp.float32),
            jax.ShapeDtypeStruct((b_pad, h_pad), jnp.float32),
        ),
        grid_spec=grid_spec,
        compiler_params=pltpu.CompilerParams(
            # Batch blocks are independent (sharded across v7x's 2 TCs);
            # the time axis MUST remain sequential ("arbitrary").
            dimension_semantics=("parallel", "arbitrary"),
            # Sized for v7x's 64 MiB physical VMEM; v5e/v6e could go higher.
            vmem_limit_bytes=48 * 1024 * 1024,
        ),
    )(x_seq, w_ih, w_hh, bias)


@functools.partial(jax.jit, static_argnames=("num_layers",))
def encoder_lstm_forward(tokens, emb_table, layer_params, num_layers):
    """tokens: (B, T) int32.  Returns (hidden, cell), each (num_layers, B, H)."""
    b, t = tokens.shape
    h = emb_table.shape[1]

    # Embedding lookup (plain-JAX gather glue).  nn.Dropout in eval is identity.
    # TODO(synk): training-mode dropout (random mask + 1/(1-p) scaling) not applied.
    embedded = jnp.take(emb_table, tokens, axis=0)          # (B, T, H)
    x_seq = jnp.transpose(embedded, (1, 0, 2))              # (T, B, H) time-major

    # Pad to TPU-friendly shapes: B -> multiple of bb (>=8, sublane), H ->
    # multiple of 128 (lane), T -> multiple of the per-grid-step time block.
    h_pad = _round_up(h, 128)
    bb, b_pad, tb = _choose_blocks(b, h_pad, t)
    unroll = max(1, min(tb, 8))
    t_pad = _round_up(t, tb)

    x_seq = jnp.pad(x_seq,
                    ((0, t_pad - t), (0, b_pad - b), (0, h_pad - h)))
    # bf16 activations in HBM (halves layer-to-layer traffic); the in-kernel
    # gate math / state stays f32.
    x_seq = x_seq.astype(jnp.bfloat16)

    # TODO(synk): layer-wavefront fusion (overlap layer l recurrence with
    # layer l+1 input matmul, keep y in VMEM) is a further ~1.5-2x for deep stacks.
    hiddens, cells = [], []
    for layer in range(num_layers):
        w_ih_t, w_hh_t, bias = layer_params[layer]           # (H,4H),(H,4H),(1,4H)
        w_ih_p = _pad_gates_matrix(w_ih_t, h, h_pad).astype(jnp.bfloat16)
        w_hh_p = _pad_gates_matrix(w_hh_t, h, h_pad).astype(jnp.bfloat16)
        bias_p = _pad_gates_bias(bias, h, h_pad)             # f32

        y_seq, h_fin, c_fin = lstm_layer(x_seq, w_ih_p, w_hh_p, bias_p,
                                         t, tb, bb, unroll)

        x_seq = y_seq                                        # input to next layer
        hiddens.append(h_fin[:b, :h])
        cells.append(c_fin[:b, :h])

    hidden = jnp.stack(hiddens, axis=0)                      # (num_layers, B, H)
    cell = jnp.stack(cells, axis=0)                          # (num_layers, B, H)
    return hidden, cell


def make_params(key, vocab_size, hidden_size, num_layers):
    """Deterministic synthetic parameters (PyTorch LSTM-style shapes)."""
    keys = jax.random.split(key, 1 + 4 * num_layers)
    emb_table = jax.random.normal(keys[0], (vocab_size, hidden_size),
                                  jnp.float32) * 0.1
    bound = 1.0 / jnp.sqrt(hidden_size)
    layer_params = []
    for l in range(num_layers):
        k_ih, k_hh, k_bih, k_bhh = keys[1 + 4 * l: 5 + 4 * l]
        # PyTorch stores W_ih: (4H, H); we keep the transposed (H, 4H) layout.
        w_ih = jax.random.uniform(k_ih, (4 * hidden_size, hidden_size),
                                  jnp.float32, -bound, bound)
        w_hh = jax.random.uniform(k_hh, (4 * hidden_size, hidden_size),
                                  jnp.float32, -bound, bound)
        b_ih = jax.random.uniform(k_bih, (4 * hidden_size,),
                                  jnp.float32, -bound, bound)
        b_hh = jax.random.uniform(k_bhh, (4 * hidden_size,),
                                  jnp.float32, -bound, bound)
        layer_params.append((w_ih.T, w_hh.T, (b_ih + b_hh)[None, :]))
    return emb_table, layer_params


def reference_lstm(tokens, emb_table, layer_params, num_layers):
    """Pure-JAX f32 reference matching PyTorch nn.LSTM semantics."""
    x = jnp.take(emb_table, tokens, axis=0)                  # (B, T, H)
    b, t, h = x.shape
    hiddens, cells = [], []
    layer_in = x
    for l in range(num_layers):
        w_ih_t, w_hh_t, bias = layer_params[l]
        h_st = jnp.zeros((b, h), jnp.float32)
        c_st = jnp.zeros((b, h), jnp.float32)
        outs = []
        for s in range(t):
            gates = layer_in[:, s, :] @ w_ih_t + h_st @ w_hh_t + bias
            i_g = jax.nn.sigmoid(gates[:, 0 * h:1 * h])
            f_g = jax.nn.sigmoid(gates[:, 1 * h:2 * h])
            g_g = jnp.tanh(gates[:, 2 * h:3 * h])
            o_g = jax.nn.sigmoid(gates[:, 3 * h:4 * h])
            c_st = f_g * c_st + i_g * g_g
            h_st = o_g * jnp.tanh(c_st)
            outs.append(h_st)
        layer_in = jnp.stack(outs, axis=1)
        hiddens.append(h_st)
        cells.append(c_st)
    return jnp.stack(hiddens, 0), jnp.stack(cells, 0)


if __name__ == "__main__":
    vocab_size = 50
    hidden_size = 32
    num_layers = 2
    batch = 2
    seq = 8

    key = jax.random.PRNGKey(0)
    k_param, k_tok = jax.random.split(key)
    emb_table, layer_params = make_params(k_param, vocab_size, hidden_size,
                                          num_layers)
    tokens = jax.random.randint(k_tok, (batch, seq), 0, vocab_size, jnp.int32)

    hidden, cell = encoder_lstm_forward(tokens, emb_table, layer_params,
                                        num_layers)
    jax.block_until_ready((hidden, cell))

    assert hidden.shape == (num_layers, batch, hidden_size)
    assert cell.shape == (num_layers, batch, hidden_size)
    assert bool(jnp.all(jnp.isfinite(hidden))) and bool(jnp.all(jnp.isfinite(cell)))

    # Loose tolerance: kernel runs bf16 matmuls / bf16 activation traffic,
    # reference is pure f32.
    h_ref, c_ref = reference_lstm(tokens, emb_table, layer_params, num_layers)
    assert bool(jnp.all(jnp.abs(hidden - h_ref) < 3e-2))
    assert bool(jnp.all(jnp.abs(cell - c_ref) < 3e-2))

    print("KERNEL_OK")
</pallas_src>

<mosaic_0001>
module attributes {stable_mosaic.version = 11 : i64} {
  func.func @_lstm_layer_kernel(%arg0: i32, %arg1: i32, %arg2: memref<8x8x128xbf16, #tpu.memory_space<vmem>>, %arg3: memref<128x512xbf16, #tpu.memory_space<vmem>>, %arg4: memref<128x512xbf16, #tpu.memory_space<vmem>>, %arg5: memref<1x512xf32, #tpu.memory_space<vmem>>, %arg6: memref<8x8x128xbf16, #tpu.memory_space<vmem>>, %arg7: memref<8x128xf32, #tpu.memory_space<vmem>>, %arg8: memref<8x128xf32, #tpu.memory_space<vmem>>, %arg9: memref<8x8x512xf32, #tpu.memory_space<vmem>>, %arg10: memref<8x128xf32, #tpu.memory_space<vmem>>, %arg11: memref<8x128xf32, #tpu.memory_space<vmem>>) attributes {dimension_semantics = [#tpu.dimension_semantics<parallel>, #tpu.dimension_semantics<arbitrary>], iteration_bounds = array<i64: 1, 1>, scalar_prefetch = 0 : i64, scratch_operands = 3 : i64, tpu.core_type = #tpu.core_type<tc>, window_params = [{transform_indices = @transform_0, window_bounds = array<i64: 8, 8, 128>}, {pipeline_mode = #tpu.pipeline_mode<synchronous>, transform_indices = @transform_1, window_bounds = array<i64: 128, 512>}, {pipeline_mode = #tpu.pipeline_mode<synchronous>, transform_indices = @transform_2, window_bounds = array<i64: 128, 512>}, {pipeline_mode = #tpu.pipeline_mode<synchronous>, transform_indices = @transform_3, window_bounds = array<i64: 1, 512>}, {transform_indices = @transform_4, window_bounds = array<i64: 8, 8, 128>}, {transform_indices = @transform_5, window_bounds = array<i64: 8, 128>}, {transform_indices = @transform_6, window_bounds = array<i64: 8, 128>}]} {
    %c0_i32 = arith.constant 0 : i32
    %0 = arith.cmpi eq, %arg1, %c0_i32 : i32
    %1 = arith.extui %0 : i1 to i32
    %c0_i32_0 = arith.constant 0 : i32
    %2 = arith.cmpi ne, %1, %c0_i32_0 : i32
    scf.if %2 {
      %cst_143 = arith.constant 0.000000e+00 : f32
      %336 = vector.broadcast %cst_143 : f32 to vector<8x128xf32>
      %c0_144 = arith.constant 0 : index
      %c0_145 = arith.constant 0 : index
      %337 = vector.load %arg10[%c0_144, %c0_145] : memref<8x128xf32, #tpu.memory_space<vmem>>, vector<8x128xf32>
      tpu.vector_store %arg10[%c0_144, %c0_145], %336 {strides = array<i32>} : memref<8x128xf32, #tpu.memory_space<vmem>>, vector<8x128xf32>,
      %cst_146 = arith.constant 0.000000e+00 : f32
      %338 = vector.broadcast %cst_146 : f32 to vector<8x128xf32>
      %c0_147 = arith.constant 0 : index
      %c0_148 = arith.constant 0 : index
      %339 = vector.load %arg11[%c0_147, %c0_148] : memref<8x128xf32, #tpu.memory_space<vmem>>, vector<8x128xf32>
      tpu.vector_store %arg11[%c0_147, %c0_148], %338 {strides = array<i32>} : memref<8x128xf32, #tpu.memory_space<vmem>>, vector<8x128xf32>,
    } else {
    }
    %c0 = arith.constant 0 : index
    %c0_1 = arith.constant 0 : index
    %c0_2 = arith.constant 0 : index
    %3 = vector.load %arg2[%c0, %c0_1, %c0_2] : memref<8x8x128xbf16, #tpu.memory_space<vmem>>, vector<8x8x128xbf16>
    %4 = vector.shape_cast %3 : vector<8x8x128xbf16> to vector<64x128xbf16>
    %c0_3 = arith.constant 0 : index
    %c0_4 = arith.constant 0 : index
    %5 = vector.load %arg3[%c0_3, %c0_4] : memref<128x512xbf16, #tpu.memory_space<vmem>>, vector<128x512xbf16>
    %cst = arith.constant dense<0.000000e+00> : vector<64x512xf32>
    %6 = tpu.matmul %4, %5, %cst {dimension_numbers = #tpu.dot_dimension_numbers<[1], [0], [0], [1], [0, 0, 1, 1], [], []>} : vector<64x128xbf16>, vector<128x512xbf16>, vector<64x512xf32> -> vector<64x512xf32>
    %c0_5 = arith.constant 0 : index
    %c0_6 = arith.constant 0 : index
    %7 = vector.load %arg5[%c0_5, %c0_6] : memref<1x512xf32, #tpu.memory_space<vmem>>, vector<1x512xf32>
    %8 = vector.broadcast %7 : vector<1x512xf32> to vector<64x512xf32>
    %9 = arith.addf %6, %8 : vector<64x512xf32>
    %10 = vector.shape_cast %9 : vector<64x512xf32> to vector<8x8x512xf32>
    %c0_7 = arith.constant 0 : index
    %c0_8 = arith.constant 0 : index
    %c0_9 = arith.constant 0 : index
    %11 = vector.load %arg9[%c0_7, %c0_8, %c0_9] : memref<8x8x512xf32, #tpu.memory_space<vmem>>, vector<8x8x512xf32>
    tpu.vector_store %arg9[%c0_7, %c0_8, %c0_9], %10 {strides = array<i32>} : memref<8x8x512xf32, #tpu.memory_space<vmem>>, vector<8x8x512xf32>,
    %c0_10 = arith.constant 0 : index
    %c0_11 = arith.constant 0 : index
    %12 = vector.load %arg4[%c0_10, %c0_11] : memref<128x512xbf16, #tpu.memory_space<vmem>>, vector<128x512xbf16>
    %c0_i32_12 = arith.constant 0 : i32
    %c0_13 = arith.constant 0 : index
    %c0_14 = arith.constant 0 : index
    %13 = vector.load %arg10[%c0_13, %c0_14] : memref<8x128xf32, #tpu.memory_space<vmem>>, vector<8x128xf32>
    %c0_15 = arith.constant 0 : index
    %c0_16 = arith.constant 0 : index
    %14 = vector.load %arg11[%c0_15, %c0_16] : memref<8x128xf32, #tpu.memory_space<vmem>>, vector<8x128xf32>
    %15 = arith.index_cast %c0_i32_12 : i32 to index
    %c0_17 = arith.constant 0 : index
    %c0_18 = arith.constant 0 : index
    %16 = vector.load %arg9[%15, %c0_17, %c0_18] : memref<8x8x512xf32, #tpu.memory_space<vmem>>, vector<1x8x512xf32>
    %17 = vector.shape_cast %16 : vector<1x8x512xf32> to vector<8x512xf32>
    %18 = arith.truncf %13 : vector<8x128xf32> to vector<8x128xbf16>
    %cst_19 = arith.constant dense<0.000000e+00> : vector<8x512xf32>
    %19 = tpu.matmul %18, %12, %cst_19 {dimension_numbers = #tpu.dot_dimension_numbers<[1], [0], [0], [1], [0, 0, 1, 1], [], []>} : vector<8x128xbf16>, vector<128x512xbf16>, vector<8x512xf32> -> vector<8x512xf32>
    %20 = arith.addf %17, %19 : vector<8x512xf32>
    %21 = vector.extract_strided_slice %20 {offsets = [0, 0], sizes = [8, 128], strides = [1, 1]} : vector<8x512xf32> to vector<8x128xf32>
    %22 = arith.negf %21 : vector<8x128xf32>
    %23 = math.exp %22 : vector<8x128xf32>
    %cst_20 = arith.constant 1.000000e+00 : f32
    %24 = vector.broadcast %cst_20 : f32 to vector<8x128xf32>
    %25 = arith.addf %24, %23 : vector<8x128xf32>
    %26 = arith.divf %24, %25 : vector<8x128xf32>
    %27 = vector.extract_strided_slice %20 {offsets = [0, 128], sizes = [8, 128], strides = [1, 1]} : vector<8x512xf32> to vector<8x128xf32>
    %28 = arith.negf %27 : vector<8x128xf32>
    %29 = math.exp %28 : vector<8x128xf32>
    %cst_21 = arith.constant 1.000000e+00 : f32
    %30 = vector.broadcast %cst_21 : f32 to vector<8x128xf32>
    %31 = arith.addf %30, %29 : vector<8x128xf32>
    %32 = arith.divf %30, %31 : vector<8x128xf32>
    %33 = vector.extract_strided_slice %20 {offsets = [0, 256], sizes = [8, 128], strides = [1, 1]} : vector<8x512xf32> to vector<8x128xf32>
    %34 = math.tanh %33 : vector<8x128xf32>
    %35 = vector.extract_strided_slice %20 {offsets = [0, 384], sizes = [8, 128], strides = [1, 1]} : vector<8x512xf32> to vector<8x128xf32>
    %36 = arith.negf %35 : vector<8x128xf32>
    %37 = math.exp %36 : vector<8x128xf32>
    %cst_22 = arith.constant 1.000000e+00 : f32
    %38 = vector.broadcast %cst_22 : f32 to vector<8x128xf32>
    %39 = arith.addf %38, %37 : vector<8x128xf32>
    %40 = arith.divf %38, %39 : vector<8x128xf32>
    %41 = arith.mulf %32, %14 : vector<8x128xf32>
    %42 = arith.mulf %26, %34 : vector<8x128xf32>
    %43 = arith.addf %41, %42 : vector<8x128xf32>
    %44 = math.tanh %43 : vector<8x128xf32>
    %45 = arith.mulf %40, %44 : vector<8x128xf32>
    %c0_23 = arith.constant 0 : index
    %c0_24 = arith.constant 0 : index
    %46 = vector.load %arg10[%c0_23, %c0_24] : memref<8x128xf32, #tpu.memory_space<vmem>>, vector<8x128xf32>
    tpu.vector_store %arg10[%c0_23, %c0_24], %45 {strides = array<i32>} : memref<8x128xf32, #tpu.memory_space<vmem>>, vector<8x128xf32>,
    %c0_25 = arith.constant 0 : index
    %c0_26 = arith.constant 0 : index
    %47 = vector.load %arg11[%c0_25, %c0_26] : memref<8x128xf32, #tpu.memory_space<vmem>>, vector<8x128xf32>
    tpu.vector_store %arg11[%c0_25, %c0_26], %43 {strides = array<i32>} : memref<8x128xf32, #tpu.memory_space<vmem>>, vector<8x128xf32>,
    %48 = arith.truncf %45 : vector<8x128xf32> to vector<8x128xbf16>
    %49 = arith.index_cast %c0_i32_12 : i32 to index
    %c0_27 = arith.constant 0 : index
    %c0_28 = arith.constant 0 : index
    %50 = vector.load %arg6[%49, %c0_27, %c0_28] : memref<8x8x128xbf16, #tpu.memory_space<vmem>>, vector<1x8x128xbf16>
    %51 = vector.shape_cast %50 : vector<1x8x128xbf16> to vector<8x128xbf16>
    %52 = vector.shape_cast %48 : vector<8x128xbf16> to vector<1x8x128xbf16>
    tpu.vector_store %arg6[%49, %c0_27, %c0_28], %52 {strides = array<i32>} : memref<8x8x128xbf16, #tpu.memory_space<vmem>>, vector<1x8x128xbf16>,
    %c1_i32 = arith.constant 1 : i32
    %c0_29 = arith.constant 0 : index
    %c0_30 = arith.constant 0 : index
    %53 = vector.load %arg10[%c0_29, %c0_30] : memref<8x128xf32, #tpu.memory_space<vmem>>, vector<8x128xf32>
    %c0_31 = arith.constant 0 : index
    %c0_32 = arith.constant 0 : index
    %54 = vector.load %arg11[%c0_31, %c0_32] : memref<8x128xf32, #tpu.memory_space<vmem>>, vector<8x128xf32>
    %55 = arith.index_cast %c1_i32 : i32 to index
    %c0_33 = arith.constant 0 : index
    %c0_34 = arith.constant 0 : index
    %56 = vector.load %arg9[%55, %c0_33, %c0_34] : memref<8x8x512xf32, #tpu.memory_space<vmem>>, vector<1x8x512xf32>
    %57 = vector.shape_cast %56 : vector<1x8x512xf32> to vector<8x512xf32>
    %58 = arith.truncf %53 : vector<8x128xf32> to vector<8x128xbf16>
    %cst_35 = arith.constant dense<0.000000e+00> : vector<8x512xf32>
    %59 = tpu.matmul %58, %12, %cst_35 {dimension_numbers = #tpu.dot_dimension_numbers<[1], [0], [0], [1], [0, 0, 1, 1], [], []>} : vector<8x128xbf16>, vector<128x512xbf16>, vector<8x512xf32> -> vector<8x512xf32>
    %60 = arith.addf %57, %59 : vector<8x512xf32>
    %61 = vector.extract_strided_slice %60 {offsets = [0, 0], sizes = [8, 128], strides = [1, 1]} : vector<8x512xf32> to vector<8x128xf32>
    %62 = arith.negf %61 : vector<8x128xf32>
    %63 = math.exp %62 : vector<8x128xf32>
    %cst_36 = arith.constant 1.000000e+00 : f32
    %64 = vector.broadcast %cst_36 : f32 to vector<8x128xf32>
    %65 = arith.addf %64, %63 : vector<8x128xf32>
    %66 = arith.divf %64, %65 : vector<8x128xf32>
    %67 = vector.extract_strided_slice %60 {offsets = [0, 128], sizes = [8, 128], strides = [1, 1]} : vector<8x512xf32> to vector<8x128xf32>
    %68 = arith.negf %67 : vector<8x128xf32>
    %69 = math.exp %68 : vector<8x128xf32>
    %cst_37 = arith.constant 1.000000e+00 : f32
    %70 = vector.broadcast %cst_37 : f32 to vector<8x128xf32>
    %71 = arith.addf %70, %69 : vector<8x128xf32>
    %72 = arith.divf %70, %71 : vector<8x128xf32>
    %73 = vector.extract_strided_slice %60 {offsets = [0, 256], sizes = [8, 128], strides = [1, 1]} : vector<8x512xf32> to vector<8x128xf32>
    %74 = math.tanh %73 : vector<8x128xf32>
    %75 = vector.extract_strided_slice %60 {offsets = [0, 384], sizes = [8, 128], strides = [1, 1]} : vector<8x512xf32> to vector<8x128xf32>
    %76 = arith.negf %75 : vector<8x128xf32>
    %77 = math.exp %76 : vector<8x128xf32>
    %cst_38 = arith.constant 1.000000e+00 : f32
    %78 = vector.broadcast %cst_38 : f32 to vector<8x128xf32>
    %79 = arith.addf %78, %77 : vector<8x128xf32>
    %80 = arith.divf %78, %79 : vector<8x128xf32>
    %81 = arith.mulf %72, %54 : vector<8x128xf32>
    %82 = arith.mulf %66, %74 : vector<8x128xf32>
    %83 = arith.addf %81, %82 : vector<8x128xf32>
    %84 = math.tanh %83 : vector<8x128xf32>
    %85 = arith.mulf %80, %84 : vector<8x128xf32>
    %c0_39 = arith.constant 0 : index
    %c0_40 = arith.constant 0 : index
    %86 = vector.load %arg10[%c0_39, %c0_40] : memref<8x128xf32, #tpu.memory_space<vmem>>, vector<8x128xf32>
    tpu.vector_store %arg10[%c0_39, %c0_40], %85 {strides = array<i32>} : memref<8x128xf32, #tpu.memory_space<vmem>>, vector<8x128xf32>,
    %c0_41 = arith.constant 0 : index
    %c0_42 = arith.constant 0 : index
    %87 = vector.load %arg11[%c0_41, %c0_42] : memref<8x128xf32, #tpu.memory_space<vmem>>, vector<8x128xf32>
    tpu.vector_store %arg11[%c0_41, %c0_42], %83 {strides = array<i32>} : memref<8x128xf32, #tpu.memory_space<vmem>>, vector<8x128xf32>,
    %88 = arith.truncf %85 : vector<8x128xf32> to vector<8x128xbf16>
    %89 = arith.index_cast %c1_i32 : i32 to index
    %c0_43 = arith.constant 0 : index
    %c0_44 = arith.constant 0 : index
    %90 = vector.load %arg6[%89, %c0_43, %c0_44] : memref<8x8x128xbf16, #tpu.memory_space<vmem>>, vector<1x8x128xbf16>
    %91 = vector.shape_cast %90 : vector<1x8x128xbf16> to vector<8x128xbf16>
    %92 = vector.shape_cast %88 : vector<8x128xbf16> to vector<1x8x128xbf16>
    tpu.vector_store %arg6[%89, %c0_43, %c0_44], %92 {strides = array<i32>} : memref<8x8x128xbf16, #tpu.memory_space<vmem>>, vector<1x8x128xbf16>,
    %c2_i32 = arith.constant 2 : i32
    %c0_45 = arith.constant 0 : index
    %c0_46 = arith.constant 0 : index
    %93 = vector.load %arg10[%c0_45, %c0_46] : memref<8x128xf32, #tpu.memory_space<vmem>>, vector<8x128xf32>
    %c0_47 = arith.constant 0 : index
    %c0_48 = arith.constant 0 : index
    %94 = vector.load %arg11[%c0_47, %c0_48] : memref<8x128xf32, #tpu.memory_space<vmem>>, vector<8x128xf32>
    %95 = arith.index_cast %c2_i32 : i32 to index
    %c0_49 = arith.constant 0 : index
    %c0_50 = arith.constant 0 : index
    %96 = vector.load %arg9[%95, %c0_49, %c0_50] : memref<8x8x512xf32, #tpu.memory_space<vmem>>, vector<1x8x512xf32>
    %97 = vector.shape_cast %96 : vector<1x8x512xf32> to vector<8x512xf32>
    %98 = arith.truncf %93 : vector<8x128xf32> to vector<8x128xbf16>
    %cst_51 = arith.constant dense<0.000000e+00> : vector<8x512xf32>
    %99 = tpu.matmul %98, %12, %cst_51 {dimension_numbers = #tpu.dot_dimension_numbers<[1], [0], [0], [1], [0, 0, 1, 1], [], []>} : vector<8x128xbf16>, vector<128x512xbf16>, vector<8x512xf32> -> vector<8x512xf32>
    %100 = arith.addf %97, %99 : vector<8x512xf32>
    %101 = vector.extract_strided_slice %100 {offsets = [0, 0], sizes = [8, 128], strides = [1, 1]} : vector<8x512xf32> to vector<8x128xf32>
    %102 = arith.negf %101 : vector<8x128xf32>
    %103 = math.exp %102 : vector<8x128xf32>
    %cst_52 = arith.constant 1.000000e+00 : f32
    %104 = vector.broadcast %cst_52 : f32 to vector<8x128xf32>
    %105 = arith.addf %104, %103 : vector<8x128xf32>
    %106 = arith.divf %104, %105 : vector<8x128xf32>
    %107 = vector.extract_strided_slice %100 {offsets = [0, 128], sizes = [8, 128], strides = [1, 1]} : vector<8x512xf32> to vector<8x128xf32>
    %108 = arith.negf %107 : vector<8x128xf32>
    %109 = math.exp %108 : vector<8x128xf32>
    %cst_53 = arith.constant 1.000000e+00 : f32
    %110 = vector.broadcast %cst_53 : f32 to vector<8x128xf32>
    %111 = arith.addf %110, %109 : vector<8x128xf32>
    %112 = arith.divf %110, %111 : vector<8x128xf32>
    %113 = vector.extract_strided_slice %100 {offsets = [0, 256], sizes = [8, 128], strides = [1, 1]} : vector<8x512xf32> to vector<8x128xf32>
    %114 = math.tanh %113 : vector<8x128xf32>
    %115 = vector.extract_strided_slice %100 {offsets = [0, 384], sizes = [8, 128], strides = [1, 1]} : vector<8x512xf32> to vector<8x128xf32>
    %116 = arith.negf %115 : vector<8x128xf32>
    %117 = math.exp %116 : vector<8x128xf32>
    %cst_54 = arith.constant 1.000000e+00 : f32
    %118 = vector.broadcast %cst_54 : f32 to vector<8x128xf32>
    %119 = arith.addf %118, %117 : vector<8x128xf32>
    %120 = arith.divf %118, %119 : vector<8x128xf32>
    %121 = arith.mulf %112, %94 : vector<8x128xf32>
    %122 = arith.mulf %106, %114 : vector<8x128xf32>
    %123 = arith.addf %121, %122 : vector<8x128xf32>
    %124 = math.tanh %123 : vector<8x128xf32>
    %125 = arith.mulf %120, %124 : vector<8x128xf32>
    %c0_55 = arith.constant 0 : index
    %c0_56 = arith.constant 0 : index
    %126 = vector.load %arg10[%c0_55, %c0_56] : memref<8x128xf32, #tpu.memory_space<vmem>>, vector<8x128xf32>
    tpu.vector_store %arg10[%c0_55, %c0_56], %125 {strides = array<i32>} : memref<8x128xf32, #tpu.memory_space<vmem>>, vector<8x128xf32>,
    %c0_57 = arith.constant 0 : index
    %c0_58 = arith.constant 0 : index
    %127 = vector.load %arg11[%c0_57, %c0_58] : memref<8x128xf32, #tpu.memory_space<vmem>>, vector<8x128xf32>
    tpu.vector_store %arg11[%c0_57, %c0_58], %123 {strides = array<i32>} : memref<8x128xf32, #tpu.memory_space<vmem>>, vector<8x128xf32>,
    %128 = arith.truncf %125 : vector<8x128xf32> to vector<8x128xbf16>
    %129 = arith.index_cast %c2_i32 : i32 to index
    %c0_59 = arith.constant 0 : index
    %c0_60 = arith.constant 0 : index
    %130 = vector.load %arg6[%129, %c0_59, %c0_60] : memref<8x8x128xbf16, #tpu.memory_space<vmem>>, vector<1x8x128xbf16>
    %131 = vector.shape_cast %130 : vector<1x8x128xbf16> to vector<8x128xbf16>
    %132 = vector.shape_cast %128 : vector<8x128xbf16> to vector<1x8x128xbf16>
    tpu.vector_store %arg6[%129, %c0_59, %c0_60], %132 {strides = array<i32>} : memref<8x8x128xbf16, #tpu.memory_space<vmem>>, vector<1x8x128xbf16>,
    %c3_i32 = arith.constant 3 : i32
    %c0_61 = arith.constant 0 : index
    %c0_62 = arith.constant 0 : index
    %133 = vector.load %arg10[%c0_61, %c0_62] : memref<8x128xf32, #tpu.memory_space<vmem>>, vector<8x128xf32>
    %c0_63 = arith.constant 0 : index
    %c0_64 = arith.constant 0 : index
    %134 = vector.load %arg11[%c0_63, %c0_64] : memref<8x128xf32, #tpu.memory_space<vmem>>, vector<8x128xf32>
    %135 = arith.index_cast %c3_i32 : i32 to index
    %c0_65 = arith.constant 0 : index
    %c0_66 = arith.constant 0 : index
    %136 = vector.load %arg9[%135, %c0_65, %c0_66] : memref<8x8x512xf32, #tpu.memory_space<vmem>>, vector<1x8x512xf32>
    %137 = vector.shape_cast %136 : vector<1x8x512xf32> to vector<8x512xf32>
    %138 = arith.truncf %133 : vector<8x128xf32> to vector<8x128xbf16>
    %cst_67 = arith.constant dense<0.000000e+00> : vector<8x512xf32>
    %139 = tpu.matmul %138, %12, %cst_67 {dimension_numbers = #tpu.dot_dimension_numbers<[1], [0], [0], [1], [0, 0, 1, 1], [], []>} : vector<8x128xbf16>, vector<128x512xbf16>, vector<8x512xf32> -> vector<8x512xf32>
    %140 = arith.addf %137, %139 : vector<8x512xf32>
    %141 = vector.extract_strided_slice %140 {offsets = [0, 0], sizes = [8, 128], strides = [1, 1]} : vector<8x512xf32> to vector<8x128xf32>
    %142 = arith.negf %141 : vector<8x128xf32>
    %143 = math.exp %142 : vector<8x128xf32>
    %cst_68 = arith.constant 1.000000e+00 : f32
    %144 = vector.broadcast %cst_68 : f32 to vector<8x128xf32>
    %145 = arith.addf %144, %143 : vector<8x128xf32>
    %146 = arith.divf %144, %145 : vector<8x128xf32>
    %147 = vector.extract_strided_slice %140 {offsets = [0, 128], sizes = [8, 128], strides = [1, 1]} : vector<8x512xf32> to vector<8x128xf32>
    %148 = arith.negf %147 : vector<8x128xf32>
    %149 = math.exp %148 : vector<8x128xf32>
    %cst_69 = arith.constant 1.000000e+00 : f32
    %150 = vector.broadcast %cst_69 : f32 to vector<8x128xf32>
    %151 = arith.addf %150, %149 : vector<8x128xf32>
    %152 = arith.divf %150, %151 : vector<8x128xf32>
    %153 = vector.extract_strided_slice %140 {offsets = [0, 256], sizes = [8, 128], strides = [1, 1]} : vector<8x512xf32> to vector<8x128xf32>
    %154 = math.tanh %153 : vector<8x128xf32>
    %155 = vector.extract_strided_slice %140 {offsets = [0, 384], sizes = [8, 128], strides = [1, 1]} : vector<8x512xf32> to vector<8x128xf32>
    %156 = arith.negf %155 : vector<8x128xf32>
    %157 = math.exp %156 : vector<8x128xf32>
    %cst_70 = arith.constant 1.000000e+00 : f32
    %158 = vector.broadcast %cst_70 : f32 to vector<8x128xf32>
    %159 = arith.addf %158, %157 : vector<8x128xf32>
    %160 = arith.divf %158, %159 : vector<8x128xf32>
    %161 = arith.mulf %152, %134 : vector<8x128xf32>
    %162 = arith.mulf %146, %154 : vector<8x128xf32>
    %163 = arith.addf %161, %162 : vector<8x128xf32>
    %164 = math.tanh %163 : vector<8x128xf32>
    %165 = arith.mulf %160, %164 : vector<8x128xf32>
    %c0_71 = arith.constant 0 : index
    %c0_72 = arith.constant 0 : index
    %166 = vector.load %arg10[%c0_71, %c0_72] : memref<8x128xf32, #tpu.memory_space<vmem>>, vector<8x128xf32>
    tpu.vector_store %arg10[%c0_71, %c0_72], %165 {strides = array<i32>} : memref<8x128xf32, #tpu.memory_space<vmem>>, vector<8x128xf32>,
    %c0_73 = arith.constant 0 : index
    %c0_74 = arith.constant 0 : index
    %167 = vector.load %arg11[%c0_73, %c0_74] : memref<8x128xf32, #tpu.memory_space<vmem>>, vector<8x128xf32>
    tpu.vector_store %arg11[%c0_73, %c0_74], %163 {strides = array<i32>} : memref<8x128xf32, #tpu.memory_space<vmem>>, vector<8x128xf32>,
    %168 = arith.truncf %165 : vector<8x128xf32> to vector<8x128xbf16>
    %169 = arith.index_cast %c3_i32 : i32 to index
    %c0_75 = arith.constant 0 : index
    %c0_76 = arith.constant 0 : index
    %170 = vector.load %arg6[%169, %c0_75, %c0_76] : memref<8x8x128xbf16, #tpu.memory_space<vmem>>, vector<1x8x128xbf16>
    %171 = vector.shape_cast %170 : vector<1x8x128xbf16> to vector<8x128xbf16>
    %172 = vector.shape_cast %168 : vector<8x128xbf16> to vector<1x8x128xbf16>
    tpu.vector_store %arg6[%169, %c0_75, %c0_76], %172 {strides = array<i32>} : memref<8x8x128xbf16, #tpu.memory_space<vmem>>, vector<1x8x128xbf16>,
    %c4_i32 = arith.constant 4 : i32
    %c0_77 = arith.constant 0 : index
    %c0_78 = arith.constant 0 : index
    %173 = vector.load %arg10[%c0_77, %c0_78] : memref<8x128xf32, #tpu.memory_space<vmem>>, vector<8x128xf32>
    %c0_79 = arith.constant 0 : index
    %c0_80 = arith.constant 0 : index
    %174 = vector.load %arg11[%c0_79, %c0_80] : memref<8x128xf32, #tpu.memory_space<vmem>>, vector<8x128xf32>
    %175 = arith.index_cast %c4_i32 : i32 to index
    %c0_81 = arith.constant 0 : index
    %c0_82 = arith.constant 0 : index
    %176 = vector.load %arg9[%175, %c0_81, %c0_82] : memref<8x8x512xf32, #tpu.memory_space<vmem>>, vector<1x8x512xf32>
    %177 = vector.shape_cast %176 : vector<1x8x512xf32> to vector<8x512xf32>
    %178 = arith.truncf %173 : vector<8x128xf32> to vector<8x128xbf16>
    %cst_83 = arith.constant dense<0.000000e+00> : vector<8x512xf32>
    %179 = tpu.matmul %178, %12, %cst_83 {dimension_numbers = #tpu.dot_dimension_numbers<[1], [0], [0], [1], [0, 0, 1, 1], [], []>} : vector<8x128xbf16>, vector<128x512xbf16>, vector<8x512xf32> -> vector<8x512xf32>
    %180 = arith.addf %177, %179 : vector<8x512xf32>
    %181 = vector.extract_strided_slice %180 {offsets = [0, 0], sizes = [8, 128], strides = [1, 1]} : vector<8x512xf32> to vector<8x128xf32>
    %182 = arith.negf %181 : vector<8x128xf32>
    %183 = math.exp %182 : vector<8x128xf32>
    %cst_84 = arith.constant 1.000000e+00 : f32
    %184 = vector.broadcast %cst_84 : f32 to vector<8x128xf32>
    %185 = arith.addf %184, %183 : vector<8x128xf32>
    %186 = arith.divf %184, %185 : vector<8x128xf32>
    %187 = vector.extract_strided_slice %180 {offsets = [0, 128], sizes = [8, 128], strides = [1, 1]} : vector<8x512xf32> to vector<8x128xf32>
    %188 = arith.negf %187 : vector<8x128xf32>
    %189 = math.exp %188 : vector<8x128xf32>
    %cst_85 = arith.constant 1.000000e+00 : f32
    %190 = vector.broadcast %cst_85 : f32 to vector<8x128xf32>
    %191 = arith.addf %190, %189 : vector<8x128xf32>
    %192 = arith.divf %190, %191 : vector<8x128xf32>
    %193 = vector.extract_strided_slice %180 {offsets = [0, 256], sizes = [8, 128], strides = [1, 1]} : vector<8x512xf32> to vector<8x128xf32>
    %194 = math.tanh %193 : vector<8x128xf32>
    %195 = vector.extract_strided_slice %180 {offsets = [0, 384], sizes = [8, 128], strides = [1, 1]} : vector<8x512xf32> to vector<8x128xf32>
    %196 = arith.negf %195 : vector<8x128xf32>
    %197 = math.exp %196 : vector<8x128xf32>
    %cst_86 = arith.constant 1.000000e+00 : f32
    %198 = vector.broadcast %cst_86 : f32 to vector<8x128xf32>
    %199 = arith.addf %198, %197 : vector<8x128xf32>
    %200 = arith.divf %198, %199 : vector<8x128xf32>
    %201 = arith.mulf %192, %174 : vector<8x128xf32>
    %202 = arith.mulf %186, %194 : vector<8x128xf32>
    %203 = arith.addf %201, %202 : vector<8x128xf32>
    %204 = math.tanh %203 : vector<8x128xf32>
    %205 = arith.mulf %200, %204 : vector<8x128xf32>
    %c0_87 = arith.constant 0 : index
    %c0_88 = arith.constant 0 : index
    %206 = vector.load %arg10[%c0_87, %c0_88] : memref<8x128xf32, #tpu.memory_space<vmem>>, vector<8x128xf32>
    tpu.vector_store %arg10[%c0_87, %c0_88], %205 {strides = array<i32>} : memref<8x128xf32, #tpu.memory_space<vmem>>, vector<8x128xf32>,
    %c0_89 = arith.constant 0 : index
    %c0_90 = arith.constant 0 : index
    %207 = vector.load %arg11[%c0_89, %c0_90] : memref<8x128xf32, #tpu.memory_space<vmem>>, vector<8x128xf32>
    tpu.vector_store %arg11[%c0_89, %c0_90], %203 {strides = array<i32>} : memref<8x128xf32, #tpu.memory_space<vmem>>, vector<8x128xf32>,
    %208 = arith.truncf %205 : vector<8x128xf32> to vector<8x128xbf16>
    %209 = arith.index_cast %c4_i32 : i32 to index
    %c0_91 = arith.constant 0 : index
    %c0_92 = arith.constant 0 : index
    %210 = vector.load %arg6[%209, %c0_91, %c0_92] : memref<8x8x128xbf16, #tpu.memory_space<vmem>>, vector<1x8x128xbf16>
    %211 = vector.shape_cast %210 : vector<1x8x128xbf16> to vector<8x128xbf16>
    %212 = vector.shape_cast %208 : vector<8x128xbf16> to vector<1x8x128xbf16>
    tpu.vector_store %arg6[%209, %c0_91, %c0_92], %212 {strides = array<i32>} : memref<8x8x128xbf16, #tpu.memory_space<vmem>>, vector<1x8x128xbf16>,
    %c5_i32 = arith.constant 5 : i32
    %c0_93 = arith.constant 0 : index
    %c0_94 = arith.constant 0 : index
    %213 = vector.load %arg10[%c0_93, %c0_94] : memref<8x128xf32, #tpu.memory_space<vmem>>, vector<8x128xf32>
    %c0_95 = arith.constant 0 : index
    %c0_96 = arith.constant 0 : index
    %214 = vector.load %arg11[%c0_95, %c0_96] : memref<8x128xf32, #tpu.memory_space<vmem>>, vector<8x128xf32>
    %215 = arith.index_cast %c5_i32 : i32 to index
    %c0_97 = arith.constant 0 : index
    %c0_98 = arith.constant 0 : index
    %216 = vector.load %arg9[%215, %c0_97, %c0_98] : memref<8x8x512xf32, #tpu.memory_space<vmem>>, vector<1x8x512xf32>
    %217 = vector.shape_cast %216 : vector<1x8x512xf32> to vector<8x512xf32>
    %218 = arith.truncf %213 : vector<8x128xf32> to vector<8x128xbf16>
    %cst_99 = arith.constant dense<0.000000e+00> : vector<8x512xf32>
    %219 = tpu.matmul %218, %12, %cst_99 {dimension_numbers = #tpu.dot_dimension_numbers<[1], [0], [0], [1], [0, 0, 1, 1], [], []>} : vector<8x128xbf16>, vector<128x512xbf16>, vector<8x512xf32> -> vector<8x512xf32>
    %220 = arith.addf %217, %219 : vector<8x512xf32>
    %221 = vector.extract_strided_slice %220 {offsets = [0, 0], sizes = [8, 128], strides = [1, 1]} : vector<8x512xf32> to vector<8x128xf32>
    %222 = arith.negf %221 : vector<8x128xf32>
    %223 = math.exp %222 : vector<8x128xf32>
    %cst_100 = arith.constant 1.000000e+00 : f32
    %224 = vector.broadcast %cst_100 : f32 to vector<8x128xf32>
    %225 = arith.addf %224, %223 : vector<8x128xf32>
    %226 = arith.divf %224, %225 : vector<8x128xf32>
    %227 = vector.extract_strided_slice %220 {offsets = [0, 128], sizes = [8, 128], strides = [1, 1]} : vector<8x512xf32> to vector<8x128xf32>
    %228 = arith.negf %227 : vector<8x128xf32>
    %229 = math.exp %228 : vector<8x128xf32>
    %cst_101 = arith.constant 1.000000e+00 : f32
    %230 = vector.broadcast %cst_101 : f32 to vector<8x128xf32>
    %231 = arith.addf %230, %229 : vector<8x128xf32>
    %232 = arith.divf %230, %231 : vector<8x128xf32>
    %233 = vector.extract_strided_slice %220 {offsets = [0, 256], sizes = [8, 128], strides = [1, 1]} : vector<8x512xf32> to vector<8x128xf32>
    %234 = math.tanh %233 : vector<8x128xf32>
    %235 = vector.extract_strided_slice %220 {offsets = [0, 384], sizes = [8, 128], strides = [1, 1]} : vector<8x512xf32> to vector<8x128xf32>
    %236 = arith.negf %235 : vector<8x128xf32>
    %237 = math.exp %236 : vector<8x128xf32>
    %cst_102 = arith.constant 1.000000e+00 : f32
    %238 = vector.broadcast %cst_102 : f32 to vector<8x128xf32>
    %239 = arith.addf %238, %237 : vector<8x128xf32>
    %240 = arith.divf %238, %239 : vector<8x128xf32>
    %241 = arith.mulf %232, %214 : vector<8x128xf32>
    %242 = arith.mulf %226, %234 : vector<8x128xf32>
    %243 = arith.addf %241, %242 : vector<8x128xf32>
    %244 = math.tanh %243 : vector<8x128xf32>
    %245 = arith.mulf %240, %244 : vector<8x128xf32>
    %c0_103 = arith.constant 0 : index
    %c0_104 = arith.constant 0 : index
    %246 = vector.load %arg10[%c0_103, %c0_104] : memref<8x128xf32, #tpu.memory_space<vmem>>, vector<8x128xf32>
    tpu.vector_store %arg10[%c0_103, %c0_104], %245 {strides = array<i32>} : memref<8x128xf32, #tpu.memory_space<vmem>>, vector<8x128xf32>,
    %c0_105 = arith.constant 0 : index
    %c0_106 = arith.constant 0 : index
    %247 = vector.load %arg11[%c0_105, %c0_106] : memref<8x128xf32, #tpu.memory_space<vmem>>, vector<8x128xf32>
    tpu.vector_store %arg11[%c0_105, %c0_106], %243 {strides = array<i32>} : memref<8x128xf32, #tpu.memory_space<vmem>>, vector<8x128xf32>,
    %248 = arith.truncf %245 : vector<8x128xf32> to vector<8x128xbf16>
    %249 = arith.index_cast %c5_i32 : i32 to index
    %c0_107 = arith.constant 0 : index
    %c0_108 = arith.constant 0 : index
    %250 = vector.load %arg6[%249, %c0_107, %c0_108] : memref<8x8x128xbf16, #tpu.memory_space<vmem>>, vector<1x8x128xbf16>
    %251 = vector.shape_cast %250 : vector<1x8x128xbf16> to vector<8x128xbf16>
    %252 = vector.shape_cast %248 : vector<8x128xbf16> to vector<1x8x128xbf16>
    tpu.vector_store %arg6[%249, %c0_107, %c0_108], %252 {strides = array<i32>} : memref<8x8x128xbf16, #tpu.memory_space<vmem>>, vector<1x8x128xbf16>,
    %c6_i32 = arith.constant 6 : i32
    %c0_109 = arith.constant 0 : index
    %c0_110 = arith.constant 0 : index
    %253 = vector.load %arg10[%c0_109, %c0_110] : memref<8x128xf32, #tpu.memory_space<vmem>>, vector<8x128xf32>
    %c0_111 = arith.constant 0 : index
    %c0_112 = arith.constant 0 : index
    %254 = vector.load %arg11[%c0_111, %c0_112] : memref<8x128xf32, #tpu.memory_space<vmem>>, vector<8x128xf32>
    %255 = arith.index_cast %c6_i32 : i32 to index
    %c0_113 = arith.constant 0 : index
    %c0_114 = arith.constant 0 : index
    %256 = vector.load %arg9[%255, %c0_113, %c0_114] : memref<8x8x512xf32, #tpu.memory_space<vmem>>, vector<1x8x512xf32>
    %257 = vector.shape_cast %256 : vector<1x8x512xf32> to vector<8x512xf32>
    %258 = arith.truncf %253 : vector<8x128xf32> to vector<8x128xbf16>
    %cst_115 = arith.constant dense<0.000000e+00> : vector<8x512xf32>
    %259 = tpu.matmul %258, %12, %cst_115 {dimension_numbers = #tpu.dot_dimension_numbers<[1], [0], [0], [1], [0, 0, 1, 1], [], []>} : vector<8x128xbf16>, vector<128x512xbf16>, vector<8x512xf32> -> vector<8x512xf32>
    %260 = arith.addf %257, %259 : vector<8x512xf32>
    %261 = vector.extract_strided_slice %260 {offsets = [0, 0], sizes = [8, 128], strides = [1, 1]} : vector<8x512xf32> to vector<8x128xf32>
    %262 = arith.negf %261 : vector<8x128xf32>
    %263 = math.exp %262 : vector<8x128xf32>
    %cst_116 = arith.constant 1.000000e+00 : f32
    %264 = vector.broadcast %cst_116 : f32 to vector<8x128xf32>
    %265 = arith.addf %264, %263 : vector<8x128xf32>
    %266 = arith.divf %264, %265 : vector<8x128xf32>
    %267 = vector.extract_strided_slice %260 {offsets = [0, 128], sizes = [8, 128], strides = [1, 1]} : vector<8x512xf32> to vector<8x128xf32>
    %268 = arith.negf %267 : vector<8x128xf32>
    %269 = math.exp %268 : vector<8x128xf32>
    %cst_117 = arith.constant 1.000000e+00 : f32
    %270 = vector.broadcast %cst_117 : f32 to vector<8x128xf32>
    %271 = arith.addf %270, %269 : vector<8x128xf32>
    %272 = arith.divf %270, %271 : vector<8x128xf32>
    %273 = vector.extract_strided_slice %260 {offsets = [0, 256], sizes = [8, 128], strides = [1, 1]} : vector<8x512xf32> to vector<8x128xf32>
    %274 = math.tanh %273 : vector<8x128xf32>
    %275 = vector.extract_strided_slice %260 {offsets = [0, 384], sizes = [8, 128], strides = [1, 1]} : vector<8x512xf32> to vector<8x128xf32>
    %276 = arith.negf %275 : vector<8x128xf32>
    %277 = math.exp %276 : vector<8x128xf32>
    %cst_118 = arith.constant 1.000000e+00 : f32
    %278 = vector.broadcast %cst_118 : f32 to vector<8x128xf32>
    %279 = arith.addf %278, %277 : vector<8x128xf32>
    %280 = arith.divf %278, %279 : vector<8x128xf32>
    %281 = arith.mulf %272, %254 : vector<8x128xf32>
    %282 = arith.mulf %266, %274 : vector<8x128xf32>
    %283 = arith.addf %281, %282 : vector<8x128xf32>
    %284 = math.tanh %283 : vector<8x128xf32>
    %285 = arith.mulf %280, %284 : vector<8x128xf32>
    %c0_119 = arith.constant 0 : index
    %c0_120 = arith.constant 0 : index
    %286 = vector.load %arg10[%c0_119, %c0_120] : memref<8x128xf32, #tpu.memory_space<vmem>>, vector<8x128xf32>
    tpu.vector_store %arg10[%c0_119, %c0_120], %285 {strides = array<i32>} : memref<8x128xf32, #tpu.memory_space<vmem>>, vector<8x128xf32>,
    %c0_121 = arith.constant 0 : index
    %c0_122 = arith.constant 0 : index
    %287 = vector.load %arg11[%c0_121, %c0_122] : memref<8x128xf32, #tpu.memory_space<vmem>>, vector<8x128xf32>
    tpu.vector_store %arg11[%c0_121, %c0_122], %283 {strides = array<i32>} : memref<8x128xf32, #tpu.memory_space<vmem>>, vector<8x128xf32>,
    %288 = arith.truncf %285 : vector<8x128xf32> to vector<8x128xbf16>
    %289 = arith.index_cast %c6_i32 : i32 to index
    %c0_123 = arith.constant 0 : index
    %c0_124 = arith.constant 0 : index
    %290 = vector.load %arg6[%289, %c0_123, %c0_124] : memref<8x8x128xbf16, #tpu.memory_space<vmem>>, vector<1x8x128xbf16>
    %291 = vector.shape_cast %290 : vector<1x8x128xbf16> to vector<8x128xbf16>
    %292 = vector.shape_cast %288 : vector<8x128xbf16> to vector<1x8x128xbf16>
    tpu.vector_store %arg6[%289, %c0_123, %c0_124], %292 {strides = array<i32>} : memref<8x8x128xbf16, #tpu.memory_space<vmem>>, vector<1x8x128xbf16>,
    %c7_i32 = arith.constant 7 : i32
    %c0_125 = arith.constant 0 : index
    %c0_126 = arith.constant 0 : index
    %293 = vector.load %arg10[%c0_125, %c0_126] : memref<8x128xf32, #tpu.memory_space<vmem>>, vector<8x128xf32>
    %c0_127 = arith.constant 0 : index
    %c0_128 = arith.constant 0 : index
    %294 = vector.load %arg11[%c0_127, %c0_128] : memref<8x128xf32, #tpu.memory_space<vmem>>, vector<8x128xf32>
    %295 = arith.index_cast %c7_i32 : i32 to index
    %c0_129 = arith.constant 0 : index
    %c0_130 = arith.constant 0 : index
    %296 = vector.load %arg9[%295, %c0_129, %c0_130] : memref<8x8x512xf32, #tpu.memory_space<vmem>>, vector<1x8x512xf32>
    %297 = vector.shape_cast %296 : vector<1x8x512xf32> to vector<8x512xf32>
    %298 = arith.truncf %293 : vector<8x128xf32> to vector<8x128xbf16>
    %cst_131 = arith.constant dense<0.000000e+00> : vector<8x512xf32>
    %299 = tpu.matmul %298, %12, %cst_131 {dimension_numbers = #tpu.dot_dimension_numbers<[1], [0], [0], [1], [0, 0, 1, 1], [], []>} : vector<8x128xbf16>, vector<128x512xbf16>, vector<8x512xf32> -> vector<8x512xf32>
    %300 = arith.addf %297, %299 : vector<8x512xf32>
    %301 = vector.extract_strided_slice %300 {offsets = [0, 0], sizes = [8, 128], strides = [1, 1]} : vector<8x512xf32> to vector<8x128xf32>
    %302 = arith.negf %301 : vector<8x128xf32>
    %303 = math.exp %302 : vector<8x128xf32>
    %cst_132 = arith.constant 1.000000e+00 : f32
    %304 = vector.broadcast %cst_132 : f32 to vector<8x128xf32>
    %305 = arith.addf %304, %303 : vector<8x128xf32>
    %306 = arith.divf %304, %305 : vector<8x128xf32>
    %307 = vector.extract_strided_slice %300 {offsets = [0, 128], sizes = [8, 128], strides = [1, 1]} : vector<8x512xf32> to vector<8x128xf32>
    %308 = arith.negf %307 : vector<8x128xf32>
    %309 = math.exp %308 : vector<8x128xf32>
    %cst_133 = arith.constant 1.000000e+00 : f32
    %310 = vector.broadcast %cst_133 : f32 to vector<8x128xf32>
    %311 = arith.addf %310, %309 : vector<8x128xf32>
    %312 = arith.divf %310, %311 : vector<8x128xf32>
    %313 = vector.extract_strided_slice %300 {offsets = [0, 256], sizes = [8, 128], strides = [1, 1]} : vector<8x512xf32> to vector<8x128xf32>
    %314 = math.tanh %313 : vector<8x128xf32>
    %315 = vector.extract_strided_slice %300 {offsets = [0, 384], sizes = [8, 128], strides = [1, 1]} : vector<8x512xf32> to vector<8x128xf32>
    %316 = arith.negf %315 : vector<8x128xf32>
    %317 = math.exp %316 : vector<8x128xf32>
    %cst_134 = arith.constant 1.000000e+00 : f32
    %318 = vector.broadcast %cst_134 : f32 to vector<8x128xf32>
    %319 = arith.addf %318, %317 : vector<8x128xf32>
    %320 = arith.divf %318, %319 : vector<8x128xf32>
    %321 = arith.mulf %312, %294 : vector<8x128xf32>
    %322 = arith.mulf %306, %314 : vector<8x128xf32>
    %323 = arith.addf %321, %322 : vector<8x128xf32>
    %324 = math.tanh %323 : vector<8x128xf32>
    %325 = arith.mulf %320, %324 : vector<8x128xf32>
    %c0_135 = arith.constant 0 : index
    %c0_136 = arith.constant 0 : index
    %326 = vector.load %arg10[%c0_135, %c0_136] : memref<8x128xf32, #tpu.memory_space<vmem>>, vector<8x128xf32>
    tpu.vector_store %arg10[%c0_135, %c0_136], %325 {strides = array<i32>} : memref<8x128xf32, #tpu.memory_space<vmem>>, vector<8x128xf32>,
    %c0_137 = arith.constant 0 : index
    %c0_138 = arith.constant 0 : index
    %327 = vector.load %arg11[%c0_137, %c0_138] : memref<8x128xf32, #tpu.memory_space<vmem>>, vector<8x128xf32>
    tpu.vector_store %arg11[%c0_137, %c0_138], %323 {strides = array<i32>} : memref<8x128xf32, #tpu.memory_space<vmem>>, vector<8x128xf32>,
    %328 = arith.truncf %325 : vector<8x128xf32> to vector<8x128xbf16>
    %329 = arith.index_cast %c7_i32 : i32 to index
    %c0_139 = arith.constant 0 : index
    %c0_140 = arith.constant 0 : index
    %330 = vector.load %arg6[%329, %c0_139, %c0_140] : memref<8x8x128xbf16, #tpu.memory_space<vmem>>, vector<1x8x128xbf16>
    %331 = vector.shape_cast %330 : vector<1x8x128xbf16> to vector<8x128xbf16>
    %332 = vector.shape_cast %328 : vector<8x128xbf16> to vector<1x8x128xbf16>
    tpu.vector_store %arg6[%329, %c0_139, %c0_140], %332 {strides = array<i32>} : memref<8x8x128xbf16, #tpu.memory_space<vmem>>, vector<1x8x128xbf16>,
    %c8_i32 = arith.constant 8 : i32
    %c0_i32_141 = arith.constant 0 : i32
    %333 = arith.cmpi eq, %arg1, %c0_i32_141 : i32
    %334 = arith.extui %333 : i1 to i32
    %c0_i32_142 = arith.constant 0 : i32
    %335 = arith.cmpi ne, %334, %c0_i32_142 : i32
    scf.if %335 {
      %c0_143 = arith.constant 0 : index
      %c0_144 = arith.constant 0 : index
      %336 = vector.load %arg10[%c0_143, %c0_144] : memref<8x128xf32, #tpu.memory_space<vmem>>, vector<8x128xf32>
      %c0_145 = arith.constant 0 : index
      %c0_146 = arith.constant 0 : index
      %337 = vector.load %arg7[%c0_145, %c0_146] : memref<8x128xf32, #tpu.memory_space<vmem>>, vector<8x128xf32>
      tpu.vector_store %arg7[%c0_145, %c0_146], %336 {strides = array<i32>} : memref<8x128xf32, #tpu.memory_space<vmem>>, vector<8x128xf32>,
      %c0_147 = arith.constant 0 : index
      %c0_148 = arith.constant 0 : index
      %338 = vector.load %arg11[%c0_147, %c0_148] : memref<8x128xf32, #tpu.memory_space<vmem>>, vector<8x128xf32>
      %c0_149 = arith.constant 0 : index
      %c0_150 = arith.constant 0 : index
      %339 = vector.load %arg8[%c0_149, %c0_150] : memref<8x128xf32, #tpu.memory_space<vmem>>, vector<8x128xf32>
      tpu.vector_store %arg8[%c0_149, %c0_150], %338 {strides = array<i32>} : memref<8x128xf32, #tpu.memory_space<vmem>>, vector<8x128xf32>,
    } else {
    }
    return
  }
  func.func @transform_0(%arg0: i32, %arg1: i32) -> (i32, i32, i32) {
    %c0_i32 = arith.constant 0 : i32
    %c0_i32_0 = arith.constant 0 : i32
    return %arg1, %arg0, %c0_i32 : i32, i32, i32
  }
  func.func @transform_1(%arg0: i32, %arg1: i32) -> (i32, i32) {
    %c0_i32 = arith.constant 0 : i32
    %c0_i32_0 = arith.constant 0 : i32
    %c0_i32_1 = arith.constant 0 : i32
    return %c0_i32, %c0_i32_0 : i32, i32
  }
  func.func @transform_2(%arg0: i32, %arg1: i32) -> (i32, i32) {
    %c0_i32 = arith.constant 0 : i32
    %c0_i32_0 = arith.constant 0 : i32
    %c0_i32_1 = arith.constant 0 : i32
    return %c0_i32, %c0_i32_0 : i32, i32
  }
  func.func @transform_3(%arg0: i32, %arg1: i32) -> (i32, i32) {
    %c0_i32 = arith.constant 0 : i32
    %c0_i32_0 = arith.constant 0 : i32
    %c0_i32_1 = arith.constant 0 : i32
    return %c0_i32, %c0_i32_0 : i32, i32
  }
  func.func @transform_4(%arg0: i32, %arg1: i32) -> (i32, i32, i32) {
    %c0_i32 = arith.constant 0 : i32
    %c0_i32_0 = arith.constant 0 : i32
    return %arg1, %arg0, %c0_i32 : i32, i32, i32
  }
  func.func @transform_5(%arg0: i32, %arg1: i32) -> (i32, i32) {
    %c0_i32 = arith.constant 0 : i32
    %c0_i32_0 = arith.constant 0 : i32
    return %arg0, %c0_i32 : i32, i32
  }
  func.func @transform_6(%arg0: i32, %arg1: i32) -> (i32, i32) {
    %c0_i32 = arith.constant 0 : i32
    %c0_i32_0 = arith.constant 0 : i32
    return %arg0, %c0_i32 : i32, i32
  }
}

module attributes {stable_mosaic.version = 11 : i64} {
  func.func @_lstm_layer_kernel(%arg0: i32, %arg1: i32, %arg2: memref<8x8x128xbf16, #tpu.memory_space<vmem>>, %arg3: memref<128x512xbf16, #tpu.memory_space<vmem>>, %arg4: memref<128x512xbf16, #tpu.memory_space<vmem>>, %arg5: memref<1x512xf32, #tpu.memory_space<vmem>>, %arg6: memref<8x8x128xbf16, #tpu.memory_space<vmem>>, %arg7: memref<8x128xf32, #tpu.memory_space<vmem>>, %arg8: memref<8x128xf32, #tpu.memory_space<vmem>>, %arg9: memref<8x8x512xf32, #tpu.memory_space<vmem>>, %arg10: memref<8x128xf32, #tpu.memory_space<vmem>>, %arg11: memref<8x128xf32, #tpu.memory_space<vmem>>) attributes {dimension_semantics = [#tpu.dimension_semantics<parallel>, #tpu.dimension_semantics<arbitrary>], iteration_bounds = array<i64: 1, 1>, scalar_prefetch = 0 : i64, scratch_operands = 3 : i64, tpu.core_type = #tpu.core_type<tc>, window_params = [{transform_indices = @transform_0, window_bounds = array<i64: 8, 8, 128>}, {pipeline_mode = #tpu.pipeline_mode<synchronous>, transform_indices = @transform_1, window_bounds = array<i64: 128, 512>}, {pipeline_mode = #tpu.pipeline_mode<synchronous>, transform_indices = @transform_2, window_bounds = array<i64: 128, 512>}, {pipeline_mode = #tpu.pipeline_mode<synchronous>, transform_indices = @transform_3, window_bounds = array<i64: 1, 512>}, {transform_indices = @transform_4, window_bounds = array<i64: 8, 8, 128>}, {transform_indices = @transform_5, window_bounds = array<i64: 8, 128>}, {transform_indices = @transform_6, window_bounds = array<i64: 8, 128>}]} {
    %c0_i32 = arith.constant 0 : i32
    %0 = arith.cmpi eq, %arg1, %c0_i32 : i32
    %1 = arith.extui %0 : i1 to i32
    %c0_i32_0 = arith.constant 0 : i32
    %2 = arith.cmpi ne, %1, %c0_i32_0 : i32
    scf.if %2 {
      %cst_143 = arith.constant 0.000000e+00 : f32
      %336 = vector.broadcast %cst_143 : f32 to vector<8x128xf32>
      %c0_144 = arith.constant 0 : index
      %c0_145 = arith.constant 0 : index
      %337 = vector.load %arg10[%c0_144, %c0_145] : memref<8x128xf32, #tpu.memory_space<vmem>>, vector<8x128xf32>
      tpu.vector_store %arg10[%c0_144, %c0_145], %336 {strides = array<i32>} : memref<8x128xf32, #tpu.memory_space<vmem>>, vector<8x128xf32>,
      %cst_146 = arith.constant 0.000000e+00 : f32
      %338 = vector.broadcast %cst_146 : f32 to vector<8x128xf32>
      %c0_147 = arith.constant 0 : index
      %c0_148 = arith.constant 0 : index
      %339 = vector.load %arg11[%c0_147, %c0_148] : memref<8x128xf32, #tpu.memory_space<vmem>>, vector<8x128xf32>
      tpu.vector_store %arg11[%c0_147, %c0_148], %338 {strides = array<i32>} : memref<8x128xf32, #tpu.memory_space<vmem>>, vector<8x128xf32>,
    } else {
    }
    %c0 = arith.constant 0 : index
    %c0_1 = arith.constant 0 : index
    %c0_2 = arith.constant 0 : index
    %3 = vector.load %arg2[%c0, %c0_1, %c0_2] : memref<8x8x128xbf16, #tpu.memory_space<vmem>>, vector<8x8x128xbf16>
    %4 = vector.shape_cast %3 : vector<8x8x128xbf16> to vector<64x128xbf16>
    %c0_3 = arith.constant 0 : index
    %c0_4 = arith.constant 0 : index
    %5 = vector.load %arg3[%c0_3, %c0_4] : memref<128x512xbf16, #tpu.memory_space<vmem>>, vector<128x512xbf16>
    %cst = arith.constant dense<0.000000e+00> : vector<64x512xf32>
    %6 = tpu.matmul %4, %5, %cst {dimension_numbers = #tpu.dot_dimension_numbers<[1], [0], [0], [1], [0, 0, 1, 1], [], []>} : vector<64x128xbf16>, vector<128x512xbf16>, vector<64x512xf32> -> vector<64x512xf32>
    %c0_5 = arith.constant 0 : index
    %c0_6 = arith.constant 0 : index
    %7 = vector.load %arg5[%c0_5, %c0_6] : memref<1x512xf32, #tpu.memory_space<vmem>>, vector<1x512xf32>
    %8 = vector.broadcast %7 : vector<1x512xf32> to vector<64x512xf32>
    %9 = arith.addf %6, %8 : vector<64x512xf32>
    %10 = vector.shape_cast %9 : vector<64x512xf32> to vector<8x8x512xf32>
    %c0_7 = arith.constant 0 : index
    %c0_8 = arith.constant 0 : index
    %c0_9 = arith.constant 0 : index
    %11 = vector.load %arg9[%c0_7, %c0_8, %c0_9] : memref<8x8x512xf32, #tpu.memory_space<vmem>>, vector<8x8x512xf32>
    tpu.vector_store %arg9[%c0_7, %c0_8, %c0_9], %10 {strides = array<i32>} : memref<8x8x512xf32, #tpu.memory_space<vmem>>, vector<8x8x512xf32>,
    %c0_10 = arith.constant 0 : index
    %c0_11 = arith.constant 0 : index
    %12 = vector.load %arg4[%c0_10, %c0_11] : memref<128x512xbf16, #tpu.memory_space<vmem>>, vector<128x512xbf16>
    %c0_i32_12 = arith.constant 0 : i32
    %c0_13 = arith.constant 0 : index
    %c0_14 = arith.constant 0 : index
    %13 = vector.load %arg10[%c0_13, %c0_14] : memref<8x128xf32, #tpu.memory_space<vmem>>, vector<8x128xf32>
    %c0_15 = arith.constant 0 : index
    %c0_16 = arith.constant 0 : index
    %14 = vector.load %arg11[%c0_15, %c0_16] : memref<8x128xf32, #tpu.memory_space<vmem>>, vector<8x128xf32>
    %15 = arith.index_cast %c0_i32_12 : i32 to index
    %c0_17 = arith.constant 0 : index
    %c0_18 = arith.constant 0 : index
    %16 = vector.load %arg9[%15, %c0_17, %c0_18] : memref<8x8x512xf32, #tpu.memory_space<vmem>>, vector<1x8x512xf32>
    %17 = vector.shape_cast %16 : vector<1x8x512xf32> to vector<8x512xf32>
    %18 = arith.truncf %13 : vector<8x128xf32> to vector<8x128xbf16>
    %cst_19 = arith.constant dense<0.000000e+00> : vector<8x512xf32>
    %19 = tpu.matmul %18, %12, %cst_19 {dimension_numbers = #tpu.dot_dimension_numbers<[1], [0], [0], [1], [0, 0, 1, 1], [], []>} : vector<8x128xbf16>, vector<128x512xbf16>, vector<8x512xf32> -> vector<8x512xf32>
    %20 = arith.addf %17, %19 : vector<8x512xf32>
    %21 = vector.extract_strided_slice %20 {offsets = [0, 0], sizes = [8, 128], strides = [1, 1]} : vector<8x512xf32> to vector<8x128xf32>
    %22 = arith.negf %21 : vector<8x128xf32>
    %23 = math.exp %22 : vector<8x128xf32>
    %cst_20 = arith.constant 1.000000e+00 : f32
    %24 = vector.broadcast %cst_20 : f32 to vector<8x128xf32>
    %25 = arith.addf %24, %23 : vector<8x128xf32>
    %26 = arith.divf %24, %25 : vector<8x128xf32>
    %27 = vector.extract_strided_slice %20 {offsets = [0, 128], sizes = [8, 128], strides = [1, 1]} : vector<8x512xf32> to vector<8x128xf32>
    %28 = arith.negf %27 : vector<8x128xf32>
    %29 = math.exp %28 : vector<8x128xf32>
    %cst_21 = arith.constant 1.000000e+00 : f32
    %30 = vector.broadcast %cst_21 : f32 to vector<8x128xf32>
    %31 = arith.addf %30, %29 : vector<8x128xf32>
    %32 = arith.divf %30, %31 : vector<8x128xf32>
    %33 = vector.extract_strided_slice %20 {offsets = [0, 256], sizes = [8, 128], strides = [1, 1]} : vector<8x512xf32> to vector<8x128xf32>
    %34 = math.tanh %33 : vector<8x128xf32>
    %35 = vector.extract_strided_slice %20 {offsets = [0, 384], sizes = [8, 128], strides = [1, 1]} : vector<8x512xf32> to vector<8x128xf32>
    %36 = arith.negf %35 : vector<8x128xf32>
    %37 = math.exp %36 : vector<8x128xf32>
    %cst_22 = arith.constant 1.000000e+00 : f32
    %38 = vector.broadcast %cst_22 : f32 to vector<8x128xf32>
    %39 = arith.addf %38, %37 : vector<8x128xf32>
    %40 = arith.divf %38, %39 : vector<8x128xf32>
    %41 = arith.mulf %32, %14 : vector<8x128xf32>
    %42 = arith.mulf %26, %34 : vector<8x128xf32>
    %43 = arith.addf %41, %42 : vector<8x128xf32>
    %44 = math.tanh %43 : vector<8x128xf32>
    %45 = arith.mulf %40, %44 : vector<8x128xf32>
    %c0_23 = arith.constant 0 : index
    %c0_24 = arith.constant 0 : index
    %46 = vector.load %arg10[%c0_23, %c0_24] : memref<8x128xf32, #tpu.memory_space<vmem>>, vector<8x128xf32>
    tpu.vector_store %arg10[%c0_23, %c0_24], %45 {strides = array<i32>} : memref<8x128xf32, #tpu.memory_space<vmem>>, vector<8x128xf32>,
    %c0_25 = arith.constant 0 : index
    %c0_26 = arith.constant 0 : index
    %47 = vector.load %arg11[%c0_25, %c0_26] : memref<8x128xf32, #tpu.memory_space<vmem>>, vector<8x128xf32>
    tpu.vector_store %arg11[%c0_25, %c0_26], %43 {strides = array<i32>} : memref<8x128xf32, #tpu.memory_space<vmem>>, vector<8x128xf32>,
    %48 = arith.truncf %45 : vector<8x128xf32> to vector<8x128xbf16>
    %49 = arith.index_cast %c0_i32_12 : i32 to index
    %c0_27 = arith.constant 0 : index
    %c0_28 = arith.constant 0 : index
    %50 = vector.load %arg6[%49, %c0_27, %c0_28] : memref<8x8x128xbf16, #tpu.memory_space<vmem>>, vector<1x8x128xbf16>
    %51 = vector.shape_cast %50 : vector<1x8x128xbf16> to vector<8x128xbf16>
    %52 = vector.shape_cast %48 : vector<8x128xbf16> to vector<1x8x128xbf16>
    tpu.vector_store %arg6[%49, %c0_27, %c0_28], %52 {strides = array<i32>} : memref<8x8x128xbf16, #tpu.memory_space<vmem>>, vector<1x8x128xbf16>,
    %c1_i32 = arith.constant 1 : i32
    %c0_29 = arith.constant 0 : index
    %c0_30 = arith.constant 0 : index
    %53 = vector.load %arg10[%c0_29, %c0_30] : memref<8x128xf32, #tpu.memory_space<vmem>>, vector<8x128xf32>
    %c0_31 = arith.constant 0 : index
    %c0_32 = arith.constant 0 : index
    %54 = vector.load %arg11[%c0_31, %c0_32] : memref<8x128xf32, #tpu.memory_space<vmem>>, vector<8x128xf32>
    %55 = arith.index_cast %c1_i32 : i32 to index
    %c0_33 = arith.constant 0 : index
    %c0_34 = arith.constant 0 : index
    %56 = vector.load %arg9[%55, %c0_33, %c0_34] : memref<8x8x512xf32, #tpu.memory_space<vmem>>, vector<1x8x512xf32>
    %57 = vector.shape_cast %56 : vector<1x8x512xf32> to vector<8x512xf32>
    %58 = arith.truncf %53 : vector<8x128xf32> to vector<8x128xbf16>
    %cst_35 = arith.constant dense<0.000000e+00> : vector<8x512xf32>
    %59 = tpu.matmul %58, %12, %cst_35 {dimension_numbers = #tpu.dot_dimension_numbers<[1], [0], [0], [1], [0, 0, 1, 1], [], []>} : vector<8x128xbf16>, vector<128x512xbf16>, vector<8x512xf32> -> vector<8x512xf32>
    %60 = arith.addf %57, %59 : vector<8x512xf32>
    %61 = vector.extract_strided_slice %60 {offsets = [0, 0], sizes = [8, 128], strides = [1, 1]} : vector<8x512xf32> to vector<8x128xf32>
    %62 = arith.negf %61 : vector<8x128xf32>
    %63 = math.exp %62 : vector<8x128xf32>
    %cst_36 = arith.constant 1.000000e+00 : f32
    %64 = vector.broadcast %cst_36 : f32 to vector<8x128xf32>
    %65 = arith.addf %64, %63 : vector<8x128xf32>
    %66 = arith.divf %64, %65 : vector<8x128xf32>
    %67 = vector.extract_strided_slice %60 {offsets = [0, 128], sizes = [8, 128], strides = [1, 1]} : vector<8x512xf32> to vector<8x128xf32>
    %68 = arith.negf %67 : vector<8x128xf32>
    %69 = math.exp %68 : vector<8x128xf32>
    %cst_37 = arith.constant 1.000000e+00 : f32
    %70 = vector.broadcast %cst_37 : f32 to vector<8x128xf32>
    %71 = arith.addf %70, %69 : vector<8x128xf32>
    %72 = arith.divf %70, %71 : vector<8x128xf32>
    %73 = vector.extract_strided_slice %60 {offsets = [0, 256], sizes = [8, 128], strides = [1, 1]} : vector<8x512xf32> to vector<8x128xf32>
    %74 = math.tanh %73 : vector<8x128xf32>
    %75 = vector.extract_strided_slice %60 {offsets = [0, 384], sizes = [8, 128], strides = [1, 1]} : vector<8x512xf32> to vector<8x128xf32>
    %76 = arith.negf %75 : vector<8x128xf32>
    %77 = math.exp %76 : vector<8x128xf32>
    %cst_38 = arith.constant 1.000000e+00 : f32
    %78 = vector.broadcast %cst_38 : f32 to vector<8x128xf32>
    %79 = arith.addf %78, %77 : vector<8x128xf32>
    %80 = arith.divf %78, %79 : vector<8x128xf32>
    %81 = arith.mulf %72, %54 : vector<8x128xf32>
    %82 = arith.mulf %66, %74 : vector<8x128xf32>
    %83 = arith.addf %81, %82 : vector<8x128xf32>
    %84 = math.tanh %83 : vector<8x128xf32>
    %85 = arith.mulf %80, %84 : vector<8x128xf32>
    %c0_39 = arith.constant 0 : index
    %c0_40 = arith.constant 0 : index
    %86 = vector.load %arg10[%c0_39, %c0_40] : memref<8x128xf32, #tpu.memory_space<vmem>>, vector<8x128xf32>
    tpu.vector_store %arg10[%c0_39, %c0_40], %85 {strides = array<i32>} : memref<8x128xf32, #tpu.memory_space<vmem>>, vector<8x128xf32>,
    %c0_41 = arith.constant 0 : index
    %c0_42 = arith.constant 0 : index
    %87 = vector.load %arg11[%c0_41, %c0_42] : memref<8x128xf32, #tpu.memory_space<vmem>>, vector<8x128xf32>
    tpu.vector_store %arg11[%c0_41, %c0_42], %83 {strides = array<i32>} : memref<8x128xf32, #tpu.memory_space<vmem>>, vector<8x128xf32>,
    %88 = arith.truncf %85 : vector<8x128xf32> to vector<8x128xbf16>
    %89 = arith.index_cast %c1_i32 : i32 to index
    %c0_43 = arith.constant 0 : index
    %c0_44 = arith.constant 0 : index
    %90 = vector.load %arg6[%89, %c0_43, %c0_44] : memref<8x8x128xbf16, #tpu.memory_space<vmem>>, vector<1x8x128xbf16>
    %91 = vector.shape_cast %90 : vector<1x8x128xbf16> to vector<8x128xbf16>
    %92 = vector.shape_cast %88 : vector<8x128xbf16> to vector<1x8x128xbf16>
    tpu.vector_store %arg6[%89, %c0_43, %c0_44], %92 {strides = array<i32>} : memref<8x8x128xbf16, #tpu.memory_space<vmem>>, vector<1x8x128xbf16>,
    %c2_i32 = arith.constant 2 : i32
    %c0_45 = arith.constant 0 : index
    %c0_46 = arith.constant 0 : index
    %93 = vector.load %arg10[%c0_45, %c0_46] : memref<8x128xf32, #tpu.memory_space<vmem>>, vector<8x128xf32>
    %c0_47 = arith.constant 0 : index
    %c0_48 = arith.constant 0 : index
    %94 = vector.load %arg11[%c0_47, %c0_48] : memref<8x128xf32, #tpu.memory_space<vmem>>, vector<8x128xf32>
    %95 = arith.index_cast %c2_i32 : i32 to index
    %c0_49 = arith.constant 0 : index
    %c0_50 = arith.constant 0 : index
    %96 = vector.load %arg9[%95, %c0_49, %c0_50] : memref<8x8x512xf32, #tpu.memory_space<vmem>>, vector<1x8x512xf32>
    %97 = vector.shape_cast %96 : vector<1x8x512xf32> to vector<8x512xf32>
    %98 = arith.truncf %93 : vector<8x128xf32> to vector<8x128xbf16>
    %cst_51 = arith.constant dense<0.000000e+00> : vector<8x512xf32>
    %99 = tpu.matmul %98, %12, %cst_51 {dimension_numbers = #tpu.dot_dimension_numbers<[1], [0], [0], [1], [0, 0, 1, 1], [], []>} : vector<8x128xbf16>, vector<128x512xbf16>, vector<8x512xf32> -> vector<8x512xf32>
    %100 = arith.addf %97, %99 : vector<8x512xf32>
    %101 = vector.extract_strided_slice %100 {offsets = [0, 0], sizes = [8, 128], strides = [1, 1]} : vector<8x512xf32> to vector<8x128xf32>
    %102 = arith.negf %101 : vector<8x128xf32>
    %103 = math.exp %102 : vector<8x128xf32>
    %cst_52 = arith.constant 1.000000e+00 : f32
    %104 = vector.broadcast %cst_52 : f32 to vector<8x128xf32>
    %105 = arith.addf %104, %103 : vector<8x128xf32>
    %106 = arith.divf %104, %105 : vector<8x128xf32>
    %107 = vector.extract_strided_slice %100 {offsets = [0, 128], sizes = [8, 128], strides = [1, 1]} : vector<8x512xf32> to vector<8x128xf32>
    %108 = arith.negf %107 : vector<8x128xf32>
    %109 = math.exp %108 : vector<8x128xf32>
    %cst_53 = arith.constant 1.000000e+00 : f32
    %110 = vector.broadcast %cst_53 : f32 to vector<8x128xf32>
    %111 = arith.addf %110, %109 : vector<8x128xf32>
    %112 = arith.divf %110, %111 : vector<8x128xf32>
    %113 = vector.extract_strided_slice %100 {offsets = [0, 256], sizes = [8, 128], strides = [1, 1]} : vector<8x512xf32> to vector<8x128xf32>
    %114 = math.tanh %113 : vector<8x128xf32>
    %115 = vector.extract_strided_slice %100 {offsets = [0, 384], sizes = [8, 128], strides = [1, 1]} : vector<8x512xf32> to vector<8x128xf32>
    %116 = arith.negf %115 : vector<8x128xf32>
    %117 = math.exp %116 : vector<8x128xf32>
    %cst_54 = arith.constant 1.000000e+00 : f32
    %118 = vector.broadcast %cst_54 : f32 to vector<8x128xf32>
    %119 = arith.addf %118, %117 : vector<8x128xf32>
    %120 = arith.divf %118, %119 : vector<8x128xf32>
    %121 = arith.mulf %112, %94 : vector<8x128xf32>
    %122 = arith.mulf %106, %114 : vector<8x128xf32>
    %123 = arith.addf %121, %122 : vector<8x128xf32>
    %124 = math.tanh %123 : vector<8x128xf32>
    %125 = arith.mulf %120, %124 : vector<8x128xf32>
    %c0_55 = arith.constant 0 : index
    %c0_56 = arith.constant 0 : index
    %126 = vector.load %arg10[%c0_55, %c0_56] : memref<8x128xf32, #tpu.memory_space<vmem>>, vector<8x128xf32>
    tpu.vector_store %arg10[%c0_55, %c0_56], %125 {strides = array<i32>} : memref<8x128xf32, #tpu.memory_space<vmem>>, vector<8x128xf32>,
    %c0_57 = arith.constant 0 : index
    %c0_58 = arith.constant 0 : index
    %127 = vector.load %arg11[%c0_57, %c0_58] : memref<8x128xf32, #tpu.memory_space<vmem>>, vector<8x128xf32>
    tpu.vector_store %arg11[%c0_57, %c0_58], %123 {strides = array<i32>} : memref<8x128xf32, #tpu.memory_space<vmem>>, vector<8x128xf32>,
    %128 = arith.truncf %125 : vector<8x128xf32> to vector<8x128xbf16>
    %129 = arith.index_cast %c2_i32 : i32 to index
    %c0_59 = arith.constant 0 : index
    %c0_60 = arith.constant 0 : index
    %130 = vector.load %arg6[%129, %c0_59, %c0_60] : memref<8x8x128xbf16, #tpu.memory_space<vmem>>, vector<1x8x128xbf16>
    %131 = vector.shape_cast %130 : vector<1x8x128xbf16> to vector<8x128xbf16>
    %132 = vector.shape_cast %128 : vector<8x128xbf16> to vector<1x8x128xbf16>
    tpu.vector_store %arg6[%129, %c0_59, %c0_60], %132 {strides = array<i32>} : memref<8x8x128xbf16, #tpu.memory_space<vmem>>, vector<1x8x128xbf16>,
    %c3_i32 = arith.constant 3 : i32
    %c0_61 = arith.constant 0 : index
    %c0_62 = arith.constant 0 : index
    %133 = vector.load %arg10[%c0_61, %c0_62] : memref<8x128xf32, #tpu.memory_space<vmem>>, vector<8x128xf32>
    %c0_63 = arith.constant 0 : index
    %c0_64 = arith.constant 0 : index
    %134 = vector.load %arg11[%c0_63, %c0_64] : memref<8x128xf32, #tpu.memory_space<vmem>>, vector<8x128xf32>
    %135 = arith.index_cast %c3_i32 : i32 to index
    %c0_65 = arith.constant 0 : index
    %c0_66 = arith.constant 0 : index
    %136 = vector.load %arg9[%135, %c0_65, %c0_66] : memref<8x8x512xf32, #tpu.memory_space<vmem>>, vector<1x8x512xf32>
    %137 = vector.shape_cast %136 : vector<1x8x512xf32> to vector<8x512xf32>
    %138 = arith.truncf %133 : vector<8x128xf32> to vector<8x128xbf16>
    %cst_67 = arith.constant dense<0.000000e+00> : vector<8x512xf32>
    %139 = tpu.matmul %138, %12, %cst_67 {dimension_numbers = #tpu.dot_dimension_numbers<[1], [0], [0], [1], [0, 0, 1, 1], [], []>} : vector<8x128xbf16>, vector<128x512xbf16>, vector<8x512xf32> -> vector<8x512xf32>
    %140 = arith.addf %137, %139 : vector<8x512xf32>
    %141 = vector.extract_strided_slice %140 {offsets = [0, 0], sizes = [8, 128], strides = [1, 1]} : vector<8x512xf32> to vector<8x128xf32>
    %142 = arith.negf %141 : vector<8x128xf32>
    %143 = math.exp %142 : vector<8x128xf32>
    %cst_68 = arith.constant 1.000000e+00 : f32
    %144 = vector.broadcast %cst_68 : f32 to vector<8x128xf32>
    %145 = arith.addf %144, %143 : vector<8x128xf32>
    %146 = arith.divf %144, %145 : vector<8x128xf32>
    %147 = vector.extract_strided_slice %140 {offsets = [0, 128], sizes = [8, 128], strides = [1, 1]} : vector<8x512xf32> to vector<8x128xf32>
    %148 = arith.negf %147 : vector<8x128xf32>
    %149 = math.exp %148 : vector<8x128xf32>
    %cst_69 = arith.constant 1.000000e+00 : f32
    %150 = vector.broadcast %cst_69 : f32 to vector<8x128xf32>
    %151 = arith.addf %150, %149 : vector<8x128xf32>
    %152 = arith.divf %150, %151 : vector<8x128xf32>
    %153 = vector.extract_strided_slice %140 {offsets = [0, 256], sizes = [8, 128], strides = [1, 1]} : vector<8x512xf32> to vector<8x128xf32>
    %154 = math.tanh %153 : vector<8x128xf32>
    %155 = vector.extract_strided_slice %140 {offsets = [0, 384], sizes = [8, 128], strides = [1, 1]} : vector<8x512xf32> to vector<8x128xf32>
    %156 = arith.negf %155 : vector<8x128xf32>
    %157 = math.exp %156 : vector<8x128xf32>
    %cst_70 = arith.constant 1.000000e+00 : f32
    %158 = vector.broadcast %cst_70 : f32 to vector<8x128xf32>
    %159 = arith.addf %158, %157 : vector<8x128xf32>
    %160 = arith.divf %158, %159 : vector<8x128xf32>
    %161 = arith.mulf %152, %134 : vector<8x128xf32>
    %162 = arith.mulf %146, %154 : vector<8x128xf32>
    %163 = arith.addf %161, %162 : vector<8x128xf32>
    %164 = math.tanh %163 : vector<8x128xf32>
    %165 = arith.mulf %160, %164 : vector<8x128xf32>
    %c0_71 = arith.constant 0 : index
    %c0_72 = arith.constant 0 : index
    %166 = vector.load %arg10[%c0_71, %c0_72] : memref<8x128xf32, #tpu.memory_space<vmem>>, vector<8x128xf32>
    tpu.vector_store %arg10[%c0_71, %c0_72], %165 {strides = array<i32>} : memref<8x128xf32, #tpu.memory_space<vmem>>, vector<8x128xf32>,
    %c0_73 = arith.constant 0 : index
    %c0_74 = arith.constant 0 : index
    %167 = vector.load %arg11[%c0_73, %c0_74] : memref<8x128xf32, #tpu.memory_space<vmem>>, vector<8x128xf32>
    tpu.vector_store %arg11[%c0_73, %c0_74], %163 {strides = array<i32>} : memref<8x128xf32, #tpu.memory_space<vmem>>, vector<8x128xf32>,
    %168 = arith.truncf %165 : vector<8x128xf32> to vector<8x128xbf16>
    %169 = arith.index_cast %c3_i32 : i32 to index
    %c0_75 = arith.constant 0 : index
    %c0_76 = arith.constant 0 : index
    %170 = vector.load %arg6[%169, %c0_75, %c0_76] : memref<8x8x128xbf16, #tpu.memory_space<vmem>>, vector<1x8x128xbf16>
    %171 = vector.shape_cast %170 : vector<1x8x128xbf16> to vector<8x128xbf16>
    %172 = vector.shape_cast %168 : vector<8x128xbf16> to vector<1x8x128xbf16>
    tpu.vector_store %arg6[%169, %c0_75, %c0_76], %172 {strides = array<i32>} : memref<8x8x128xbf16, #tpu.memory_space<vmem>>, vector<1x8x128xbf16>,
    %c4_i32 = arith.constant 4 : i32
    %c0_77 = arith.constant 0 : index
    %c0_78 = arith.constant 0 : index
    %173 = vector.load %arg10[%c0_77, %c0_78] : memref<8x128xf32, #tpu.memory_space<vmem>>, vector<8x128xf32>
    %c0_79 = arith.constant 0 : index
    %c0_80 = arith.constant 0 : index
    %174 = vector.load %arg11[%c0_79, %c0_80] : memref<8x128xf32, #tpu.memory_space<vmem>>, vector<8x128xf32>
    %175 = arith.index_cast %c4_i32 : i32 to index
    %c0_81 = arith.constant 0 : index
    %c0_82 = arith.constant 0 : index
    %176 = vector.load %arg9[%175, %c0_81, %c0_82] : memref<8x8x512xf32, #tpu.memory_space<vmem>>, vector<1x8x512xf32>
    %177 = vector.shape_cast %176 : vector<1x8x512xf32> to vector<8x512xf32>
    %178 = arith.truncf %173 : vector<8x128xf32> to vector<8x128xbf16>
    %cst_83 = arith.constant dense<0.000000e+00> : vector<8x512xf32>
    %179 = tpu.matmul %178, %12, %cst_83 {dimension_numbers = #tpu.dot_dimension_numbers<[1], [0], [0], [1], [0, 0, 1, 1], [], []>} : vector<8x128xbf16>, vector<128x512xbf16>, vector<8x512xf32> -> vector<8x512xf32>
    %180 = arith.addf %177, %179 : vector<8x512xf32>
    %181 = vector.extract_strided_slice %180 {offsets = [0, 0], sizes = [8, 128], strides = [1, 1]} : vector<8x512xf32> to vector<8x128xf32>
    %182 = arith.negf %181 : vector<8x128xf32>
    %183 = math.exp %182 : vector<8x128xf32>
    %cst_84 = arith.constant 1.000000e+00 : f32
    %184 = vector.broadcast %cst_84 : f32 to vector<8x128xf32>
    %185 = arith.addf %184, %183 : vector<8x128xf32>
    %186 = arith.divf %184, %185 : vector<8x128xf32>
    %187 = vector.extract_strided_slice %180 {offsets = [0, 128], sizes = [8, 128], strides = [1, 1]} : vector<8x512xf32> to vector<8x128xf32>
    %188 = arith.negf %187 : vector<8x128xf32>
    %189 = math.exp %188 : vector<8x128xf32>
    %cst_85 = arith.constant 1.000000e+00 : f32
    %190 = vector.broadcast %cst_85 : f32 to vector<8x128xf32>
    %191 = arith.addf %190, %189 : vector<8x128xf32>
    %192 = arith.divf %190, %191 : vector<8x128xf32>
    %193 = vector.extract_strided_slice %180 {offsets = [0, 256], sizes = [8, 128], strides = [1, 1]} : vector<8x512xf32> to vector<8x128xf32>
    %194 = math.tanh %193 : vector<8x128xf32>
    %195 = vector.extract_strided_slice %180 {offsets = [0, 384], sizes = [8, 128], strides = [1, 1]} : vector<8x512xf32> to vector<8x128xf32>
    %196 = arith.negf %195 : vector<8x128xf32>
    %197 = math.exp %196 : vector<8x128xf32>
    %cst_86 = arith.constant 1.000000e+00 : f32
    %198 = vector.broadcast %cst_86 : f32 to vector<8x128xf32>
    %199 = arith.addf %198, %197 : vector<8x128xf32>
    %200 = arith.divf %198, %199 : vector<8x128xf32>
    %201 = arith.mulf %192, %174 : vector<8x128xf32>
    %202 = arith.mulf %186, %194 : vector<8x128xf32>
    %203 = arith.addf %201, %202 : vector<8x128xf32>
    %204 = math.tanh %203 : vector<8x128xf32>
    %205 = arith.mulf %200, %204 : vector<8x128xf32>
    %c0_87 = arith.constant 0 : index
    %c0_88 = arith.constant 0 : index
    %206 = vector.load %arg10[%c0_87, %c0_88] : memref<8x128xf32, #tpu.memory_space<vmem>>, vector<8x128xf32>
    tpu.vector_store %arg10[%c0_87, %c0_88], %205 {strides = array<i32>} : memref<8x128xf32, #tpu.memory_space<vmem>>, vector<8x128xf32>,
    %c0_89 = arith.constant 0 : index
    %c0_90 = arith.constant 0 : index
    %207 = vector.load %arg11[%c0_89, %c0_90] : memref<8x128xf32, #tpu.memory_space<vmem>>, vector<8x128xf32>
    tpu.vector_store %arg11[%c0_89, %c0_90], %203 {strides = array<i32>} : memref<8x128xf32, #tpu.memory_space<vmem>>, vector<8x128xf32>,
    %208 = arith.truncf %205 : vector<8x128xf32> to vector<8x128xbf16>
    %209 = arith.index_cast %c4_i32 : i32 to index
    %c0_91 = arith.constant 0 : index
    %c0_92 = arith.constant 0 : index
    %210 = vector.load %arg6[%209, %c0_91, %c0_92] : memref<8x8x128xbf16, #tpu.memory_space<vmem>>, vector<1x8x128xbf16>
    %211 = vector.shape_cast %210 : vector<1x8x128xbf16> to vector<8x128xbf16>
    %212 = vector.shape_cast %208 : vector<8x128xbf16> to vector<1x8x128xbf16>
    tpu.vector_store %arg6[%209, %c0_91, %c0_92], %212 {strides = array<i32>} : memref<8x8x128xbf16, #tpu.memory_space<vmem>>, vector<1x8x128xbf16>,
    %c5_i32 = arith.constant 5 : i32
    %c0_93 = arith.constant 0 : index
    %c0_94 = arith.constant 0 : index
    %213 = vector.load %arg10[%c0_93, %c0_94] : memref<8x128xf32, #tpu.memory_space<vmem>>, vector<8x128xf32>
    %c0_95 = arith.constant 0 : index
    %c0_96 = arith.constant 0 : index
    %214 = vector.load %arg11[%c0_95, %c0_96] : memref<8x128xf32, #tpu.memory_space<vmem>>, vector<8x128xf32>
    %215 = arith.index_cast %c5_i32 : i32 to index
    %c0_97 = arith.constant 0 : index
    %c0_98 = arith.constant 0 : index
    %216 = vector.load %arg9[%215, %c0_97, %c0_98] : memref<8x8x512xf32, #tpu.memory_space<vmem>>, vector<1x8x512xf32>
    %217 = vector.shape_cast %216 : vector<1x8x512xf32> to vector<8x512xf32>
    %218 = arith.truncf %213 : vector<8x128xf32> to vector<8x128xbf16>
    %cst_99 = arith.constant dense<0.000000e+00> : vector<8x512xf32>
    %219 = tpu.matmul %218, %12, %cst_99 {dimension_numbers = #tpu.dot_dimension_numbers<[1], [0], [0], [1], [0, 0, 1, 1], [], []>} : vector<8x128xbf16>, vector<128x512xbf16>, vector<8x512xf32> -> vector<8x512xf32>
    %220 = arith.addf %217, %219 : vector<8x512xf32>
    %221 = vector.extract_strided_slice %220 {offsets = [0, 0], sizes = [8, 128], strides = [1, 1]} : vector<8x512xf32> to vector<8x128xf32>
    %222 = arith.negf %221 : vector<8x128xf32>
    %223 = math.exp %222 : vector<8x128xf32>
    %cst_100 = arith.constant 1.000000e+00 : f32
    %224 = vector.broadcast %cst_100 : f32 to vector<8x128xf32>
    %225 = arith.addf %224, %223 : vector<8x128xf32>
    %226 = arith.divf %224, %225 : vector<8x128xf32>
    %227 = vector.extract_strided_slice %220 {offsets = [0, 128], sizes = [8, 128], strides = [1, 1]} : vector<8x512xf32> to vector<8x128xf32>
    %228 = arith.negf %227 : vector<8x128xf32>
    %229 = math.exp %228 : vector<8x128xf32>
    %cst_101 = arith.constant 1.000000e+00 : f32
    %230 = vector.broadcast %cst_101 : f32 to vector<8x128xf32>
    %231 = arith.addf %230, %229 : vector<8x128xf32>
    %232 = arith.divf %230, %231 : vector<8x128xf32>
    %233 = vector.extract_strided_slice %220 {offsets = [0, 256], sizes = [8, 128], strides = [1, 1]} : vector<8x512xf32> to vector<8x128xf32>
    %234 = math.tanh %233 : vector<8x128xf32>
    %235 = vector.extract_strided_slice %220 {offsets = [0, 384], sizes = [8, 128], strides = [1, 1]} : vector<8x512xf32> to vector<8x128xf32>
    %236 = arith.negf %235 : vector<8x128xf32>
    %237 = math.exp %236 : vector<8x128xf32>
    %cst_102 = arith.constant 1.000000e+00 : f32
    %238 = vector.broadcast %cst_102 : f32 to vector<8x128xf32>
    %239 = arith.addf %238, %237 : vector<8x128xf32>
    %240 = arith.divf %238, %239 : vector<8x128xf32>
    %241 = arith.mulf %232, %214 : vector<8x128xf32>
    %242 = arith.mulf %226, %234 : vector<8x128xf32>
    %243 = arith.addf %241, %242 : vector<8x128xf32>
    %244 = math.tanh %243 : vector<8x128xf32>
    %245 = arith.mulf %240, %244 : vector<8x128xf32>
    %c0_103 = arith.constant 0 : index
    %c0_104 = arith.constant 0 : index
    %246 = vector.load %arg10[%c0_103, %c0_104] : memref<8x128xf32, #tpu.memory_space<vmem>>, vector<8x128xf32>
    tpu.vector_store %arg10[%c0_103, %c0_104], %245 {strides = array<i32>} : memref<8x128xf32, #tpu.memory_space<vmem>>, vector<8x128xf32>,
    %c0_105 = arith.constant 0 : index
    %c0_106 = arith.constant 0 : index
    %247 = vector.load %arg11[%c0_105, %c0_106] : memref<8x128xf32, #tpu.memory_space<vmem>>, vector<8x128xf32>
    tpu.vector_store %arg11[%c0_105, %c0_106], %243 {strides = array<i32>} : memref<8x128xf32, #tpu.memory_space<vmem>>, vector<8x128xf32>,
    %248 = arith.truncf %245 : vector<8x128xf32> to vector<8x128xbf16>
    %249 = arith.index_cast %c5_i32 : i32 to index
    %c0_107 = arith.constant 0 : index
    %c0_108 = arith.constant 0 : index
    %250 = vector.load %arg6[%249, %c0_107, %c0_108] : memref<8x8x128xbf16, #tpu.memory_space<vmem>>, vector<1x8x128xbf16>
    %251 = vector.shape_cast %250 : vector<1x8x128xbf16> to vector<8x128xbf16>
    %252 = vector.shape_cast %248 : vector<8x128xbf16> to vector<1x8x128xbf16>
    tpu.vector_store %arg6[%249, %c0_107, %c0_108], %252 {strides = array<i32>} : memref<8x8x128xbf16, #tpu.memory_space<vmem>>, vector<1x8x128xbf16>,
    %c6_i32 = arith.constant 6 : i32
    %c0_109 = arith.constant 0 : index
    %c0_110 = arith.constant 0 : index
    %253 = vector.load %arg10[%c0_109, %c0_110] : memref<8x128xf32, #tpu.memory_space<vmem>>, vector<8x128xf32>
    %c0_111 = arith.constant 0 : index
    %c0_112 = arith.constant 0 : index
    %254 = vector.load %arg11[%c0_111, %c0_112] : memref<8x128xf32, #tpu.memory_space<vmem>>, vector<8x128xf32>
    %255 = arith.index_cast %c6_i32 : i32 to index
    %c0_113 = arith.constant 0 : index
    %c0_114 = arith.constant 0 : index
    %256 = vector.load %arg9[%255, %c0_113, %c0_114] : memref<8x8x512xf32, #tpu.memory_space<vmem>>, vector<1x8x512xf32>
    %257 = vector.shape_cast %256 : vector<1x8x512xf32> to vector<8x512xf32>
    %258 = arith.truncf %253 : vector<8x128xf32> to vector<8x128xbf16>
    %cst_115 = arith.constant dense<0.000000e+00> : vector<8x512xf32>
    %259 = tpu.matmul %258, %12, %cst_115 {dimension_numbers = #tpu.dot_dimension_numbers<[1], [0], [0], [1], [0, 0, 1, 1], [], []>} : vector<8x128xbf16>, vector<128x512xbf16>, vector<8x512xf32> -> vector<8x512xf32>
    %260 = arith.addf %257, %259 : vector<8x512xf32>
    %261 = vector.extract_strided_slice %260 {offsets = [0, 0], sizes = [8, 128], strides = [1, 1]} : vector<8x512xf32> to vector<8x128xf32>
    %262 = arith.negf %261 : vector<8x128xf32>
    %263 = math.exp %262 : vector<8x128xf32>
    %cst_116 = arith.constant 1.000000e+00 : f32
    %264 = vector.broadcast %cst_116 : f32 to vector<8x128xf32>
    %265 = arith.addf %264, %263 : vector<8x128xf32>
    %266 = arith.divf %264, %265 : vector<8x128xf32>
    %267 = vector.extract_strided_slice %260 {offsets = [0, 128], sizes = [8, 128], strides = [1, 1]} : vector<8x512xf32> to vector<8x128xf32>
    %268 = arith.negf %267 : vector<8x128xf32>
    %269 = math.exp %268 : vector<8x128xf32>
    %cst_117 = arith.constant 1.000000e+00 : f32
    %270 = vector.broadcast %cst_117 : f32 to vector<8x128xf32>
    %271 = arith.addf %270, %269 : vector<8x128xf32>
    %272 = arith.divf %270, %271 : vector<8x128xf32>
    %273 = vector.extract_strided_slice %260 {offsets = [0, 256], sizes = [8, 128], strides = [1, 1]} : vector<8x512xf32> to vector<8x128xf32>
    %274 = math.tanh %273 : vector<8x128xf32>
    %275 = vector.extract_strided_slice %260 {offsets = [0, 384], sizes = [8, 128], strides = [1, 1]} : vector<8x512xf32> to vector<8x128xf32>
    %276 = arith.negf %275 : vector<8x128xf32>
    %277 = math.exp %276 : vector<8x128xf32>
    %cst_118 = arith.constant 1.000000e+00 : f32
    %278 = vector.broadcast %cst_118 : f32 to vector<8x128xf32>
    %279 = arith.addf %278, %277 : vector<8x128xf32>
    %280 = arith.divf %278, %279 : vector<8x128xf32>
    %281 = arith.mulf %272, %254 : vector<8x128xf32>
    %282 = arith.mulf %266, %274 : vector<8x128xf32>
    %283 = arith.addf %281, %282 : vector<8x128xf32>
    %284 = math.tanh %283 : vector<8x128xf32>
    %285 = arith.mulf %280, %284 : vector<8x128xf32>
    %c0_119 = arith.constant 0 : index
    %c0_120 = arith.constant 0 : index
    %286 = vector.load %arg10[%c0_119, %c0_120] : memref<8x128xf32, #tpu.memory_space<vmem>>, vector<8x128xf32>
    tpu.vector_store %arg10[%c0_119, %c0_120], %285 {strides = array<i32>} : memref<8x128xf32, #tpu.memory_space<vmem>>, vector<8x128xf32>,
    %c0_121 = arith.constant 0 : index
    %c0_122 = arith.constant 0 : index
    %287 = vector.load %arg11[%c0_121, %c0_122] : memref<8x128xf32, #tpu.memory_space<vmem>>, vector<8x128xf32>
    tpu.vector_store %arg11[%c0_121, %c0_122], %283 {strides = array<i32>} : memref<8x128xf32, #tpu.memory_space<vmem>>, vector<8x128xf32>,
    %288 = arith.truncf %285 : vector<8x128xf32> to vector<8x128xbf16>
    %289 = arith.index_cast %c6_i32 : i32 to index
    %c0_123 = arith.constant 0 : index
    %c0_124 = arith.constant 0 : index
    %290 = vector.load %arg6[%289, %c0_123, %c0_124] : memref<8x8x128xbf16, #tpu.memory_space<vmem>>, vector<1x8x128xbf16>
    %291 = vector.shape_cast %290 : vector<1x8x128xbf16> to vector<8x128xbf16>
    %292 = vector.shape_cast %288 : vector<8x128xbf16> to vector<1x8x128xbf16>
    tpu.vector_store %arg6[%289, %c0_123, %c0_124], %292 {strides = array<i32>} : memref<8x8x128xbf16, #tpu.memory_space<vmem>>, vector<1x8x128xbf16>,
    %c7_i32 = arith.constant 7 : i32
    %c0_125 = arith.constant 0 : index
    %c0_126 = arith.constant 0 : index
    %293 = vector.load %arg10[%c0_125, %c0_126] : memref<8x128xf32, #tpu.memory_space<vmem>>, vector<8x128xf32>
    %c0_127 = arith.constant 0 : index
    %c0_128 = arith.constant 0 : index
    %294 = vector.load %arg11[%c0_127, %c0_128] : memref<8x128xf32, #tpu.memory_space<vmem>>, vector<8x128xf32>
    %295 = arith.index_cast %c7_i32 : i32 to index
    %c0_129 = arith.constant 0 : index
    %c0_130 = arith.constant 0 : index
    %296 = vector.load %arg9[%295, %c0_129, %c0_130] : memref<8x8x512xf32, #tpu.memory_space<vmem>>, vector<1x8x512xf32>
    %297 = vector.shape_cast %296 : vector<1x8x512xf32> to vector<8x512xf32>
    %298 = arith.truncf %293 : vector<8x128xf32> to vector<8x128xbf16>
    %cst_131 = arith.constant dense<0.000000e+00> : vector<8x512xf32>
    %299 = tpu.matmul %298, %12, %cst_131 {dimension_numbers = #tpu.dot_dimension_numbers<[1], [0], [0], [1], [0, 0, 1, 1], [], []>} : vector<8x128xbf16>, vector<128x512xbf16>, vector<8x512xf32> -> vector<8x512xf32>
    %300 = arith.addf %297, %299 : vector<8x512xf32>
    %301 = vector.extract_strided_slice %300 {offsets = [0, 0], sizes = [8, 128], strides = [1, 1]} : vector<8x512xf32> to vector<8x128xf32>
    %302 = arith.negf %301 : vector<8x128xf32>
    %303 = math.exp %302 : vector<8x128xf32>
    %cst_132 = arith.constant 1.000000e+00 : f32
    %304 = vector.broadcast %cst_132 : f32 to vector<8x128xf32>
    %305 = arith.addf %304, %303 : vector<8x128xf32>
    %306 = arith.divf %304, %305 : vector<8x128xf32>
    %307 = vector.extract_strided_slice %300 {offsets = [0, 128], sizes = [8, 128], strides = [1, 1]} : vector<8x512xf32> to vector<8x128xf32>
    %308 = arith.negf %307 : vector<8x128xf32>
    %309 = math.exp %308 : vector<8x128xf32>
    %cst_133 = arith.constant 1.000000e+00 : f32
    %310 = vector.broadcast %cst_133 : f32 to vector<8x128xf32>
    %311 = arith.addf %310, %309 : vector<8x128xf32>
    %312 = arith.divf %310, %311 : vector<8x128xf32>
    %313 = vector.extract_strided_slice %300 {offsets = [0, 256], sizes = [8, 128], strides = [1, 1]} : vector<8x512xf32> to vector<8x128xf32>
    %314 = math.tanh %313 : vector<8x128xf32>
    %315 = vector.extract_strided_slice %300 {offsets = [0, 384], sizes = [8, 128], strides = [1, 1]} : vector<8x512xf32> to vector<8x128xf32>
    %316 = arith.negf %315 : vector<8x128xf32>
    %317 = math.exp %316 : vector<8x128xf32>
    %cst_134 = arith.constant 1.000000e+00 : f32
    %318 = vector.broadcast %cst_134 : f32 to vector<8x128xf32>
    %319 = arith.addf %318, %317 : vector<8x128xf32>
    %320 = arith.divf %318, %319 : vector<8x128xf32>
    %321 = arith.mulf %312, %294 : vector<8x128xf32>
    %322 = arith.mulf %306, %314 : vector<8x128xf32>
    %323 = arith.addf %321, %322 : vector<8x128xf32>
    %324 = math.tanh %323 : vector<8x128xf32>
    %325 = arith.mulf %320, %324 : vector<8x128xf32>
    %c0_135 = arith.constant 0 : index
    %c0_136 = arith.constant 0 : index
    %326 = vector.load %arg10[%c0_135, %c0_136] : memref<8x128xf32, #tpu.memory_space<vmem>>, vector<8x128xf32>
    tpu.vector_store %arg10[%c0_135, %c0_136], %325 {strides = array<i32>} : memref<8x128xf32, #tpu.memory_space<vmem>>, vector<8x128xf32>,
    %c0_137 = arith.constant 0 : index
    %c0_138 = arith.constant 0 : index
    %327 = vector.load %arg11[%c0_137, %c0_138] : memref<8x128xf32, #tpu.memory_space<vmem>>, vector<8x128xf32>
    tpu.vector_store %arg11[%c0_137, %c0_138], %323 {strides = array<i32>} : memref<8x128xf32, #tpu.memory_space<vmem>>, vector<8x128xf32>,
    %328 = arith.truncf %325 : vector<8x128xf32> to vector<8x128xbf16>
    %329 = arith.index_cast %c7_i32 : i32 to index
    %c0_139 = arith.constant 0 : index
    %c0_140 = arith.constant 0 : index
    %330 = vector.load %arg6[%329, %c0_139, %c0_140] : memref<8x8x128xbf16, #tpu.memory_space<vmem>>, vector<1x8x128xbf16>
    %331 = vector.shape_cast %330 : vector<1x8x128xbf16> to vector<8x128xbf16>
    %332 = vector.shape_cast %328 : vector<8x128xbf16> to vector<1x8x128xbf16>
    tpu.vector_store %arg6[%329, %c0_139, %c0_140], %332 {strides = array<i32>} : memref<8x8x128xbf16, #tpu.memory_space<vmem>>, vector<1x8x128xbf16>,
    %c8_i32 = arith.constant 8 : i32
    %c0_i32_141 = arith.constant 0 : i32
    %333 = arith.cmpi eq, %arg1, %c0_i32_141 : i32
    %334 = arith.extui %333 : i1 to i32
    %c0_i32_142 = arith.constant 0 : i32
    %335 = arith.cmpi ne, %334, %c0_i32_142 : i32
    scf.if %335 {
      %c0_143 = arith.constant 0 : index
      %c0_144 = arith.constant 0 : index
      %336 = vector.load %arg10[%c0_143, %c0_144] : memref<8x128xf32, #tpu.memory_space<vmem>>, vector<8x128xf32>
      %c0_145 = arith.constant 0 : index
      %c0_146 = arith.constant 0 : index
      %337 = vector.load %arg7[%c0_145, %c0_146] : memref<8x128xf32, #tpu.memory_space<vmem>>, vector<8x128xf32>
      tpu.vector_store %arg7[%c0_145, %c0_146], %336 {strides = array<i32>} : memref<8x128xf32, #tpu.memory_space<vmem>>, vector<8x128xf32>,
      %c0_147 = arith.constant 0 : index
      %c0_148 = arith.constant 0 : index
      %338 = vector.load %arg11[%c0_147, %c0_148] : memref<8x128xf32, #tpu.memory_space<vmem>>, vector<8x128xf32>
      %c0_149 = arith.constant 0 : index
      %c0_150 = arith.constant 0 : index
      %339 = vector.load %arg8[%c0_149, %c0_150] : memref<8x128xf32, #tpu.memory_space<vmem>>, vector<8x128xf32>
      tpu.vector_store %arg8[%c0_149, %c0_150], %338 {strides = array<i32>} : memref<8x128xf32, #tpu.memory_space<vmem>>, vector<8x128xf32>,
    } else {
    }
    return
  }
  func.func @transform_0(%arg0: i32, %arg1: i32) -> (i32, i32, i32) {
    %c0_i32 = arith.constant 0 : i32
    %c0_i32_0 = arith.constant 0 : i32
    return %arg1, %arg0, %c0_i32 : i32, i32, i32
  }
  func.func @transform_1(%arg0: i32, %arg1: i32) -> (i32, i32) {
    %c0_i32 = arith.constant 0 : i32
    %c0_i32_0 = arith.constant 0 : i32
    %c0_i32_1 = arith.constant 0 : i32
    return %c0_i32, %c0_i32_0 : i32, i32
  }
  func.func @transform_2(%arg0: i32, %arg1: i32) -> (i32, i32) {
    %c0_i32 = arith.constant 0 : i32
    %c0_i32_0 = arith.constant 0 : i32
    %c0_i32_1 = arith.constant 0 : i32
    return %c0_i32, %c0_i32_0 : i32, i32
  }
  func.func @transform_3(%arg0: i32, %arg1: i32) -> (i32, i32) {
    %c0_i32 = arith.constant 0 : i32
    %c0_i32_0 = arith.constant 0 : i32
    %c0_i32_1 = arith.constant 0 : i32
    return %c0_i32, %c0_i32_0 : i32, i32
  }
  func.func @transform_4(%arg0: i32, %arg1: i32) -> (i32, i32, i32) {
    %c0_i32 = arith.constant 0 : i32
    %c0_i32_0 = arith.constant 0 : i32
    return %arg1, %arg0, %c0_i32 : i32, i32, i32
  }
  func.func @transform_5(%arg0: i32, %arg1: i32) -> (i32, i32) {
    %c0_i32 = arith.constant 0 : i32
    %c0_i32_0 = arith.constant 0 : i32
    return %arg0, %c0_i32 : i32, i32
  }
  func.func @transform_6(%arg0: i32, %arg1: i32) -> (i32, i32) {
    %c0_i32 = arith.constant 0 : i32
    %c0_i32_0 = arith.constant 0 : i32
    return %arg0, %c0_i32 : i32, i32
  }
}

</mosaic_0001>

<bundles_post_ra>
// kernel: encoder_lstm_forward.3
= control target key start
LH: loop header
LB: loop body
LE: loop exit
PB: predicated region body
PF: predicated region fallthrough
CT: control target
= control target key end

     0   :  { %s3115_s0 = inlined_call_operand.vmem [shape: bf16[8,8,128], index: 0, kind: input, shape index: {}]   ;;  %s3116_s1 = inlined_call_operand.vmem [shape: bf16[128,512], index: 1, kind: input, shape index: {}]   ;;  %s3117_s2 = inlined_call_operand.vmem [shape: bf16[128,512], index: 2, kind: input, shape index: {}]   ;;  %s3118_s3 = inlined_call_operand.vmem [shape: f32[1,512], index: 3, kind: input, shape index: {}]   ;;  %s3119_s4 = inlined_call_operand.hbm [shape: bf16[8,8,128], index: 4, kind: output, shape index: {0}]   ;;  %s3120_s5 = inlined_call_operand.vmem [shape: f32[8,128], index: 5, kind: output, shape index: {1}]   ;;  %s3121_s6 = inlined_call_operand.vmem [shape: f32[8,128], index: 6, kind: output, shape index: {2}]  }
   0x1   :  { %v1818_v0 = vld [vmem:[%s3116_s1 + $0xe0] sm:$0xf]  ;;  %v2018_v1 = vld [vmem:[%s3116_s1 + $0xec] sm:$0xf0]  ;;  %v2016_v2 = vld [vmem:[%s3116_s1 + $0xe4] sm:$0xf] }
   0x2   :  { %v1819_v3 = vor.u32 %v2018_v1, %v1818_v0  ;;  %v1820_v4 = vld [vmem:[%s3116_s1 + $0xf0] sm:$0xf0]  ;;  %v1826_v5 = vld [vmem:[%s3116_s1 + $0xe8] sm:$0xf]  ;;  %v2019_v6 = vld [vmem:[%s3116_s1 + $0xf4] sm:$0xf0] }
   0x3   :  { %v1823_v7 = vor.u32 %v2016_v2, %v1820_v4  ;;  %v1827_v8 = vor.u32 %v2019_v6, %v1826_v5  ;;  %v2017_v9 = vld [vmem:[%s3116_s1 + $0xec] sm:$0xf]  ;;  %v1828_v10 = vld [vmem:[%s3116_s1 + $0xf8] sm:$0xf0]  ;;  %v1802_v11 = vld [vmem:[%s3116_s1 + $0xc0] sm:$0xf] }
   0x4   :  { %261 = vmatpush.bf16.msra.mxu0 %v1819_v3  ;;  %v1831_v12 = vor.u32 %v2017_v9, %v1828_v10  ;;  %v2014_v13 = vld [vmem:[%s3116_s1 + $0xcc] sm:$0xf0]  ;;  %v2012_v14 = vld [vmem:[%s3116_s1 + $0xc4] sm:$0xf]  ;;  %v1804_v15 = vld [vmem:[%s3116_s1 + $0xd0] sm:$0xf0] }
   0x5   :  { %290 = vmatpush.bf16.msra.mxu1 %v1823_v7  ;;  %319 = vmatpush.bf16.msra.mxu2 %v1827_v8  ;;  %v1803_v16 = vor.u32 %v2014_v13, %v1802_v11  ;;  %v1807_v17 = vor.u32 %v2012_v14, %v1804_v15  ;;  %v1810_v18 = vld [vmem:[%s3116_s1 + $0xc8] sm:$0xf]  ;;  %v2015_v19 = vld [vmem:[%s3116_s1 + $0xd4] sm:$0xf0]  ;;  %v2013_v20 = vld [vmem:[%s3116_s1 + $0xcc] sm:$0xf] }
   0x6   :  { %348 = vmatpush.bf16.msra.mxu3 %v1831_v12  ;;  %v1811_v21 = vor.u32 %v2015_v19, %v1810_v18  ;;  %v1812_v22 = vld [vmem:[%s3116_s1 + $0xd8] sm:$0xf0]  ;;  %v1786_v23 = vld [vmem:[%s3116_s1 + $0xa0] sm:$0xf]  ;;  %v2010_v24 = vld [vmem:[%s3116_s1 + $0xac] sm:$0xf0] }
   0x7   :  { %v1815_v25 = vor.u32 %v2013_v20, %v1812_v22  ;;  %v2008_v26 = vld [vmem:[%s3116_s1 + $0xa4] sm:$0xf]  ;;  %v1788_v27 = vld [vmem:[%s3116_s1 + $0xb0] sm:$0xf0]  ;;  %v1794_v28 = vld [vmem:[%s3116_s1 + $0xa8] sm:$0xf]  ;;  %v1787_v29 = vor.u32 %v2010_v24, %v1786_v23 }
   0x8   :  { %262 = vmatpush.bf16.msra.mxu0 %v1803_v16  ;;  %v2011_v30 = vld [vmem:[%s3116_s1 + $0xb4] sm:$0xf0]  ;;  %v2009_v31 = vld [vmem:[%s3116_s1 + $0xac] sm:$0xf]  ;;  %v1796_v32 = vld [vmem:[%s3116_s1 + $0xb8] sm:$0xf0]  ;;  %v1791_v33 = vor.u32 %v2008_v26, %v1788_v27 }
   0x9   :  { %291 = vmatpush.bf16.msra.mxu1 %v1807_v17  ;;  %320 = vmatpush.bf16.msra.mxu2 %v1811_v21  ;;  %v1795_v34 = vor.u32 %v2011_v30, %v1794_v28  ;;  %v1770_v35 = vld [vmem:[%s3116_s1 + $0x80] sm:$0xf]  ;;  %v2006_v36 = vld [vmem:[%s3116_s1 + $0x8c] sm:$0xf0]  ;;  %v2004_v37 = vld [vmem:[%s3116_s1 + $0x84] sm:$0xf]  ;;  %v1799_v38 = vor.u32 %v2009_v31, %v1796_v32 }
   0xa   :  { %349 = vmatpush.bf16.msra.mxu3 %v1815_v25  ;;  %v1772_v39 = vld [vmem:[%s3116_s1 + $0x90] sm:$0xf0]  ;;  %v1778_v40 = vld [vmem:[%s3116_s1 + $0x88] sm:$0xf]  ;;  %v2007_v41 = vld [vmem:[%s3116_s1 + $0x94] sm:$0xf0]  ;;  %v1771_v44 = vor.u32 %v2006_v36, %v1770_v35 }
   0xb   :  { %v2005_v42 = vld [vmem:[%s3116_s1 + $0x8c] sm:$0xf]  ;;  %v1780_v43 = vld [vmem:[%s3116_s1 + $0x98] sm:$0xf0]  ;;  %v1775_v45 = vor.u32 %v2004_v37, %v1772_v39  ;;  %v1779_v46 = vor.u32 %v2007_v41, %v1778_v40  ;;  %v1754_v47 = vld [vmem:[%s3116_s1 + $0x60] sm:$0xf] }
   0xc   :  { %263 = vmatpush.bf16.msra.mxu0 %v1787_v29  ;;  %v2002_v48 = vld [vmem:[%s3116_s1 + $0x6c] sm:$0xf0]  ;;  %v2000_v49 = vld [vmem:[%s3116_s1 + $0x64] sm:$0xf]  ;;  %v1783_v50 = vor.u32 %v2005_v42, %v1780_v43  ;;  %v1756_v51 = vld [vmem:[%s3116_s1 + $0x70] sm:$0xf0] }
   0xd   :  { %292 = vmatpush.bf16.msra.mxu1 %v1791_v33  ;;  %321 = vmatpush.bf16.msra.mxu2 %v1795_v34  ;;  %v1762_v52 = vld [vmem:[%s3116_s1 + $0x68] sm:$0xf]  ;;  %v2003_v53 = vld [vmem:[%s3116_s1 + $0x74] sm:$0xf0]  ;;  %v2001_v54 = vld [vmem:[%s3116_s1 + $0x6c] sm:$0xf]  ;;  %v1755_v56 = vor.u32 %v2002_v48, %v1754_v47  ;;  %v1759_v57 = vor.u32 %v2000_v49, %v1756_v51 }
   0xe   :  { %350 = vmatpush.bf16.msra.mxu3 %v1799_v38  ;;  %v1764_v55 = vld [vmem:[%s3116_s1 + $0x78] sm:$0xf0]  ;;  %v1763_v58 = vor.u32 %v2003_v53, %v1762_v52  ;;  %v1738_v59 = vld [vmem:[%s3116_s1 + $0x40] sm:$0xf]  ;;  %v1998_v60 = vld [vmem:[%s3116_s1 + $0x4c] sm:$0xf0] }
   0xf   :  { %v1996_v61 = vld [vmem:[%s3116_s1 + $0x44] sm:$0xf]  ;;  %v1767_v62 = vor.u32 %v2001_v54, %v1764_v55  ;;  %v1740_v63 = vld [vmem:[%s3116_s1 + $0x50] sm:$0xf0]  ;;  %v1746_v0 = vld [vmem:[%s3116_s1 + $0x48] sm:$0xf]  ;;  %v1739_v4 = vor.u32 %v1998_v60, %v1738_v59 }
  0x10   :  { %264 = vmatpush.bf16.msra.mxu0 %v1771_v44  ;;  %v1999_v1 = vld [vmem:[%s3116_s1 + $0x54] sm:$0xf0]  ;;  %v1997_v2 = vld [vmem:[%s3116_s1 + $0x4c] sm:$0xf]  ;;  %v1748_v3 = vld [vmem:[%s3116_s1 + $0x58] sm:$0xf0]  ;;  %v1743_v5 = vor.u32 %v1996_v61, %v1740_v63 }
  0x11   :  { %293 = vmatpush.bf16.msra.mxu1 %v1775_v45  ;;  %322 = vmatpush.bf16.msra.mxu2 %v1779_v46  ;;  %v1747_v6 = vor.u32 %v1999_v1, %v1746_v0  ;;  %v1722_v7 = vld [vmem:[%s3116_s1 + $0x20] sm:$0xf]  ;;  %v1994_v8 = vld [vmem:[%s3116_s1 + $0x2c] sm:$0xf0]  ;;  %v1992_v9 = vld [vmem:[%s3116_s1 + $0x24] sm:$0xf]  ;;  %v1751_v10 = vor.u32 %v1997_v2, %v1748_v3 }
  0x12   :  { %351 = vmatpush.bf16.msra.mxu3 %v1783_v50  ;;  %v1724_v11 = vld [vmem:[%s3116_s1 + $0x30] sm:$0xf0]  ;;  %v1730_v12 = vld [vmem:[%s3116_s1 + $0x28] sm:$0xf]  ;;  %v1995_v13 = vld [vmem:[%s3116_s1 + $0x34] sm:$0xf0]  ;;  %v1723_v16 = vor.u32 %v1994_v8, %v1722_v7 }
  0x13   :  { %v1993_v14 = vld [vmem:[%s3116_s1 + $0x2c] sm:$0xf]  ;;  %v1732_v15 = vld [vmem:[%s3116_s1 + $0x38] sm:$0xf0]  ;;  %v1706_v17 = vld [vmem:[%s3116_s1] sm:$0xf]  ;;  %v1727_v18 = vor.u32 %v1992_v9, %v1724_v11  ;;  %v1731_v19 = vor.u32 %v1995_v13, %v1730_v12 }
  0x14   :  { %265 = vmatpush.bf16.msra.mxu0 %v1755_v56  ;;  %v1990_v20 = vld [vmem:[%s3116_s1 + $0xc] sm:$0xf0]  ;;  %v1988_v21 = vld [vmem:[%s3116_s1 + $0x4] sm:$0xf]  ;;  %v1708_v22 = vld [vmem:[%s3116_s1 + $0x10] sm:$0xf0]  ;;  %v1735_v23 = vor.u32 %v1993_v14, %v1732_v15 }
  0x15   :  { %294 = vmatpush.bf16.msra.mxu1 %v1759_v57  ;;  %323 = vmatpush.bf16.msra.mxu2 %v1763_v58  ;;  %v1714_v24 = vld [vmem:[%s3116_s1 + $0x8] sm:$0xf]  ;;  %v1991_v25 = vld [vmem:[%s3116_s1 + $0x14] sm:$0xf0]  ;;  %v1989_v26 = vld [vmem:[%s3116_s1 + $0xc] sm:$0xf]  ;;  %v1707_v30 = vor.u32 %v1990_v20, %v1706_v17  ;;  %v1711_v33 = vor.u32 %v1988_v21, %v1708_v22 }
  0x16   :  { %352 = vmatpush.bf16.msra.mxu3 %v1767_v62  ;;  %v1716_v27 = vld [vmem:[%s3116_s1 + $0x18] sm:$0xf0]  ;;  %v1946_v28 = vld [vmem:[%s3117_s2 + $0xe0] sm:$0xf]  ;;  %v2050_v29 = vld [vmem:[%s3117_s2 + $0xec] sm:$0xf0]  ;;  %v1715_v34 = vor.u32 %v1991_v25, %v1714_v24 }
  0x17   :  { %v2048_v31 = vld [vmem:[%s3117_s2 + $0xe4] sm:$0xf]  ;;  %v1948_v32 = vld [vmem:[%s3117_s2 + $0xf0] sm:$0xf0]  ;;  %v1719_v36 = vor.u32 %v1989_v26, %v1716_v27  ;;  %v2456_v37 = vor.u32 %v2050_v29, %v1946_v28  ;;  %v2049_v38 = vld [vmem:[%s3117_s2 + $0xec] sm:$0xf] }
  0x18   :  { %266 = vmatpush.bf16.msra.mxu0 %v1739_v4  ;;  %v1984_v35 = vld [vmem:[%s3115_s0] sm:$0xff]  ;;  %v1954_v39 = vld [vmem:[%s3117_s2 + $0xe8] sm:$0xf]  ;;  %v2051_v40 = vld [vmem:[%s3117_s2 + $0xf4] sm:$0xf0]  ;;  %v2467_v41 = vor.u32 %v2048_v31, %v1948_v32 }
  0x19   :  { %295 = vmatpush.bf16.msra.mxu1 %v1743_v5  ;;  %324 = vmatpush.bf16.msra.mxu2 %v1747_v6  ;;  %v1956_v42 = vld [vmem:[%s3117_s2 + $0xf8] sm:$0xf0]  ;;  %v1930_v43 = vld [vmem:[%s3117_s2 + $0xc0] sm:$0xf]  ;;  %v2046_v44 = vld [vmem:[%s3117_s2 + $0xcc] sm:$0xf0]  ;;  %v2484_v47 = vor.u32 %v2051_v40, %v1954_v39 }
  0x1a   :  { %353 = vmatpush.bf16.msra.mxu3 %v1751_v10  ;;  %v2044_v45 = vld [vmem:[%s3117_s2 + $0xc4] sm:$0xf]  ;;  %v1932_v46 = vld [vmem:[%s3117_s2 + $0xd0] sm:$0xf0] }
  0x1c   :  { %267 = vmatpush.bf16.msra.mxu0 %v1723_v16 }
  0x1d   :  { %296 = vmatpush.bf16.msra.mxu1 %v1727_v18  ;;  %325 = vmatpush.bf16.msra.mxu2 %v1731_v19 }
  0x1e   :  { %354 = vmatpush.bf16.msra.mxu3 %v1735_v23 }
  0x20   :  { %268 = vmatpush.bf16.msra.mxu0 %v1707_v30 }
  0x21   :  { %297 = vmatpush.bf16.msra.mxu1 %v1711_v33  ;;  %326 = vmatpush.bf16.msra.mxu2 %v1715_v34 }
  0x22   :  { %12 = vsyncpa [#allocation6], 0  ;;  %355 = vmatpush.bf16.msra.mxu3 %v1719_v36  ;;  %v2487_v48 = vor.u32 %v2049_v38, %v1956_v42  ;;  %v2489_v49 = vor.u32 %v2046_v44, %v1930_v43  ;;  %v2045_v50 = vld [vmem:[%s3117_s2 + $0xcc] sm:$0xf]  ;;  %v1938_v51 = vld [vmem:[%s3117_s2 + $0xc8] sm:$0xf]  ;;  %v2501_v53 = vor.u32 %v2044_v45, %v1932_v46 }
  0x23   :  { %v2047_v52 = vld [vmem:[%s3117_s2 + $0xd4] sm:$0xf0]  ;;  %269 = vmatmul.bf16.vlgmr.msra.gmra.mxu0 %v1984_v35  ;;  %v1940_v54 = vld [vmem:[%s3117_s2 + $0xd8] sm:$0xf0]  ;;  %v1914_v55 = vld [vmem:[%s3117_s2 + $0xa0] sm:$0xf] }
  0x24   :  { %608 = vmatpush.bf16.msrb.mxu0 %v2456_v37  ;;  %v2042_v56 = vld [vmem:[%s3117_s2 + $0xac] sm:$0xf0]  ;;  %298 = vmatmul.bf16.vlgmr.msra.gmra.mxu1 %v1984_v35  ;;  %v2040_v57 = vld [vmem:[%s3117_s2 + $0xa4] sm:$0xf]  ;;  %v1916_v58 = vld [vmem:[%s3117_s2 + $0xb0] sm:$0xf0]  ;;  %v2519_v59 = vor.u32 %v2047_v52, %v1938_v51  ;;  %v2523_v60 = vor.u32 %v2045_v50, %v1940_v54 }
  0x25   :  { %621 = vmatpush.bf16.msrb.mxu1 %v2467_v41  ;;  %327 = vmatmul.bf16.vlgmr.msra.gmra.mxu2 %v1984_v35  ;;  %v2525_v61 = vor.u32 %v2042_v56, %v1914_v55  ;;  %v2041_v62 = vld [vmem:[%s3117_s2 + $0xac] sm:$0xf]  ;;  %v1922_v63 = vld [vmem:[%s3117_s2 + $0xa8] sm:$0xf]  ;;  %v2043_v0 = vld [vmem:[%s3117_s2 + $0xb4] sm:$0xf0]  ;;  %v2537_v1 = vor.u32 %v2040_v57, %v1916_v58 }
  0x26   :  { %356 = vmatmul.bf16.vlgmr.msra.gmra.mxu3 %v1984_v35  ;;  %634 = vmatpush.bf16.msrb.mxu2 %v2484_v47  ;;  %v1924_v2 = vld [vmem:[%s3117_s2 + $0xb8] sm:$0xf0]  ;;  %v1898_v3 = vld [vmem:[%s3117_s2 + $0x80] sm:$0xf]  ;;  %v2038_v4 = vld [vmem:[%s3117_s2 + $0x8c] sm:$0xf0]  ;;  %v2555_v7 = vor.u32 %v2043_v0, %v1922_v63 }
  0x27   :  { %647 = vmatpush.bf16.msrb.mxu3 %v2487_v48  ;;  %v2036_v5 = vld [vmem:[%s3117_s2 + $0x84] sm:$0xf]  ;;  %v1900_v6 = vld [vmem:[%s3117_s2 + $0x90] sm:$0xf0]  ;;  %v2559_v8 = vor.u32 %v2041_v62, %v1924_v2  ;;  %v2561_v9 = vor.u32 %v2038_v4, %v1898_v3  ;;  %v2037_v10 = vld [vmem:[%s3117_s2 + $0x8c] sm:$0xf] }
  0x28   :  { %609 = vmatpush.bf16.msrb.mxu0 %v2489_v49  ;;  %v1906_v11 = vld [vmem:[%s3117_s2 + $0x88] sm:$0xf]  ;;  %v2039_v12 = vld [vmem:[%s3117_s2 + $0x94] sm:$0xf0]  ;;  %v2573_v13 = vor.u32 %v2036_v5, %v1900_v6  ;;  %v1908_v14 = vld [vmem:[%s3117_s2 + $0x98] sm:$0xf0] }
  0x29   :  { %622 = vmatpush.bf16.msrb.mxu1 %v2501_v53  ;;  %v1882_v15 = vld [vmem:[%s3117_s2 + $0x60] sm:$0xf]  ;;  %v2034_v16 = vld [vmem:[%s3117_s2 + $0x6c] sm:$0xf0]  ;;  %v2032_v17 = vld [vmem:[%s3117_s2 + $0x64] sm:$0xf]  ;;  %v2594_v20 = vor.u32 %v2039_v12, %v1906_v11  ;;  %v2598_v21 = vor.u32 %v2037_v10, %v1908_v14 }
  0x2a   :  { %635 = vmatpush.bf16.msrb.mxu2 %v2519_v59  ;;  %v1884_v18 = vld [vmem:[%s3117_s2 + $0x70] sm:$0xf0]  ;;  %v1985_v19 = vld [vmem:[%s3115_s0 + $0x8] sm:$0xff]  ;;  %v2600_v22 = vor.u32 %v2034_v16, %v1882_v15  ;;  %v2035_v25 = vld [vmem:[%s3117_s2 + $0x74] sm:$0xf0]  ;;  %s2211_s16 = smov [#allocation5]  }
  0x2b   :  { %648 = vmatpush.bf16.msrb.mxu3 %v2523_v60  ;;  %v2033_v23 = vld [vmem:[%s3117_s2 + $0x6c] sm:$0xf]  ;;  %v1890_v24 = vld [vmem:[%s3117_s2 + $0x68] sm:$0xf]  ;;  %v2612_v26 = vor.u32 %v2032_v17, %v1884_v18  ;;  %v1892_v27 = vld [vmem:[%s3117_s2 + $0x78] sm:$0xf0] }
  0x2c   :  { %610 = vmatpush.bf16.msrb.mxu0 %v2525_v61  ;;  %v1866_v28 = vld [vmem:[%s3117_s2 + $0x40] sm:$0xf]  ;;  %v2030_v29 = vld [vmem:[%s3117_s2 + $0x4c] sm:$0xf0]  ;;  %v2028_v30 = vld [vmem:[%s3117_s2 + $0x44] sm:$0xf]  ;;  %v2630_v32 = vor.u32 %v2035_v25, %v1890_v24  ;;  %v2634_v33 = vor.u32 %v2033_v23, %v1892_v27 }
  0x2d   :  { %623 = vmatpush.bf16.msrb.mxu1 %v2537_v1  ;;  %v1868_v31 = vld [vmem:[%s3117_s2 + $0x50] sm:$0xf0]  ;;  %v2636_v34 = vor.u32 %v2030_v29, %v1866_v28  ;;  %v2029_v36 = vld [vmem:[%s3117_s2 + $0x4c] sm:$0xf]  ;;  %v1876_v38 = vld [vmem:[%s3117_s2 + $0x58] sm:$0xf0] }
  0x2e   :  { %636 = vmatpush.bf16.msrb.mxu2 %v2555_v7  ;;  %v2639_v35 = vor.u32 %v2028_v30, %v1868_v31  ;;  %v1850_v39 = vld [vmem:[%s3117_s2 + $0x20] sm:$0xf]  ;;  %v2026_v40 = vld [vmem:[%s3117_s2 + $0x2c] sm:$0xf0]  ;;  %v2024_v42 = vld [vmem:[%s3117_s2 + $0x24] sm:$0xf]  ;;  %v2659_v43 = vor.u32 %v2029_v36, %v1876_v38 }
  0x2f   :  { %649 = vmatpush.bf16.msrb.mxu3 %v2559_v8  ;;  %v2661_v44 = vor.u32 %v2026_v40, %v1850_v39  ;;  %v1852_v45 = vld [vmem:[%s3117_s2 + $0x30] sm:$0xf0]  ;;  %v1874_v46 = vld [vmem:[%s3117_s2 + $0x48] sm:$0xf]  ;;  %v2031_v50 = vld [vmem:[%s3117_s2 + $0x54] sm:$0xf0] }
  0x30   :  { %611 = vmatpush.bf16.msrb.mxu0 %v2561_v9  ;;  %v2673_v51 = vor.u32 %v2024_v42, %v1852_v45  ;;  %v2675_v52 = vor.u32 %v2031_v50, %v1874_v46  ;;  %v2025_v54 = vld [vmem:[%s3117_s2 + $0x2c] sm:$0xf]  ;;  %v1860_v55 = vld [vmem:[%s3117_s2 + $0x38] sm:$0xf0]  ;;  %v1834_v56 = vld [vmem:[%s3117_s2] sm:$0xf] }
  0x31   :  { %624 = vmatpush.bf16.msrb.mxu1 %v2573_v13  ;;  %v2022_v57 = vld [vmem:[%s3117_s2 + $0xc] sm:$0xf0]  ;;  %v2020_v58 = vld [vmem:[%s3117_s2 + $0x4] sm:$0xf]  ;;  %v1836_v62 = vld [vmem:[%s3117_s2 + $0x10] sm:$0xf0]  ;;  %v2704_v2 = vor.u32 %v2025_v54, %v1860_v55 }
  0x32   :  { %637 = vmatpush.bf16.msrb.mxu2 %v2594_v20  ;;  %v1858_v63 = vld [vmem:[%s3117_s2 + $0x28] sm:$0xf]  ;;  %v2027_v0 = vld [vmem:[%s3117_s2 + $0x34] sm:$0xf0]  ;;  %v2706_v3 = vor.u32 %v2022_v57, %v1834_v56  ;;  %v2717_v10 = vor.u32 %v2020_v58, %v1836_v62  ;;  %v2021_v11 = vld [vmem:[%s3117_s2 + $0xc] sm:$0xf] }
  0x33   :  { %650 = vmatpush.bf16.msrb.mxu3 %v2598_v21  ;;  %274 = vmatmul.bf16.gmra.mxu0 %v1985_v19  ;;  %v2708_v4 = vor.u32 %v2027_v0, %v1858_v63  ;;  %v1842_v5 = vld [vmem:[%s3117_s2 + $0x8] sm:$0xf]  ;;  %v2023_v6 = vld [vmem:[%s3117_s2 + $0x14] sm:$0xf0]  ;;  %v1844_v12 = vld [vmem:[%s3117_s2 + $0x18] sm:$0xf0] }
  0x34   :  { %612 = vmatpush.bf16.msrb.mxu0 %v2600_v22  ;;  %303 = vmatmul.bf16.gmra.mxu1 %v1985_v19  ;;  %v2726_v14 = vor.u32 %v2023_v6, %v1842_v5  ;;  %v2730_v15 = vor.u32 %v2021_v11, %v1844_v12  ;;  %v1986_v16 = vld [vmem:[%s3115_s0 + $0x10] sm:$0xff]  ;;  %v1987_v17 = vld [vmem:[%s3115_s0 + $0x18] sm:$0xff]  ;;  %v2210_v18 = vmov 0.0|0.0   ;;  %v67_v24 = vld [vmem:[%s3118_s3] sm:$0xf]  ;;  %s1666_s17 = sshll.u32 %s2211_s16, 4  ;;  %s1667_s17 = int_to_ptr.vmem [resolvable:$true] %s1666_s17 }
  0x35   :  { %625 = vmatpush.bf16.msrb.mxu1 %v2612_v26  ;;  %332 = vmatmul.bf16.gmra.mxu2 %v1985_v19  ;;  %v69_v25 = vperm.slane %v67_v24, 0  ;;  %v70_v28 = vperm.slane %v67_v24, 1  ;;  %v2816_v39 = vperm.slane %v67_v24, 2  ;;  %v2818_v40 = vperm.slane %v67_v24, 3  ;;  %s1668_s20 = sshll.u32 %s3119_s4, 4  ;;  %s2212_s22 = smov 64   ;;  %s1669_s20 = int_to_ptr.hbm [resolvable:$true] %s1668_s20 }
  0x36   :  { %361 = vmatmul.bf16.gmra.mxu3 %v1985_v19  ;;  %638 = vmatpush.bf16.msrb.mxu2 %v2630_v32  ;;  %s2213_s23 = smov 4  }
  0x37   :  { %651 = vmatpush.bf16.msrb.mxu3 %v2634_v33 }
  0x38   :  { %613 = vmatpush.bf16.msrb.mxu0 %v2636_v34 }
  0x39   :  { %626 = vmatpush.bf16.msrb.mxu1 %v2639_v35 }
  0x3a   :  { %639 = vmatpush.bf16.msrb.mxu2 %v2675_v52 }
  0x3b   :  { %652 = vmatpush.bf16.msrb.mxu3 %v2659_v43 }
  0x3c   :  { %614 = vmatpush.bf16.msrb.mxu0 %v2661_v44 }
  0x3d   :  { %627 = vmatpush.bf16.msrb.mxu1 %v2673_v51 }
  0x3e   :  { %640 = vmatpush.bf16.msrb.mxu2 %v2708_v4 }
  0x3f   :  { %653 = vmatpush.bf16.msrb.mxu3 %v2704_v2 }
  0x40   :  { %615 = vmatpush.bf16.msrb.mxu0 %v2706_v3 }
  0x41   :  { %628 = vmatpush.bf16.msrb.mxu1 %v2717_v10 }
  0x42   :  { %641 = vmatpush.bf16.msrb.mxu2 %v2726_v14 }
  0x43   :  { %654 = vmatpush.bf16.msrb.mxu3 %v2730_v15  ;;  %279 = vmatmul.bf16.gmra.mxu0 %v1986_v16 }
  0x44   :  { %739 = vmatpush.bf16.msra.mxu0 %v2456_v37  ;;  %308 = vmatmul.bf16.gmra.mxu1 %v1986_v16 }
  0x45   :  { %752 = vmatpush.bf16.msra.mxu1 %v2467_v41  ;;  %337 = vmatmul.bf16.gmra.mxu2 %v1986_v16 }
  0x46   :  { %765 = vmatpush.bf16.msra.mxu2 %v2484_v47  ;;  %366 = vmatmul.bf16.gmra.mxu3 %v1986_v16 }
  0x47   :  { %778 = vmatpush.bf16.msra.mxu3 %v2487_v48 }
  0x48   :  { %740 = vmatpush.bf16.msra.mxu0 %v2489_v49 }
  0x49   :  { %753 = vmatpush.bf16.msra.mxu1 %v2501_v53 }
  0x4a   :  { %766 = vmatpush.bf16.msra.mxu2 %v2519_v59 }
  0x4b   :  { %779 = vmatpush.bf16.msra.mxu3 %v2523_v60 }
  0x4c   :  { %741 = vmatpush.bf16.msra.mxu0 %v2525_v61 }
  0x4d   :  { %754 = vmatpush.bf16.msra.mxu1 %v2537_v1 }
  0x4e   :  { %767 = vmatpush.bf16.msra.mxu2 %v2555_v7 }
  0x4f   :  { %780 = vmatpush.bf16.msra.mxu3 %v2559_v8 }
  0x50   :  { %742 = vmatpush.bf16.msra.mxu0 %v2561_v9 }
  0x51   :  { %755 = vmatpush.bf16.msra.mxu1 %v2573_v13 }
  0x52   :  { %768 = vmatpush.bf16.msra.mxu2 %v2594_v20 }
  0x53   :  { %781 = vmatpush.bf16.msra.mxu3 %v2598_v21  ;;  %284 = vmatmul.bf16.gmra.mxu0 %v1987_v17 }
  0x54   :  { %743 = vmatpush.bf16.msra.mxu0 %v2600_v22  ;;  %313 = vmatmul.bf16.gmra.mxu1 %v1987_v17 }
  0x55   :  { %756 = vmatpush.bf16.msra.mxu1 %v2612_v26  ;;  %342 = vmatmul.bf16.gmra.mxu2 %v1987_v17 }
  0x56   :  { %769 = vmatpush.bf16.msra.mxu2 %v2630_v32  ;;  %371 = vmatmul.bf16.gmra.mxu3 %v1987_v17 }
  0x57   :  { %782 = vmatpush.bf16.msra.mxu3 %v2634_v33 }
  0x58   :  { %744 = vmatpush.bf16.msra.mxu0 %v2636_v34 }
  0x59   :  { %757 = vmatpush.bf16.msra.mxu1 %v2639_v35 }
  0x5a   :  { %770 = vmatpush.bf16.msra.mxu2 %v2675_v52 }
  0x5b   :  { %783 = vmatpush.bf16.msra.mxu3 %v2659_v43 }
  0x5c   :  { %745 = vmatpush.bf16.msra.mxu0 %v2661_v44 }
  0x5d   :  { %758 = vmatpush.bf16.msra.mxu1 %v2673_v51 }
  0x5e   :  { %771 = vmatpush.bf16.msra.mxu2 %v2708_v4 }
  0x5f   :  { %784 = vmatpush.bf16.msra.mxu3 %v2704_v2 }
  0x60   :  { %746 = vmatpush.bf16.msra.mxu0 %v2706_v3 }
  0x61   :  { %759 = vmatpush.bf16.msra.mxu1 %v2717_v10 }
  0x62   :  { %772 = vmatpush.bf16.msra.mxu2 %v2726_v14 }
  0x63   :  { %785 = vmatpush.bf16.msra.mxu3 %v2730_v15  ;;  %616 = vmatmul.bf16.vlgmr.msrb.gmra.mxu0 %v2210_v18 }
  0x64   :  { %629 = vmatmul.bf16.vlgmr.msrb.gmra.mxu1 %v2210_v18  ;;  %871 = vmatpush.bf16.msrb.mxu0 %v2456_v37 }
  0x65   :  { %642 = vmatmul.bf16.vlgmr.msrb.gmra.mxu2 %v2210_v18  ;;  %884 = vmatpush.bf16.msrb.mxu1 %v2467_v41 }
  0x66   :  { %655 = vmatmul.bf16.vlgmr.msrb.gmra.mxu3 %v2210_v18  ;;  %897 = vmatpush.bf16.msrb.mxu2 %v2484_v47 }
  0x67   :  { %910 = vmatpush.bf16.msrb.mxu3 %v2487_v48 }
  0x68   :  { %872 = vmatpush.bf16.msrb.mxu0 %v2489_v49 }
  0x69   :  { %885 = vmatpush.bf16.msrb.mxu1 %v2501_v53 }
  0x6a   :  { %898 = vmatpush.bf16.msrb.mxu2 %v2519_v59 }
  0x6b   :  { %911 = vmatpush.bf16.msrb.mxu3 %v2523_v60 }
  0x6c   :  { %873 = vmatpush.bf16.msrb.mxu0 %v2525_v61 }
  0x6d   :  { %886 = vmatpush.bf16.msrb.mxu1 %v2537_v1 }
  0x6e   :  { %899 = vmatpush.bf16.msrb.mxu2 %v2555_v7 }
  0x6f   :  { %912 = vmatpush.bf16.msrb.mxu3 %v2559_v8 }
  0x70   :  { %874 = vmatpush.bf16.msrb.mxu0 %v2561_v9 }
  0x71   :  { %887 = vmatpush.bf16.msrb.mxu1 %v2573_v13 }
  0x72   :  { %900 = vmatpush.bf16.msrb.mxu2 %v2594_v20 }
  0x73   :  { %913 = vmatpush.bf16.msrb.mxu3 %v2598_v21 }
  0x74   :  { %875 = vmatpush.bf16.msrb.mxu0 %v2600_v22 }
  0x75   :  { %888 = vmatpush.bf16.msrb.mxu1 %v2612_v26 }
  0x76   :  { %901 = vmatpush.bf16.msrb.mxu2 %v2630_v32 }
  0x77   :  { %914 = vmatpush.bf16.msrb.mxu3 %v2634_v33 }
  0x78   :  { %876 = vmatpush.bf16.msrb.mxu0 %v2636_v34 }
  0x79   :  { %889 = vmatpush.bf16.msrb.mxu1 %v2639_v35 }
  0x7a   :  { %902 = vmatpush.bf16.msrb.mxu2 %v2675_v52 }
  0x7b   :  { %915 = vmatpush.bf16.msrb.mxu3 %v2659_v43 }
  0x7c   :  { %877 = vmatpush.bf16.msrb.mxu0 %v2661_v44 }
  0x7d   :  { %890 = vmatpush.bf16.msrb.mxu1 %v2673_v51 }
  0x7e   :  { %903 = vmatpush.bf16.msrb.mxu2 %v2708_v4 }
  0x7f   :  { %916 = vmatpush.bf16.msrb.mxu3 %v2704_v2 }
  0x80   :  { %878 = vmatpush.bf16.msrb.mxu0 %v2706_v3 }
  0x81   :  { %891 = vmatpush.bf16.msrb.mxu1 %v2717_v10 }
  0x82   :  { %904 = vmatpush.bf16.msrb.mxu2 %v2726_v14 }
  0x83   :  { %917 = vmatpush.bf16.msrb.mxu3 %v2730_v15 }
  0xa0   :  { %v270_v19 = vpop.f32.mrf.mxu0 }
  0xa1   :  { %v299_v23 = vpop.f32.mrf.mxu1 }
  0xa8   :  { %v2808_v27 = vpop.f32.mrf.mxu2  ;;  %v272_v30 = vpop.f32.mrf.mxu0 }
  0xa9   :  { %v2810_v29 = vpop.f32.mrf.mxu3  ;;  %v2812_v31 = vadd.f32 %v272_v30, %v69_v25  ;;  %v301_v36 = vpop.f32.mrf.mxu1 }
  0xaa   :  { %v2814_v38 = vadd.f32 %v301_v36, %v70_v28 }
  0xb0   :  { %v330_v42 = vpop.f32.mrf.mxu2  ;;  %v275_v50 = vpop.f32.mrf.mxu0 }
  0xb1   :  { %v2821_v45 = vadd.f32 %v330_v42, %v2816_v39  ;;  %v359_v46 = vpop.f32.mrf.mxu3  ;;  %v2826_v55 = vadd.f32 %v275_v50, %v69_v25  ;;  %v304_v56 = vpop.f32.mrf.mxu1 }
  0xb2   :  { %v2824_v54 = vadd.f32 %v359_v46, %v2818_v40  ;;  %v2828_v57 = vadd.f32 %v304_v56, %v70_v28 }
  0xb8   :  { %v333_v58 = vpop.f32.mrf.mxu2  ;;  %v277_v0 = vpop.f32.mrf.mxu0 }
  0xb9   :  { %v2831_v62 = vadd.f32 %v333_v58, %v2816_v39  ;;  %v362_v63 = vpop.f32.mrf.mxu3  ;;  %v2836_v6 = vadd.f32 %v277_v0, %v69_v25  ;;  %v306_v11 = vpop.f32.mrf.mxu1 }
  0xba   :  { %v2834_v5 = vadd.f32 %v362_v63, %v2818_v40  ;;  %v2838_v12 = vadd.f32 %v306_v11, %v70_v28 }
  0xbb   :  { %3122 = vst [vmem:[#allocation8_spill] sm:$0xff] %v2831_v62 }
  0xbc   :  { %3123 = vst [vmem:[#allocation9_spill] sm:$0xff] %v2836_v6 }
  0xbd   :  { %3124 = vst [vmem:[#allocation10_spill] sm:$0xff] %v2838_v12 }
  0xc0   :  { %v335_v16 = vpop.f32.mrf.mxu2  ;;  %v280_v24 = vpop.f32.mrf.mxu0 }
  0xc1   :  { %v2841_v17 = vadd.f32 %v335_v16, %v2816_v39  ;;  %v364_v18 = vpop.f32.mrf.mxu3  ;;  %v2846_v36 = vadd.f32 %v280_v24, %v69_v25  ;;  %v309_v42 = vpop.f32.mrf.mxu1 }
  0xc2   :  { %v2844_v30 = vadd.f32 %v364_v18, %v2818_v40  ;;  %v2848_v46 = vadd.f32 %v309_v42, %v70_v28 }
  0xc3   :  { %3125 = vst [vmem:[#allocation11_spill] sm:$0xff] %v2841_v17 }
  0xc4   :  { %3126 = vst [vmem:[#allocation12_spill] sm:$0xff] %v2844_v30 }
  0xc5   :  { %3127 = vst [vmem:[#allocation13_spill] sm:$0xff] %v2846_v36 }
  0xc6   :  { %3128 = vst [vmem:[#allocation14_spill] sm:$0xff] %v2848_v46 }
  0xc8   :  { %v338_v50 = vpop.f32.mrf.mxu2  ;;  %v282_v63 = vpop.f32.mrf.mxu0 }
  0xc9   :  { %v2851_v56 = vadd.f32 %v338_v50, %v2816_v39  ;;  %v367_v58 = vpop.f32.mrf.mxu3  ;;  %v2856_v11 = vadd.f32 %v282_v63, %v69_v25  ;;  %v311_v16 = vpop.f32.mrf.mxu1 }
  0xca   :  { %v2854_v0 = vadd.f32 %v367_v58, %v2818_v40  ;;  %v2858_v17 = vadd.f32 %v311_v16, %v70_v28 }
  0xcb   :  { %3129 = vst [vmem:[#allocation15_spill] sm:$0xff] %v2851_v56 }
  0xcc   :  { %3130 = vst [vmem:[#allocation16_spill] sm:$0xff] %v2854_v0 }
  0xcd   :  { %3131 = vst [vmem:[#allocation17_spill] sm:$0xff] %v2856_v11 }
  0xce   :  { %3132 = vst [vmem:[#allocation18_spill] sm:$0xff] %v2858_v17 }
  0xd0   :  { %v340_v18 = vpop.f32.mrf.mxu2  ;;  %v285_v46 = vpop.f32.mrf.mxu0 }
  0xd1   :  { %v2861_v24 = vadd.f32 %v340_v18, %v2816_v39  ;;  %v369_v42 = vpop.f32.mrf.mxu3  ;;  %v2866_v50 = vadd.f32 %v285_v46, %v69_v25  ;;  %v314_v56 = vpop.f32.mrf.mxu1 }
  0xd2   :  { %v2864_v36 = vadd.f32 %v369_v42, %v2818_v40  ;;  %v2868_v30 = vadd.f32 %v314_v56, %v70_v28  ;;  %v271_v42 = vadd.f32 %v270_v19, %v69_v25  ;;  %v358_v19 = vadd.f32 %v2810_v29, %v2818_v40 }
  0xd3   :  { %3133 = vst [vmem:[#allocation19_spill] sm:$0xff] %v2861_v24 }
  0xd4   :  { %3134 = vst [vmem:[#allocation20_spill] sm:$0xff] %v2864_v36 }
  0xd5   :  { %3135 = vst [vmem:[#allocation21_spill] sm:$0xff] %v2866_v50  ;;  %v300_v50 = vadd.f32 %v299_v23, %v70_v28 }
  0xd6   :  { %3136 = vst [vmem:[#allocation22_spill] sm:$0xff] %v2868_v30 }
  0xd8   :  { %v343_v58 = vpop.f32.mrf.mxu2  ;;  %v287_v17 = vpop.f32.mrf.mxu0 }
  0xd9   :  { %v2871_v63 = vadd.f32 %v343_v58, %v2816_v39  ;;  %v372_v16 = vpop.f32.mrf.mxu3  ;;  %v2876_v18 = vadd.f32 %v287_v17, %v69_v25  ;;  %v316_v24 = vpop.f32.mrf.mxu1 }
  0xda   :  { %v2874_v11 = vadd.f32 %v372_v16, %v2818_v40  ;;  %v2878_v0 = vadd.f32 %v316_v24, %v70_v28 }
  0xdb   :  { %3137 = vst [vmem:[#allocation23_spill] sm:$0xff] %v2871_v63 }
  0xdc   :  { %3138 = vst [vmem:[#allocation24_spill] sm:$0xff] %v2874_v11 }
  0xdd   :  { %3139 = vst [vmem:[#allocation25_spill] sm:$0xff] %v2876_v18 }
  0xde   :  { %3140 = vst [vmem:[#allocation26_spill] sm:$0xff] %v2878_v0 }
  0xe0   :  { %v345_v46 = vpop.f32.mrf.mxu2  ;;  %v617_v36 = vpop.f32.mrf.mxu0 }
  0xe1   :  { %v2881_v56 = vadd.f32 %v345_v46, %v2816_v39  ;;  %v374_v30 = vpop.f32.mrf.mxu3  ;;  %v660_v63 = vadd.f32 %v617_v36, %v271_v42  ;;  %v630_v12 = vpop.f32.mrf.mxu1 }
  0xe2   :  { %v2884_v58 = vadd.f32 %v374_v30, %v2818_v40  ;;  %v661_v16 = vadd.f32 %v630_v12, %v300_v50 }
  0xe3   :  { %3141 = vst [vmem:[#allocation27_spill] sm:$0xff] %v2881_v56  ;;  %v1960_v11 = vmul.f32 -1.442695, %v660_v63 }
  0xe4   :  { %3142 = vst [vmem:[#allocation28_spill] sm:$0xff] %v2884_v58  ;;  %v1961_v17 = vmul.f32 -1.442695, %v661_v16 }
  0xe5   :  { %2056 = vpow2.f32 %v1960_v11  ;;  %v329_v11 = vadd.f32 %v2808_v27, %v2816_v39 }
  0xe6   :  { %2058 = vpow2.f32 %v1961_v17 }
  0xe8   :  { %v643_v25 = vpop.f32.mrf.mxu2  ;;  %v619_v28 = vpop.f32.mrf.mxu0 }
  0xe9   :  { %v656_v23 = vpop.f32.mrf.mxu3  ;;  %v632_v46 = vpop.f32.mrf.mxu1  ;;  %v662_v40 = vadd.f32 %v643_v25, %v329_v11 }
  0xea   :  { %v663_v24 = vadd.f32 %v656_v23, %v358_v19 }
  0xeb   :  { %v2057_v56 = vpop.eup %2056 }
  0xec   :  { %v1962_v0 = vmul.f32 -1.442695, %v663_v24  ;;  %v2059_v18 = vpop.eup %2058  ;;  %v667_v30 = vadd.f32 1.0, %v2057_v56 }
  0xed   :  { %v686_v58 = vadd.f32 1.0, %v2059_v18 }
  0xee   :  { %2060 = vpow2.f32 %v1962_v0  ;;  %v679_v56 = vand.u32 2147483648, %v667_v30  ;;  %v677_v28 = vand.u32 2147483647, %v667_v30  ;;  %vm673_vm2 = vweird.f32 %v667_v30 }
  0xef   :  { %2062 = vrcp.f32 %v667_v30  ;;  %v698_v0 = vand.u32 2147483648, %v686_v58  ;;  %v696_v46 = vand.u32 2147483647, %v686_v58  ;;  %vm692_vm3 = vweird.f32 %v686_v58 }
  0xf0   :  { %2064 = vrcp.f32 %v686_v58  ;;  %v645_v12 = vpop.f32.mrf.mxu2  ;;  %v680_v25 = vor.u32 1.1754944e-38, %v679_v56  ;;  %vm678_vm5 = vcmp.eq.f32.partialorder %v677_v28, 8.507059e+37 }
  0xf1   :  { %v658_v36 = vpop.f32.mrf.mxu3  ;;  %vm697_vm7 = vcmp.eq.f32.partialorder %v696_v46, 8.507059e+37 }
  0xf2   :  { %v699_v36 = vor.u32 1.1754944e-38, %v698_v0 }
  0xf4   :  { %v2061_v50 = vpop.eup %2060 }
  0xf5   :  { %v2063_v29 = vpop.eup %2062  ;;  %v706_v63 = vadd.f32 1.0, %v2061_v50 }
  0xf6   :  { %v2065_v42 = vpop.eup %2064  ;;  %v669_v16 = vmul.f32 %v2063_v29, %v667_v30  ;;  %vm674_vm0 = vweird.f32 %v2063_v29 }
  0xf7   :  { %v688_v17 = vmul.f32 %v2065_v42, %v686_v58  ;;  %2066 = vrcp.f32 %v706_v63  ;;  %vm693_vm1 = vweird.f32 %v2065_v42  ;;  %vm675_vm4 = vmor %vm673_vm2, %vm674_vm0  ;;  %v718_v56 = vand.u32 2147483648, %v706_v63 }
  0xf8   :  { %v670_v19 = vsub.f32 1.0, %v669_v16  ;;  %2068 = vtanh.f32 %v662_v40  ;;  %vm694_vm6 = vmor %vm692_vm3, %vm693_vm1  ;;  %vm712_vm9 = vweird.f32 %v706_v63 }
  0xf9   :  { %v689_v23 = vsub.f32 1.0, %v688_v17  ;;  %v719_v28 = vor.u32 1.1754944e-38, %v718_v56 }
  0xfa   :  { %v671_v18 = vmul.f32 %v2063_v29, %v670_v19 }
  0xfb   :  { %v690_v24 = vmul.f32 %v2065_v42, %v689_v23 }
  0xfc   :  { %v672_v27 = vadd.f32 %v2063_v29, %v671_v18 }
  0xfd   :  { %v2067_v39 = vpop.eup %2066  ;;  %v691_v12 = vadd.f32 %v2065_v42, %v690_v24 }
  0xfe   :  { %v676_v11 = vsel %vm675_vm4, %v2063_v29, %v672_v27  ;;  %v708_v50 = vmul.f32 %v2067_v39, %v706_v63  ;;  %v2069_v40 = vpop.eup %2068  ;;  %vm713_vm8 = vweird.f32 %v2067_v39  ;;  %v716_v29 = vand.u32 2147483647, %v706_v63 }
  0xff   :  { %v681_v16 = vsel %vm678_vm5, %v680_v25, %v676_v11  ;;  %v695_v17 = vsel %vm694_vm6, %v2065_v42, %v691_v12  ;;  %vm714_vm10 = vmor %vm712_vm9, %vm713_vm8 }
 0x100   :  { %v700_v19 = vsel %vm697_vm7, %v699_v36, %v695_v17  ;;  %v723_v23 = vmul.f32 %v2069_v40, %v681_v16  ;;  %v709_v6 = vsub.f32 1.0, %v708_v50  ;;  %vm717_vm11 = vcmp.eq.f32.partialorder %v716_v29, 8.507059e+37 }
 0x101   :  { %v722_v62 = vmul.f32 0.0, %v700_v19 }
 0x102   :  { %v710_v18 = vmul.f32 %v2067_v39, %v709_v6 }
 0x103   :  { %v2890_v30 = vadd.f32 %v723_v23, %v722_v62 }
 0x104   :  { %v711_v58 = vadd.f32 %v2067_v39, %v710_v18 }
 0x105   :  { %2070 = vtanh.f32 %v2890_v30 }
 0x106   :  { %v715_v0 = vsel %vm714_vm10, %v2067_v39, %v711_v58 }
 0x107   :  { %v720_v24 = vsel %vm717_vm11, %v719_v28, %v715_v0 }
 0x10b   :  { %v2071_v42 = vpop.eup %2070 }
 0x10c   :  { %v726_v46 = vmul.f32 %v2071_v42, %v720_v24 }
 0x10e   :  { %v729_v27 = vpack.c.bf16 %v726_v46, %v726_v46 }
 0x110   :  { %730 = vst [vmem:[#allocation5] sm:$0xf] %v729_v27  ;;  %747 = vmatmul.bf16.vlgmr.msra.gmra.mxu0 %v729_v27  ;;  %760 = vmatmul.bf16.vlgmr.msra.gmra.mxu1 %v729_v27 }
 0x111   :  { %773 = vmatmul.bf16.vlgmr.msra.gmra.mxu2 %v729_v27  ;;  %786 = vmatmul.bf16.vlgmr.msra.gmra.mxu3 %v729_v27 }
 0x112   :  { %1003 = vmatpush.bf16.msra.mxu0 %v2456_v37  ;;  %1016 = vmatpush.bf16.msra.mxu1 %v2467_v41 }
 0x113   :  { %1029 = vmatpush.bf16.msra.mxu2 %v2484_v47  ;;  %1042 = vmatpush.bf16.msra.mxu3 %v2487_v48 }
 0x116   :  { %1004 = vmatpush.bf16.msra.mxu0 %v2489_v49  ;;  %1017 = vmatpush.bf16.msra.mxu1 %v2501_v53 }
 0x117   :  { %1030 = vmatpush.bf16.msra.mxu2 %v2519_v59  ;;  %1043 = vmatpush.bf16.msra.mxu3 %v2523_v60 }
 0x11a   :  { %1005 = vmatpush.bf16.msra.mxu0 %v2525_v61  ;;  %1018 = vmatpush.bf16.msra.mxu1 %v2537_v1 }
 0x11b   :  { %1031 = vmatpush.bf16.msra.mxu2 %v2555_v7  ;;  %1044 = vmatpush.bf16.msra.mxu3 %v2559_v8 }
 0x11e   :  { %1006 = vmatpush.bf16.msra.mxu0 %v2561_v9  ;;  %1019 = vmatpush.bf16.msra.mxu1 %v2573_v13 }
 0x11f   :  { %1032 = vmatpush.bf16.msra.mxu2 %v2594_v20  ;;  %1045 = vmatpush.bf16.msra.mxu3 %v2598_v21 }
 0x122   :  { %1007 = vmatpush.bf16.msra.mxu0 %v2600_v22  ;;  %1020 = vmatpush.bf16.msra.mxu1 %v2612_v26 }
 0x123   :  { %1033 = vmatpush.bf16.msra.mxu2 %v2630_v32  ;;  %1046 = vmatpush.bf16.msra.mxu3 %v2634_v33 }
 0x126   :  { %1008 = vmatpush.bf16.msra.mxu0 %v2636_v34  ;;  %1021 = vmatpush.bf16.msra.mxu1 %v2639_v35 }
 0x127   :  { %1034 = vmatpush.bf16.msra.mxu2 %v2675_v52  ;;  %1047 = vmatpush.bf16.msra.mxu3 %v2659_v43 }
 0x12a   :  { %1009 = vmatpush.bf16.msra.mxu0 %v2661_v44  ;;  %1022 = vmatpush.bf16.msra.mxu1 %v2673_v51 }
 0x12b   :  { %1035 = vmatpush.bf16.msra.mxu2 %v2708_v4  ;;  %1048 = vmatpush.bf16.msra.mxu3 %v2704_v2 }
 0x12e   :  { %1010 = vmatpush.bf16.msra.mxu0 %v2706_v3  ;;  %1023 = vmatpush.bf16.msra.mxu1 %v2717_v10 }
 0x12f   :  { %1036 = vmatpush.bf16.msra.mxu2 %v2726_v14  ;;  %1049 = vmatpush.bf16.msra.mxu3 %v2730_v15 }
 0x18d   :  { %v748_v62 = vpop.f32.mrf.mxu0  ;;  %v761_v6 = vpop.f32.mrf.mxu1 }
 0x18e   :  { %v791_v63 = vadd.f32 %v748_v62, %v2812_v31  ;;  %v792_v39 = vadd.f32 %v761_v6, %v2814_v38 }
 0x190   :  { %v1963_v25 = vmul.f32 -1.442695, %v791_v63  ;;  %v1964_v12 = vmul.f32 -1.442695, %v792_v39 }
 0x192   :  { %2072 = vpow2.f32 %v1963_v25 }
 0x193   :  { %2074 = vpow2.f32 %v1964_v12 }
 0x194   :  { %v774_v36 = vpop.f32.mrf.mxu2  ;;  %v787_v11 = vpop.f32.mrf.mxu3 }
 0x195   :  { %v794_v50 = vadd.f32 %v787_v11, %v2824_v54  ;;  %v750_v40 = vpop.f32.mrf.mxu0  ;;  %v763_v16 = vpop.f32.mrf.mxu1  ;;  %v793_v28 = vadd.f32 %v774_v36, %v2821_v45 }
 0x197   :  { %v1965_v17 = vmul.f32 -1.442695, %v794_v50 }
 0x198   :  { %v2073_v19 = vpop.eup %2072 }
 0x199   :  { %v2075_v23 = vpop.eup %2074  ;;  %v798_v18 = vadd.f32 1.0, %v2073_v19  ;;  %2076 = vpow2.f32 %v1965_v17 }
 0x19a   :  { %v817_v58 = vadd.f32 1.0, %v2075_v23 }
 0x19b   :  { %2078 = vrcp.f32 %v798_v18  ;;  %v810_v62 = vand.u32 2147483648, %v798_v18  ;;  %v808_v39 = vand.u32 2147483647, %v798_v18  ;;  %vm804_vm14 = vweird.f32 %v798_v18 }
 0x19c   :  { %2080 = vrcp.f32 %v817_v58  ;;  %v776_v31 = vpop.f32.mrf.mxu2  ;;  %v789_v38 = vpop.f32.mrf.mxu3  ;;  %v829_v6 = vand.u32 2147483648, %v817_v58  ;;  %v827_v12 = vand.u32 2147483647, %v817_v58  ;;  %vm823_vm15 = vweird.f32 %v817_v58 }
 0x19d   :  { %v811_v45 = vor.u32 1.1754944e-38, %v810_v62  ;;  %vm809_vm2 = vcmp.eq.f32.partialorder %v808_v39, 8.507059e+37 }
 0x19e   :  { %v830_v16 = vor.u32 1.1754944e-38, %v829_v6  ;;  %vm828_vm3 = vcmp.eq.f32.partialorder %v827_v12, 8.507059e+37 }
 0x19f   :  { %v2077_v56 = vpop.eup %2076 }
 0x1a0   :  { %v837_v29 = vadd.f32 1.0, %v2077_v56 }
 0x1a1   :  { %v2079_v0 = vpop.eup %2078 }
 0x1a2   :  { %v2081_v42 = vpop.eup %2080  ;;  %v800_v24 = vmul.f32 %v2079_v0, %v798_v18  ;;  %2082 = vrcp.f32 %v837_v29  ;;  %vm805_vm12 = vweird.f32 %v2079_v0  ;;  %vm843_vm5 = vweird.f32 %v837_v29 }
 0x1a3   :  { %v819_v54 = vmul.f32 %v2081_v42, %v817_v58  ;;  %2084 = vtanh.f32 %v793_v28  ;;  %vm824_vm13 = vweird.f32 %v2081_v42  ;;  %vm806_vm0 = vmor %vm804_vm14, %vm805_vm12 }
 0x1a4   :  { %v801_v46 = vsub.f32 1.0, %v800_v24  ;;  %vm825_vm1 = vmor %vm823_vm15, %vm824_vm13 }
 0x1a5   :  { %v820_v27 = vsub.f32 1.0, %v819_v54 }
 0x1a6   :  { %v802_v63 = vmul.f32 %v2079_v0, %v801_v46  ;;  %v849_v46 = vand.u32 2147483648, %v837_v29 }
 0x1a7   :  { %v821_v25 = vmul.f32 %v2081_v42, %v820_v27 }
 0x1a8   :  { %v2083_v11 = vpop.eup %2082  ;;  %v803_v50 = vadd.f32 %v2079_v0, %v802_v63  ;;  %v850_v62 = vor.u32 1.1754944e-38, %v849_v46 }
 0x1a9   :  { %v822_v36 = vadd.f32 %v2081_v42, %v821_v25  ;;  %v839_v40 = vmul.f32 %v2083_v11, %v837_v29  ;;  %v2085_v19 = vpop.eup %2084  ;;  %vm844_vm4 = vweird.f32 %v2083_v11 }
 0x1aa   :  { %v807_v17 = vsel %vm806_vm0, %v2079_v0, %v803_v50  ;;  %v847_v0 = vand.u32 2147483647, %v837_v29  ;;  %vm845_vm6 = vmor %vm843_vm5, %vm844_vm4 }
 0x1ab   :  { %v812_v23 = vsel %vm809_vm2, %v811_v45, %v807_v17  ;;  %v826_v31 = vsel %vm825_vm1, %v2081_v42, %v822_v36  ;;  %v840_v38 = vsub.f32 1.0, %v839_v40 }
 0x1ac   :  { %v831_v56 = vsel %vm828_vm3, %v830_v16, %v826_v31  ;;  %v854_v28 = vmul.f32 %v2085_v19, %v812_v23  ;;  %vm848_vm7 = vcmp.eq.f32.partialorder %v847_v0, 8.507059e+37 }
 0x1ad   :  { %v853_v24 = vmul.f32 %v831_v56, %v2890_v30  ;;  %v841_v54 = vmul.f32 %v2083_v11, %v840_v38 }
 0x1af   :  { %v2930_v18 = vadd.f32 %v854_v28, %v853_v24  ;;  %v842_v58 = vadd.f32 %v2083_v11, %v841_v54 }
 0x1b1   :  { %2086 = vtanh.f32 %v2930_v18  ;;  %v846_v27 = vsel %vm845_vm6, %v2083_v11, %v842_v58  ;;  %v3143_v58 = vld [vmem:[#allocation8_spill] sm:$0xff] }
 0x1b2   :  { %v851_v6 = vsel %vm848_vm7, %v850_v62, %v846_v27 }
 0x1b7   :  { %v2087_v42 = vpop.eup %2086 }
 0x1b8   :  { %v857_v63 = vmul.f32 %v2087_v42, %v851_v6 }
 0x1ba   :  { %v860_v39 = vpack.c.bf16 %v857_v63, %v857_v63 }
 0x1bc   :  { %862 = vst [vmem:[#allocation5 + $0x4] sm:$0xf] %v860_v39  ;;  %879 = vmatmul.bf16.vlgmr.msrb.gmra.mxu0 %v860_v39  ;;  %892 = vmatmul.bf16.vlgmr.msrb.gmra.mxu1 %v860_v39 }
 0x1bd   :  { %905 = vmatmul.bf16.vlgmr.msrb.gmra.mxu2 %v860_v39  ;;  %918 = vmatmul.bf16.vlgmr.msrb.gmra.mxu3 %v860_v39 }
 0x1be   :  { %1135 = vmatpush.bf16.msrb.mxu0 %v2456_v37  ;;  %1148 = vmatpush.bf16.msrb.mxu1 %v2467_v41 }
 0x1bf   :  { %1161 = vmatpush.bf16.msrb.mxu2 %v2484_v47  ;;  %1174 = vmatpush.bf16.msrb.mxu3 %v2487_v48 }
 0x1c2   :  { %1136 = vmatpush.bf16.msrb.mxu0 %v2489_v49  ;;  %1149 = vmatpush.bf16.msrb.mxu1 %v2501_v53 }
 0x1c3   :  { %1162 = vmatpush.bf16.msrb.mxu2 %v2519_v59  ;;  %1175 = vmatpush.bf16.msrb.mxu3 %v2523_v60 }
 0x1c6   :  { %1137 = vmatpush.bf16.msrb.mxu0 %v2525_v61  ;;  %1150 = vmatpush.bf16.msrb.mxu1 %v2537_v1 }
 0x1c7   :  { %1163 = vmatpush.bf16.msrb.mxu2 %v2555_v7  ;;  %1176 = vmatpush.bf16.msrb.mxu3 %v2559_v8 }
 0x1ca   :  { %1138 = vmatpush.bf16.msrb.mxu0 %v2561_v9  ;;  %1151 = vmatpush.bf16.msrb.mxu1 %v2573_v13 }
 0x1cb   :  { %1164 = vmatpush.bf16.msrb.mxu2 %v2594_v20  ;;  %1177 = vmatpush.bf16.msrb.mxu3 %v2598_v21 }
 0x1ce   :  { %1139 = vmatpush.bf16.msrb.mxu0 %v2600_v22  ;;  %1152 = vmatpush.bf16.msrb.mxu1 %v2612_v26 }
 0x1cf   :  { %1165 = vmatpush.bf16.msrb.mxu2 %v2630_v32  ;;  %1178 = vmatpush.bf16.msrb.mxu3 %v2634_v33 }
 0x1d2   :  { %1140 = vmatpush.bf16.msrb.mxu0 %v2636_v34  ;;  %1153 = vmatpush.bf16.msrb.mxu1 %v2639_v35 }
 0x1d3   :  { %1166 = vmatpush.bf16.msrb.mxu2 %v2675_v52  ;;  %1179 = vmatpush.bf16.msrb.mxu3 %v2659_v43 }
 0x1d6   :  { %1141 = vmatpush.bf16.msrb.mxu0 %v2661_v44  ;;  %1154 = vmatpush.bf16.msrb.mxu1 %v2673_v51 }
 0x1d7   :  { %1167 = vmatpush.bf16.msrb.mxu2 %v2708_v4  ;;  %1180 = vmatpush.bf16.msrb.mxu3 %v2704_v2 }
 0x1da   :  { %1142 = vmatpush.bf16.msrb.mxu0 %v2706_v3  ;;  %1155 = vmatpush.bf16.msrb.mxu1 %v2717_v10 }
 0x1db   :  { %1168 = vmatpush.bf16.msrb.mxu2 %v2726_v14  ;;  %1181 = vmatpush.bf16.msrb.mxu3 %v2730_v15 }
 0x239   :  { %v880_v30 = vpop.f32.mrf.mxu0  ;;  %v893_v29 = vpop.f32.mrf.mxu1 }
 0x23a   :  { %v923_v25 = vadd.f32 %v880_v30, %v2826_v55  ;;  %v924_v12 = vadd.f32 %v893_v29, %v2828_v57 }
 0x23c   :  { %v1966_v11 = vmul.f32 -1.442695, %v923_v25  ;;  %v1967_v50 = vmul.f32 -1.442695, %v924_v12 }
 0x23e   :  { %2088 = vpow2.f32 %v1966_v11 }
 0x23f   :  { %2090 = vpow2.f32 %v1967_v50 }
 0x240   :  { %v906_v45 = vpop.f32.mrf.mxu2  ;;  %v919_v36 = vpop.f32.mrf.mxu3 }
 0x241   :  { %v926_v40 = vadd.f32 %v919_v36, %v2834_v5  ;;  %v882_v16 = vpop.f32.mrf.mxu0  ;;  %v895_v17 = vpop.f32.mrf.mxu1  ;;  %v925_v46 = vadd.f32 %v906_v45, %v3143_v58 }
 0x243   :  { %v1968_v19 = vmul.f32 -1.442695, %v926_v40 }
 0x244   :  { %v2089_v23 = vpop.eup %2088 }
 0x245   :  { %v2091_v31 = vpop.eup %2090  ;;  %v930_v38 = vadd.f32 1.0, %v2089_v23  ;;  %2092 = vpow2.f32 %v1968_v19 }
 0x246   :  { %v949_v56 = vadd.f32 1.0, %v2091_v31 }
 0x247   :  { %2094 = vrcp.f32 %v930_v38  ;;  %v942_v6 = vand.u32 2147483648, %v930_v38  ;;  %v940_v30 = vand.u32 2147483647, %v930_v38  ;;  %vm936_vm10 = vweird.f32 %v930_v38 }
 0x248   :  { %2096 = vrcp.f32 %v949_v56  ;;  %v908_v55 = vpop.f32.mrf.mxu2  ;;  %v921_v57 = vpop.f32.mrf.mxu3  ;;  %v961_v63 = vand.u32 2147483648, %v949_v56  ;;  %v959_v25 = vand.u32 2147483647, %v949_v56  ;;  %vm955_vm11 = vweird.f32 %v949_v56 }
 0x249   :  { %v943_v50 = vor.u32 1.1754944e-38, %v942_v6  ;;  %vm941_vm14 = vcmp.eq.f32.partialorder %v940_v30, 8.507059e+37  ;;  %v3145_v30 = vld [vmem:[#allocation10_spill] sm:$0xff] }
 0x24a   :  { %v962_v40 = vor.u32 1.1754944e-38, %v961_v63  ;;  %vm960_vm15 = vcmp.eq.f32.partialorder %v959_v25, 8.507059e+37  ;;  %v3144_v63 = vld [vmem:[#allocation9_spill] sm:$0xff] }
 0x24b   :  { %v2093_v28 = vpop.eup %2092 }
 0x24c   :  { %v969_v24 = vadd.f32 1.0, %v2093_v28 }
 0x24d   :  { %v2095_v54 = vpop.eup %2094 }
 0x24e   :  { %v2097_v0 = vpop.eup %2096  ;;  %v932_v27 = vmul.f32 %v2095_v54, %v930_v38  ;;  %2098 = vrcp.f32 %v969_v24  ;;  %vm937_vm8 = vweird.f32 %v2095_v54  ;;  %vm975_vm1 = vweird.f32 %v969_v24 }
 0x24f   :  { %v951_v5 = vmul.f32 %v2097_v0, %v949_v56  ;;  %2100 = vtanh.f32 %v925_v46  ;;  %vm956_vm9 = vweird.f32 %v2097_v0  ;;  %vm938_vm12 = vmor %vm936_vm10, %vm937_vm8  ;;  %v981_v46 = vand.u32 2147483648, %v969_v24 }
 0x250   :  { %v933_v62 = vsub.f32 1.0, %v932_v27  ;;  %vm957_vm13 = vmor %vm955_vm11, %vm956_vm9 }
 0x251   :  { %v952_v42 = vsub.f32 1.0, %v951_v5  ;;  %v982_v5 = vor.u32 1.1754944e-38, %v981_v46 }
 0x252   :  { %v934_v39 = vmul.f32 %v2095_v54, %v933_v62 }
 0x253   :  { %v953_v29 = vmul.f32 %v2097_v0, %v952_v42 }
 0x254   :  { %v2099_v12 = vpop.eup %2098  ;;  %v935_v11 = vadd.f32 %v2095_v54, %v934_v39 }
 0x255   :  { %v954_v45 = vadd.f32 %v2097_v0, %v953_v29  ;;  %v971_v36 = vmul.f32 %v2099_v12, %v969_v24  ;;  %v2101_v17 = vpop.eup %2100  ;;  %vm976_vm0 = vweird.f32 %v2099_v12 }
 0x256   :  { %v939_v16 = vsel %vm938_vm12, %v2095_v54, %v935_v11  ;;  %v979_v54 = vand.u32 2147483647, %v969_v24  ;;  %vm977_vm2 = vmor %vm975_vm1, %vm976_vm0 }
 0x257   :  { %v944_v19 = vsel %vm941_vm14, %v943_v50, %v939_v16  ;;  %v958_v23 = vsel %vm957_vm13, %v2097_v0, %v954_v45  ;;  %v972_v31 = vsub.f32 1.0, %v971_v36  ;;  %v3146_v45 = vld [vmem:[#allocation12_spill] sm:$0xff] }
 0x258   :  { %v963_v55 = vsel %vm960_vm15, %v962_v40, %v958_v23  ;;  %v986_v57 = vmul.f32 %v2101_v17, %v944_v19  ;;  %vm980_vm3 = vcmp.eq.f32.partialorder %v979_v54, 8.507059e+37  ;;  %v3147_v54 = vld [vmem:[#allocation11_spill] sm:$0xff] }
 0x259   :  { %v985_v28 = vmul.f32 %v963_v55, %v2930_v18  ;;  %v973_v58 = vmul.f32 %v2099_v12, %v972_v31 }
 0x25b   :  { %v2970_v38 = vadd.f32 %v986_v57, %v985_v28  ;;  %v974_v56 = vadd.f32 %v2099_v12, %v973_v58 }
 0x25d   :  { %2102 = vtanh.f32 %v2970_v38  ;;  %v978_v27 = vsel %vm977_vm2, %v2099_v12, %v974_v56 }
 0x25e   :  { %v983_v62 = vsel %vm980_vm3, %v982_v5, %v978_v27 }
 0x263   :  { %v2103_v0 = vpop.eup %2102 }
 0x264   :  { %v989_v42 = vmul.f32 %v2103_v0, %v983_v62 }
 0x266   :  { %v992_v6 = vpack.c.bf16 %v989_v42, %v989_v42 }
 0x268   :  { %994 = vst [vmem:[#allocation5 + $0x8] sm:$0xf] %v992_v6  ;;  %1011 = vmatmul.bf16.vlgmr.msra.gmra.mxu0 %v992_v6  ;;  %1024 = vmatmul.bf16.vlgmr.msra.gmra.mxu1 %v992_v6 }
 0x269   :  { %1037 = vmatmul.bf16.vlgmr.msra.gmra.mxu2 %v992_v6  ;;  %1050 = vmatmul.bf16.vlgmr.msra.gmra.mxu3 %v992_v6 }
 0x26a   :  { %1267 = vmatpush.bf16.msra.mxu0 %v2456_v37  ;;  %1280 = vmatpush.bf16.msra.mxu1 %v2467_v41 }
 0x26b   :  { %1293 = vmatpush.bf16.msra.mxu2 %v2484_v47  ;;  %1306 = vmatpush.bf16.msra.mxu3 %v2487_v48 }
 0x26e   :  { %1268 = vmatpush.bf16.msra.mxu0 %v2489_v49  ;;  %1281 = vmatpush.bf16.msra.mxu1 %v2501_v53 }
 0x26f   :  { %1294 = vmatpush.bf16.msra.mxu2 %v2519_v59  ;;  %1307 = vmatpush.bf16.msra.mxu3 %v2523_v60 }
 0x272   :  { %1269 = vmatpush.bf16.msra.mxu0 %v2525_v61  ;;  %1282 = vmatpush.bf16.msra.mxu1 %v2537_v1 }
 0x273   :  { %1295 = vmatpush.bf16.msra.mxu2 %v2555_v7  ;;  %1308 = vmatpush.bf16.msra.mxu3 %v2559_v8 }
 0x276   :  { %1270 = vmatpush.bf16.msra.mxu0 %v2561_v9  ;;  %1283 = vmatpush.bf16.msra.mxu1 %v2573_v13 }
 0x277   :  { %1296 = vmatpush.bf16.msra.mxu2 %v2594_v20  ;;  %1309 = vmatpush.bf16.msra.mxu3 %v2598_v21 }
 0x27a   :  { %1271 = vmatpush.bf16.msra.mxu0 %v2600_v22  ;;  %1284 = vmatpush.bf16.msra.mxu1 %v2612_v26 }
 0x27b   :  { %1297 = vmatpush.bf16.msra.mxu2 %v2630_v32  ;;  %1310 = vmatpush.bf16.msra.mxu3 %v2634_v33 }
 0x27e   :  { %1272 = vmatpush.bf16.msra.mxu0 %v2636_v34  ;;  %1285 = vmatpush.bf16.msra.mxu1 %v2639_v35 }
 0x27f   :  { %1298 = vmatpush.bf16.msra.mxu2 %v2675_v52  ;;  %1311 = vmatpush.bf16.msra.mxu3 %v2659_v43 }
 0x282   :  { %1273 = vmatpush.bf16.msra.mxu0 %v2661_v44  ;;  %1286 = vmatpush.bf16.msra.mxu1 %v2673_v51 }
 0x283   :  { %1299 = vmatpush.bf16.msra.mxu2 %v2708_v4  ;;  %1312 = vmatpush.bf16.msra.mxu3 %v2704_v2 }
 0x286   :  { %1274 = vmatpush.bf16.msra.mxu0 %v2706_v3  ;;  %1287 = vmatpush.bf16.msra.mxu1 %v2717_v10 }
 0x287   :  { %1300 = vmatpush.bf16.msra.mxu2 %v2726_v14  ;;  %1313 = vmatpush.bf16.msra.mxu3 %v2730_v15 }
 0x2e5   :  { %v1012_v18 = vpop.f32.mrf.mxu0  ;;  %v1025_v24 = vpop.f32.mrf.mxu1 }
 0x2e6   :  { %v1055_v39 = vadd.f32 %v1012_v18, %v3144_v63  ;;  %v1056_v29 = vadd.f32 %v1025_v24, %v3145_v30 }
 0x2e8   :  { %v1969_v25 = vmul.f32 -1.442695, %v1055_v39  ;;  %v1970_v12 = vmul.f32 -1.442695, %v1056_v29 }
 0x2ea   :  { %2104 = vpow2.f32 %v1969_v25 }
 0x2eb   :  { %2106 = vpow2.f32 %v1970_v12 }
 0x2ec   :  { %v1038_v11 = vpop.f32.mrf.mxu2  ;;  %v1051_v50 = vpop.f32.mrf.mxu3 }
 0x2ed   :  { %v1058_v36 = vadd.f32 %v1051_v50, %v3146_v45  ;;  %v1014_v40 = vpop.f32.mrf.mxu0  ;;  %v1027_v16 = vpop.f32.mrf.mxu1  ;;  %v1057_v27 = vadd.f32 %v1038_v11, %v3147_v54 }
 0x2ef   :  { %v1971_v17 = vmul.f32 -1.442695, %v1058_v36 }
 0x2f0   :  { %v2105_v19 = vpop.eup %2104 }
 0x2f1   :  { %v2107_v23 = vpop.eup %2106  ;;  %v1062_v31 = vadd.f32 1.0, %v2105_v19  ;;  %2108 = vpow2.f32 %v1971_v17 }
 0x2f2   :  { %v1081_v55 = vadd.f32 1.0, %v2107_v23 }
 0x2f3   :  { %2110 = vrcp.f32 %v1062_v31  ;;  %v1074_v18 = vand.u32 2147483648, %v1062_v31  ;;  %v1072_v39 = vand.u32 2147483647, %v1062_v31  ;;  %vm1068_vm6 = vweird.f32 %v1062_v31 }
 0x2f4   :  { %2112 = vrcp.f32 %v1081_v55  ;;  %v1040_v57 = vpop.f32.mrf.mxu2  ;;  %v1053_v28 = vpop.f32.mrf.mxu3  ;;  %v1093_v24 = vand.u32 2147483648, %v1081_v55  ;;  %v1091_v29 = vand.u32 2147483647, %v1081_v55  ;;  %vm1087_vm7 = vweird.f32 %v1081_v55 }
 0x2f5   :  { %v1075_v11 = vor.u32 1.1754944e-38, %v1074_v18  ;;  %vm1073_vm10 = vcmp.eq.f32.partialorder %v1072_v39, 8.507059e+37  ;;  %v3149_v39 = vld [vmem:[#allocation14_spill] sm:$0xff] }
 0x2f6   :  { %v1094_v36 = vor.u32 1.1754944e-38, %v1093_v24  ;;  %vm1092_vm11 = vcmp.eq.f32.partialorder %v1091_v29, 8.507059e+37  ;;  %v3148_v24 = vld [vmem:[#allocation13_spill] sm:$0xff] }
 0x2f7   :  { %v2109_v58 = vpop.eup %2108 }
 0x2f8   :  { %v1101_v56 = vadd.f32 1.0, %v2109_v58 }
 0x2f9   :  { %v2111_v46 = vpop.eup %2110 }
 0x2fa   :  { %v2113_v5 = vpop.eup %2112  ;;  %v1064_v0 = vmul.f32 %v2111_v46, %v1062_v31  ;;  %2114 = vrcp.f32 %v1101_v56  ;;  %vm1069_vm4 = vweird.f32 %v2111_v46  ;;  %vm1107_vm13 = vweird.f32 %v1101_v56 }
 0x2fb   :  { %v1083_v62 = vmul.f32 %v2113_v5, %v1081_v55  ;;  %2116 = vtanh.f32 %v1057_v27  ;;  %vm1088_vm5 = vweird.f32 %v2113_v5  ;;  %vm1070_vm8 = vmor %vm1068_vm6, %vm1069_vm4  ;;  %v1113_v27 = vand.u32 2147483648, %v1101_v56 }
 0x2fc   :  { %v1065_v42 = vsub.f32 1.0, %v1064_v0  ;;  %vm1089_vm9 = vmor %vm1087_vm7, %vm1088_vm5 }
 0x2fd   :  { %v1084_v6 = vsub.f32 1.0, %v1083_v62  ;;  %v1114_v62 = vor.u32 1.1754944e-38, %v1113_v27 }
 0x2fe   :  { %v1066_v63 = vmul.f32 %v2111_v46, %v1065_v42 }
 0x2ff   :  { %v1085_v30 = vmul.f32 %v2113_v5, %v1084_v6 }
 0x300   :  { %v2115_v25 = vpop.eup %2114  ;;  %v1067_v12 = vadd.f32 %v2111_v46, %v1066_v63 }
 0x301   :  { %v1086_v50 = vadd.f32 %v2113_v5, %v1085_v30  ;;  %v1103_v45 = vmul.f32 %v2115_v25, %v1101_v56  ;;  %v2117_v16 = vpop.eup %2116  ;;  %vm1108_vm12 = vweird.f32 %v2115_v25 }
 0x302   :  { %v1071_v40 = vsel %vm1070_vm8, %v2111_v46, %v1067_v12  ;;  %v1111_v46 = vand.u32 2147483647, %v1101_v56  ;;  %vm1109_vm14 = vmor %vm1107_vm13, %vm1108_vm12 }
 0x303   :  { %v1076_v17 = vsel %vm1073_vm10, %v1075_v11, %v1071_v40  ;;  %v1090_v19 = vsel %vm1089_vm9, %v2113_v5, %v1086_v50  ;;  %v1104_v23 = vsub.f32 1.0, %v1103_v45  ;;  %v3150_v50 = vld [vmem:[#allocation16_spill] sm:$0xff] }
 0x304   :  { %v1095_v57 = vsel %vm1092_vm11, %v1094_v36, %v1090_v19  ;;  %v1118_v28 = vmul.f32 %v2117_v16, %v1076_v17  ;;  %vm1112_vm15 = vcmp.eq.f32.partialorder %v1111_v46, 8.507059e+37  ;;  %v3151_v46 = vld [vmem:[#allocation15_spill] sm:$0xff] }
 0x305   :  { %v1117_v58 = vmul.f32 %v1095_v57, %v2970_v38  ;;  %v1105_v54 = vmul.f32 %v2115_v25, %v1104_v23 }
 0x307   :  { %v3010_v31 = vadd.f32 %v1118_v28, %v1117_v58  ;;  %v1106_v55 = vadd.f32 %v2115_v25, %v1105_v54 }
 0x309   :  { %2118 = vtanh.f32 %v3010_v31  ;;  %v1110_v0 = vsel %vm1109_vm14, %v2115_v25, %v1106_v55 }
 0x30a   :  { %v1115_v42 = vsel %vm1112_vm15, %v1114_v62, %v1110_v0 }
 0x30f   :  { %v2119_v5 = vpop.eup %2118 }
 0x310   :  { %v1121_v6 = vmul.f32 %v2119_v5, %v1115_v42 }
 0x312   :  { %v1124_v18 = vpack.c.bf16 %v1121_v6, %v1121_v6 }
 0x314   :  { %1126 = vst [vmem:[#allocation5 + $0xc] sm:$0xf] %v1124_v18  ;;  %1143 = vmatmul.bf16.vlgmr.msrb.gmra.mxu0 %v1124_v18  ;;  %1156 = vmatmul.bf16.vlgmr.msrb.gmra.mxu1 %v1124_v18 }
 0x315   :  { %1169 = vmatmul.bf16.vlgmr.msrb.gmra.mxu2 %v1124_v18  ;;  %1182 = vmatmul.bf16.vlgmr.msrb.gmra.mxu3 %v1124_v18 }
 0x316   :  { %1399 = vmatpush.bf16.msrb.mxu0 %v2456_v37  ;;  %1412 = vmatpush.bf16.msrb.mxu1 %v2467_v41 }
 0x317   :  { %1425 = vmatpush.bf16.msrb.mxu2 %v2484_v47  ;;  %1438 = vmatpush.bf16.msrb.mxu3 %v2487_v48 }
 0x31a   :  { %1400 = vmatpush.bf16.msrb.mxu0 %v2489_v49  ;;  %1413 = vmatpush.bf16.msrb.mxu1 %v2501_v53 }
 0x31b   :  { %1426 = vmatpush.bf16.msrb.mxu2 %v2519_v59  ;;  %1439 = vmatpush.bf16.msrb.mxu3 %v2523_v60 }
 0x31e   :  { %1401 = vmatpush.bf16.msrb.mxu0 %v2525_v61  ;;  %1414 = vmatpush.bf16.msrb.mxu1 %v2537_v1 }
 0x31f   :  { %1427 = vmatpush.bf16.msrb.mxu2 %v2555_v7  ;;  %1440 = vmatpush.bf16.msrb.mxu3 %v2559_v8 }
 0x322   :  { %1402 = vmatpush.bf16.msrb.mxu0 %v2561_v9  ;;  %1415 = vmatpush.bf16.msrb.mxu1 %v2573_v13 }
 0x323   :  { %1428 = vmatpush.bf16.msrb.mxu2 %v2594_v20  ;;  %1441 = vmatpush.bf16.msrb.mxu3 %v2598_v21 }
 0x326   :  { %1403 = vmatpush.bf16.msrb.mxu0 %v2600_v22  ;;  %1416 = vmatpush.bf16.msrb.mxu1 %v2612_v26 }
 0x327   :  { %1429 = vmatpush.bf16.msrb.mxu2 %v2630_v32  ;;  %1442 = vmatpush.bf16.msrb.mxu3 %v2634_v33 }
 0x32a   :  { %1404 = vmatpush.bf16.msrb.mxu0 %v2636_v34  ;;  %1417 = vmatpush.bf16.msrb.mxu1 %v2639_v35 }
 0x32b   :  { %1430 = vmatpush.bf16.msrb.mxu2 %v2675_v52  ;;  %1443 = vmatpush.bf16.msrb.mxu3 %v2659_v43 }
 0x32e   :  { %1405 = vmatpush.bf16.msrb.mxu0 %v2661_v44  ;;  %1418 = vmatpush.bf16.msrb.mxu1 %v2673_v51 }
 0x32f   :  { %1431 = vmatpush.bf16.msrb.mxu2 %v2708_v4  ;;  %1444 = vmatpush.bf16.msrb.mxu3 %v2704_v2 }
 0x332   :  { %1406 = vmatpush.bf16.msrb.mxu0 %v2706_v3  ;;  %1419 = vmatpush.bf16.msrb.mxu1 %v2717_v10 }
 0x333   :  { %1432 = vmatpush.bf16.msrb.mxu2 %v2726_v14  ;;  %1445 = vmatpush.bf16.msrb.mxu3 %v2730_v15 }
 0x391   :  { %v1144_v38 = vpop.f32.mrf.mxu0  ;;  %v1157_v56 = vpop.f32.mrf.mxu1 }
 0x392   :  { %v1187_v63 = vadd.f32 %v1144_v38, %v3148_v24  ;;  %v1188_v30 = vadd.f32 %v1157_v56, %v3149_v39 }
 0x394   :  { %v1972_v29 = vmul.f32 -1.442695, %v1187_v63  ;;  %v1973_v25 = vmul.f32 -1.442695, %v1188_v30 }
 0x396   :  { %2120 = vpow2.f32 %v1972_v29 }
 0x397   :  { %2122 = vpow2.f32 %v1973_v25 }
 0x398   :  { %v1170_v12 = vpop.f32.mrf.mxu2  ;;  %v1183_v11 = vpop.f32.mrf.mxu3 }
 0x399   :  { %v1190_v45 = vadd.f32 %v1183_v11, %v3150_v50  ;;  %v1146_v36 = vpop.f32.mrf.mxu0  ;;  %v1159_v40 = vpop.f32.mrf.mxu1  ;;  %v1189_v0 = vadd.f32 %v1170_v12, %v3151_v46 }
 0x39b   :  { %v1974_v16 = vmul.f32 -1.442695, %v1190_v45 }
 0x39c   :  { %v2121_v17 = vpop.eup %2120 }
 0x39d   :  { %v2123_v19 = vpop.eup %2122  ;;  %v1194_v23 = vadd.f32 1.0, %v2121_v17  ;;  %2124 = vpow2.f32 %v1974_v16 }
 0x39e   :  { %v1213_v57 = vadd.f32 1.0, %v2123_v19 }
 0x39f   :  { %2126 = vrcp.f32 %v1194_v23  ;;  %v1206_v38 = vand.u32 2147483648, %v1194_v23  ;;  %v1204_v63 = vand.u32 2147483647, %v1194_v23  ;;  %vm1200_vm2 = vweird.f32 %v1194_v23 }
 0x3a0   :  { %2128 = vrcp.f32 %v1213_v57  ;;  %v1172_v28 = vpop.f32.mrf.mxu2  ;;  %v1185_v58 = vpop.f32.mrf.mxu3  ;;  %v1225_v56 = vand.u32 2147483648, %v1213_v57  ;;  %v1223_v30 = vand.u32 2147483647, %v1213_v57  ;;  %vm1219_vm3 = vweird.f32 %v1213_v57 }
 0x3a1   :  { %v1207_v12 = vor.u32 1.1754944e-38, %v1206_v38  ;;  %vm1205_vm6 = vcmp.eq.f32.partialorder %v1204_v63, 8.507059e+37 }
 0x3a2   :  { %v1226_v45 = vor.u32 1.1754944e-38, %v1225_v56  ;;  %vm1224_vm7 = vcmp.eq.f32.partialorder %v1223_v30, 8.507059e+37 }
 0x3a3   :  { %v2125_v54 = vpop.eup %2124 }
 0x3a4   :  { %v1233_v55 = vadd.f32 1.0, %v2125_v54 }
 0x3a5   :  { %v2127_v27 = vpop.eup %2126 }
 0x3a6   :  { %v2129_v62 = vpop.eup %2128  ;;  %v1196_v5 = vmul.f32 %v2127_v27, %v1194_v23  ;;  %2130 = vrcp.f32 %v1233_v55  ;;  %vm1201_vm0 = vweird.f32 %v2127_v27  ;;  %vm1239_vm9 = vweird.f32 %v1233_v55 }
 0x3a7   :  { %v1215_v42 = vmul.f32 %v2129_v62, %v1213_v57  ;;  %2132 = vtanh.f32 %v1189_v0  ;;  %vm1220_vm1 = vweird.f32 %v2129_v62  ;;  %vm1202_vm4 = vmor %vm1200_vm2, %vm1201_vm0  ;;  %v1245_v0 = vand.u32 2147483648, %v1233_v55 }
 0x3a8   :  { %v1197_v6 = vsub.f32 1.0, %v1196_v5  ;;  %vm1221_vm5 = vmor %vm1219_vm3, %vm1220_vm1 }
 0x3a9   :  { %v1216_v18 = vsub.f32 1.0, %v1215_v42  ;;  %v1246_v42 = vor.u32 1.1754944e-38, %v1245_v0 }
 0x3aa   :  { %v1198_v24 = vmul.f32 %v2127_v27, %v1197_v6 }
 0x3ab   :  { %v1217_v39 = vmul.f32 %v2129_v62, %v1216_v18 }
 0x3ac   :  { %v2131_v29 = vpop.eup %2130  ;;  %v1199_v25 = vadd.f32 %v2127_v27, %v1198_v24 }
 0x3ad   :  { %v1218_v11 = vadd.f32 %v2129_v62, %v1217_v39  ;;  %v1235_v50 = vmul.f32 %v2131_v29, %v1233_v55  ;;  %v2133_v40 = vpop.eup %2132  ;;  %vm1240_vm8 = vweird.f32 %v2131_v29 }
 0x3ae   :  { %v1203_v36 = vsel %vm1202_vm4, %v2127_v27, %v1199_v25  ;;  %v1243_v27 = vand.u32 2147483647, %v1233_v55  ;;  %vm1241_vm10 = vmor %vm1239_vm9, %vm1240_vm8 }
 0x3af   :  { %v1208_v16 = vsel %vm1205_vm6, %v1207_v12, %v1203_v36  ;;  %v1222_v17 = vsel %vm1221_vm5, %v2129_v62, %v1218_v11  ;;  %v1236_v19 = vsub.f32 1.0, %v1235_v50 }
 0x3b0   :  { %v1227_v28 = vsel %vm1224_vm7, %v1226_v45, %v1222_v17  ;;  %v1250_v58 = vmul.f32 %v2133_v40, %v1208_v16  ;;  %vm1244_vm11 = vcmp.eq.f32.partialorder %v1243_v27, 8.507059e+37 }
 0x3b1   :  { %v1249_v54 = vmul.f32 %v1227_v28, %v3010_v31  ;;  %v1237_v46 = vmul.f32 %v2131_v29, %v1236_v19 }
 0x3b3   :  { %v3050_v23 = vadd.f32 %v1250_v58, %v1249_v54  ;;  %v1238_v57 = vadd.f32 %v2131_v29, %v1237_v46 }
 0x3b5   :  { %2134 = vtanh.f32 %v3050_v23  ;;  %v1242_v5 = vsel %vm1241_vm10, %v2131_v29, %v1238_v57 }
 0x3b6   :  { %v1247_v6 = vsel %vm1244_vm11, %v1246_v42, %v1242_v5 }
 0x3bb   :  { %v2135_v62 = vpop.eup %2134 }
 0x3bc   :  { %v1253_v18 = vmul.f32 %v2135_v62, %v1247_v6 }
 0x3be   :  { %v1256_v38 = vpack.c.bf16 %v1253_v18, %v1253_v18 }
 0x3c0   :  { %1258 = vst [vmem:[#allocation5 + $0x10] sm:$0xf] %v1256_v38  ;;  %1275 = vmatmul.bf16.vlgmr.msra.gmra.mxu0 %v1256_v38  ;;  %1288 = vmatmul.bf16.vlgmr.msra.gmra.mxu1 %v1256_v38 }
 0x3c1   :  { %1301 = vmatmul.bf16.vlgmr.msra.gmra.mxu2 %v1256_v38  ;;  %1314 = vmatmul.bf16.vlgmr.msra.gmra.mxu3 %v1256_v38 }
 0x3c2   :  { %1531 = vmatpush.bf16.msra.mxu0 %v2456_v37  ;;  %1544 = vmatpush.bf16.msra.mxu1 %v2467_v41 }
 0x3c3   :  { %1557 = vmatpush.bf16.msra.mxu2 %v2484_v47  ;;  %1570 = vmatpush.bf16.msra.mxu3 %v2487_v48  ;;  %v3152_v47 = vld [vmem:[#allocation17_spill] sm:$0xff] }
 0x3c6   :  { %1532 = vmatpush.bf16.msra.mxu0 %v2489_v49  ;;  %1545 = vmatpush.bf16.msra.mxu1 %v2501_v53  ;;  %v3153_v49 = vld [vmem:[#allocation18_spill] sm:$0xff] }
 0x3c7   :  { %1558 = vmatpush.bf16.msra.mxu2 %v2519_v59  ;;  %1571 = vmatpush.bf16.msra.mxu3 %v2523_v60 }
 0x3ca   :  { %1533 = vmatpush.bf16.msra.mxu0 %v2525_v61  ;;  %1546 = vmatpush.bf16.msra.mxu1 %v2537_v1 }
 0x3cb   :  { %1559 = vmatpush.bf16.msra.mxu2 %v2555_v7  ;;  %1572 = vmatpush.bf16.msra.mxu3 %v2559_v8  ;;  %v3154_v7 = vld [vmem:[#allocation20_spill] sm:$0xff] }
 0x3ce   :  { %1534 = vmatpush.bf16.msra.mxu0 %v2561_v9  ;;  %1547 = vmatpush.bf16.msra.mxu1 %v2573_v13 }
 0x3cf   :  { %1560 = vmatpush.bf16.msra.mxu2 %v2594_v20  ;;  %1573 = vmatpush.bf16.msra.mxu3 %v2598_v21 }
 0x3d2   :  { %1535 = vmatpush.bf16.msra.mxu0 %v2600_v22  ;;  %1548 = vmatpush.bf16.msra.mxu1 %v2612_v26 }
 0x3d3   :  { %1561 = vmatpush.bf16.msra.mxu2 %v2630_v32  ;;  %1574 = vmatpush.bf16.msra.mxu3 %v2634_v33 }
 0x3d6   :  { %1536 = vmatpush.bf16.msra.mxu0 %v2636_v34  ;;  %1549 = vmatpush.bf16.msra.mxu1 %v2639_v35 }
 0x3d7   :  { %1562 = vmatpush.bf16.msra.mxu2 %v2675_v52  ;;  %1575 = vmatpush.bf16.msra.mxu3 %v2659_v43 }
 0x3da   :  { %1537 = vmatpush.bf16.msra.mxu0 %v2661_v44  ;;  %1550 = vmatpush.bf16.msra.mxu1 %v2673_v51  ;;  %v3155_v51 = vld [vmem:[#allocation19_spill] sm:$0xff] }
 0x3db   :  { %1563 = vmatpush.bf16.msra.mxu2 %v2708_v4  ;;  %1576 = vmatpush.bf16.msra.mxu3 %v2704_v2 }
 0x3de   :  { %1538 = vmatpush.bf16.msra.mxu0 %v2706_v3  ;;  %1551 = vmatpush.bf16.msra.mxu1 %v2717_v10 }
 0x3df   :  { %1564 = vmatpush.bf16.msra.mxu2 %v2726_v14  ;;  %1577 = vmatpush.bf16.msra.mxu3 %v2730_v15 }
 0x43d   :  { %v1276_v37 = vpop.f32.mrf.mxu0  ;;  %v1289_v41 = vpop.f32.mrf.mxu1 }
 0x43e   :  { %v1319_v48 = vadd.f32 %v1276_v37, %v3152_v47  ;;  %v1320_v53 = vadd.f32 %v1289_v41, %v3153_v49  ;;  %v3156_v37 = vld [vmem:[#allocation21_spill] sm:$0xff]  ;;  %v3157_v47 = vld [vmem:[#allocation22_spill] sm:$0xff] }
 0x440   :  { %v1975_v59 = vmul.f32 -1.442695, %v1319_v48  ;;  %v1976_v60 = vmul.f32 -1.442695, %v1320_v53 }
 0x442   :  { %2136 = vpow2.f32 %v1975_v59 }
 0x443   :  { %2138 = vpow2.f32 %v1976_v60 }
 0x444   :  { %v1302_v61 = vpop.f32.mrf.mxu2  ;;  %v1315_v1 = vpop.f32.mrf.mxu3 }
 0x445   :  { %v1322_v8 = vadd.f32 %v1315_v1, %v3154_v7  ;;  %v1278_v9 = vpop.f32.mrf.mxu0  ;;  %v1291_v13 = vpop.f32.mrf.mxu1  ;;  %v1321_v52 = vadd.f32 %v1302_v61, %v3155_v51  ;;  %v3158_v61 = vld [vmem:[#allocation24_spill] sm:$0xff] }
 0x447   :  { %v1977_v20 = vmul.f32 -1.442695, %v1322_v8 }
 0x448   :  { %v2137_v21 = vpop.eup %2136 }
 0x449   :  { %v2139_v22 = vpop.eup %2138  ;;  %v1326_v26 = vadd.f32 1.0, %v2137_v21  ;;  %2140 = vpow2.f32 %v1977_v20 }
 0x44a   :  { %v1345_v32 = vadd.f32 1.0, %v2139_v22 }
 0x44b   :  { %2142 = vrcp.f32 %v1326_v26  ;;  %v1338_v15 = vand.u32 2147483648, %v1326_v26  ;;  %v1336_v56 = vand.u32 2147483647, %v1326_v26  ;;  %vm1332_vm14 = vweird.f32 %v1326_v26 }
 0x44c   :  { %2144 = vrcp.f32 %v1345_v32  ;;  %v1304_v33 = vpop.f32.mrf.mxu2  ;;  %v1317_v34 = vpop.f32.mrf.mxu3  ;;  %v1357_v31 = vand.u32 2147483648, %v1345_v32  ;;  %v1355_v63 = vand.u32 2147483647, %v1345_v32  ;;  %vm1351_vm15 = vweird.f32 %v1345_v32 }
 0x44d   :  { %v1339_v29 = vor.u32 1.1754944e-38, %v1338_v15  ;;  %vm1337_vm2 = vcmp.eq.f32.partialorder %v1336_v56, 8.507059e+37 }
 0x44e   :  { %v1358_v11 = vor.u32 1.1754944e-38, %v1357_v31  ;;  %vm1356_vm3 = vcmp.eq.f32.partialorder %v1355_v63, 8.507059e+37 }
 0x44f   :  { %v2141_v35 = vpop.eup %2140 }
 0x450   :  { %v1365_v43 = vadd.f32 1.0, %v2141_v35 }
 0x451   :  { %v2143_v44 = vpop.eup %2142 }
 0x452   :  { %v2145_v2 = vpop.eup %2144  ;;  %v1328_v3 = vmul.f32 %v2143_v44, %v1326_v26  ;;  %2146 = vrcp.f32 %v1365_v43  ;;  %vm1333_vm12 = vweird.f32 %v2143_v44  ;;  %v1377_v57 = vand.u32 2147483648, %v1365_v43 }
 0x453   :  { %v1347_v4 = vmul.f32 %v2145_v2, %v1345_v32  ;;  %2148 = vtanh.f32 %v1321_v52  ;;  %vm1352_vm13 = vweird.f32 %v2145_v2  ;;  %vm1334_vm0 = vmor %vm1332_vm14, %vm1333_vm12  ;;  %vm1371_vm5 = vweird.f32 %v1365_v43 }
 0x454   :  { %v1329_v10 = vsub.f32 1.0, %v1328_v3  ;;  %vm1353_vm1 = vmor %vm1351_vm15, %vm1352_vm13  ;;  %v1375_v0 = vand.u32 2147483647, %v1365_v43  ;;  %v1378_v5 = vor.u32 1.1754944e-38, %v1377_v57 }
 0x455   :  { %v1348_v14 = vsub.f32 1.0, %v1347_v4 }
 0x456   :  { %v1330_v55 = vmul.f32 %v2143_v44, %v1329_v10  ;;  %vm1376_vm7 = vcmp.eq.f32.partialorder %v1375_v0, 8.507059e+37 }
 0x457   :  { %v1349_v24 = vmul.f32 %v2145_v2, %v1348_v14 }
 0x458   :  { %v2147_v39 = vpop.eup %2146  ;;  %v1331_v30 = vadd.f32 %v2143_v44, %v1330_v55 }
 0x459   :  { %v1350_v25 = vadd.f32 %v2145_v2, %v1349_v24  ;;  %v1367_v12 = vmul.f32 %v2147_v39, %v1365_v43  ;;  %v2149_v45 = vpop.eup %2148  ;;  %vm1372_vm4 = vweird.f32 %v2147_v39  ;;  %v3159_v43 = vld [vmem:[#allocation23_spill] sm:$0xff] }
 0x45a   :  { %v1335_v50 = vsel %vm1334_vm0, %v2143_v44, %v1331_v30  ;;  %vm1373_vm6 = vmor %vm1371_vm5, %vm1372_vm4 }
 0x45b   :  { %v1340_v36 = vsel %vm1337_vm2, %v1339_v29, %v1335_v50  ;;  %v1354_v40 = vsel %vm1353_vm1, %v2145_v2, %v1350_v25  ;;  %v1368_v16 = vsub.f32 1.0, %v1367_v12 }
 0x45c   :  { %v1359_v17 = vsel %vm1356_vm3, %v1358_v11, %v1354_v40  ;;  %v1382_v19 = vmul.f32 %v2149_v45, %v1340_v36 }
 0x45d   :  { %v1381_v28 = vmul.f32 %v1359_v17, %v3050_v23  ;;  %v1369_v58 = vmul.f32 %v2147_v39, %v1368_v16 }
 0x45f   :  { %v3090_v54 = vadd.f32 %v1382_v19, %v1381_v28  ;;  %v1370_v46 = vadd.f32 %v2147_v39, %v1369_v58 }
 0x461   :  { %2150 = vtanh.f32 %v3090_v54  ;;  %v1374_v27 = vsel %vm1373_vm6, %v2147_v39, %v1370_v46 }
 0x462   :  { %v1379_v62 = vsel %vm1376_vm7, %v1378_v5, %v1374_v27 }
 0x467   :  { %v2151_v42 = vpop.eup %2150 }
 0x468   :  { %v1385_v6 = vmul.f32 %v2151_v42, %v1379_v62 }
 0x46a   :  { %v1388_v18 = vpack.c.bf16 %v1385_v6, %v1385_v6 }
 0x46c   :  { %1390 = vst [vmem:[#allocation5 + $0x14] sm:$0xf] %v1388_v18  ;;  %1407 = vmatmul.bf16.vlgmr.msrb.gmra.mxu0 %v1388_v18  ;;  %1420 = vmatmul.bf16.vlgmr.msrb.gmra.mxu1 %v1388_v18 }
 0x46d   :  { %1433 = vmatmul.bf16.vlgmr.msrb.gmra.mxu2 %v1388_v18  ;;  %1446 = vmatmul.bf16.vlgmr.msrb.gmra.mxu3 %v1388_v18 }
 0x4e9   :  { %v1408_v23 = vpop.f32.mrf.mxu0  ;;  %v1421_v38 = vpop.f32.mrf.mxu1 }
 0x4ea   :  { %v1451_v41 = vadd.f32 %v1408_v23, %v3156_v37  ;;  %v1452_v48 = vadd.f32 %v1421_v38, %v3157_v47  ;;  %v3160_v23 = vld [vmem:[#allocation25_spill] sm:$0xff]  ;;  %v3161_v37 = vld [vmem:[#allocation26_spill] sm:$0xff] }
 0x4ec   :  { %v1978_v49 = vmul.f32 -1.442695, %v1451_v41  ;;  %v1979_v53 = vmul.f32 -1.442695, %v1452_v48 }
 0x4ee   :  { %2152 = vpow2.f32 %v1978_v49 }
 0x4ef   :  { %2154 = vpow2.f32 %v1979_v53 }
 0x4f0   :  { %v1434_v59 = vpop.f32.mrf.mxu2  ;;  %v1447_v60 = vpop.f32.mrf.mxu3 }
 0x4f1   :  { %v1454_v1 = vadd.f32 %v1447_v60, %v3158_v61  ;;  %v1410_v7 = vpop.f32.mrf.mxu0  ;;  %v1423_v8 = vpop.f32.mrf.mxu1  ;;  %v1453_v44 = vadd.f32 %v1434_v59, %v3159_v43  ;;  %v3162_v59 = vld [vmem:[#allocation28_spill] sm:$0xff] }
 0x4f3   :  { %v1980_v9 = vmul.f32 -1.442695, %v1454_v1 }
 0x4f4   :  { %v2153_v13 = vpop.eup %2152 }
 0x4f5   :  { %v2155_v20 = vpop.eup %2154  ;;  %v1458_v21 = vadd.f32 1.0, %v2153_v13  ;;  %2156 = vpow2.f32 %v1980_v9 }
 0x4f6   :  { %v1477_v22 = vadd.f32 1.0, %v2155_v20 }
 0x4f7   :  { %2158 = vrcp.f32 %v1458_v21  ;;  %v1470_v10 = vand.u32 2147483648, %v1458_v21  ;;  %v1468_v31 = vand.u32 2147483647, %v1458_v21  ;;  %vm1464_vm10 = vweird.f32 %v1458_v21 }
 0x4f8   :  { %2160 = vrcp.f32 %v1477_v22  ;;  %v1436_v26 = vpop.f32.mrf.mxu2  ;;  %v1449_v32 = vpop.f32.mrf.mxu3  ;;  %v1489_v14 = vand.u32 2147483648, %v1477_v22  ;;  %v1487_v56 = vand.u32 2147483647, %v1477_v22  ;;  %vm1483_vm11 = vweird.f32 %v1477_v22 }
 0x4f9   :  { %v1471_v39 = vor.u32 1.1754944e-38, %v1470_v10  ;;  %vm1469_vm14 = vcmp.eq.f32.partialorder %v1468_v31, 8.507059e+37 }
 0x4fa   :  { %v1490_v25 = vor.u32 1.1754944e-38, %v1489_v14  ;;  %vm1488_vm15 = vcmp.eq.f32.partialorder %v1487_v56, 8.507059e+37 }
 0x4fb   :  { %v2157_v33 = vpop.eup %2156 }
 0x4fc   :  { %v1497_v34 = vadd.f32 1.0, %v2157_v33 }
 0x4fd   :  { %v2159_v35 = vpop.eup %2158 }
 0x4fe   :  { %v2161_v51 = vpop.eup %2160  ;;  %v1460_v52 = vmul.f32 %v2159_v35, %v1458_v21  ;;  %2162 = vrcp.f32 %v1497_v34  ;;  %vm1465_vm8 = vweird.f32 %v2159_v35  ;;  %v1509_v46 = vand.u32 2147483648, %v1497_v34 }
 0x4ff   :  { %v1479_v2 = vmul.f32 %v2161_v51, %v1477_v22  ;;  %2164 = vtanh.f32 %v1453_v44  ;;  %vm1484_vm9 = vweird.f32 %v2161_v51  ;;  %vm1466_vm12 = vmor %vm1464_vm10, %vm1465_vm8  ;;  %vm1503_vm1 = vweird.f32 %v1497_v34 }
 0x500   :  { %v1461_v3 = vsub.f32 1.0, %v1460_v52  ;;  %vm1485_vm13 = vmor %vm1483_vm11, %vm1484_vm9  ;;  %v1507_v57 = vand.u32 2147483647, %v1497_v34  ;;  %v1510_v27 = vor.u32 1.1754944e-38, %v1509_v46 }
 0x501   :  { %v1480_v4 = vsub.f32 1.0, %v1479_v2 }
 0x502   :  { %v1462_v15 = vmul.f32 %v2159_v35, %v1461_v3  ;;  %vm1508_vm3 = vcmp.eq.f32.partialorder %v1507_v57, 8.507059e+37 }
 0x503   :  { %v1481_v55 = vmul.f32 %v2161_v51, %v1480_v4 }
 0x504   :  { %v2163_v24 = vpop.eup %2162  ;;  %v1463_v63 = vadd.f32 %v2159_v35, %v1462_v15 }
 0x505   :  { %v1482_v30 = vadd.f32 %v2161_v51, %v1481_v55  ;;  %v1499_v29 = vmul.f32 %v2163_v24, %v1497_v34  ;;  %v2165_v11 = vpop.eup %2164  ;;  %vm1504_vm0 = vweird.f32 %v2163_v24  ;;  %v3163_v34 = vld [vmem:[#allocation27_spill] sm:$0xff] }
 0x506   :  { %v1467_v12 = vsel %vm1466_vm12, %v2159_v35, %v1463_v63  ;;  %vm1505_vm2 = vmor %vm1503_vm1, %vm1504_vm0 }
 0x507   :  { %v1472_v50 = vsel %vm1469_vm14, %v1471_v39, %v1467_v12  ;;  %v1486_v45 = vsel %vm1485_vm13, %v2161_v51, %v1482_v30  ;;  %v1500_v36 = vsub.f32 1.0, %v1499_v29 }
 0x508   :  { %v1491_v40 = vsel %vm1488_vm15, %v1490_v25, %v1486_v45  ;;  %v1514_v16 = vmul.f32 %v2165_v11, %v1472_v50 }
 0x509   :  { %v1513_v17 = vmul.f32 %v1491_v40, %v3090_v54  ;;  %v1501_v19 = vmul.f32 %v2163_v24, %v1500_v36 }
 0x50b   :  { %v3098_v28 = vadd.f32 %v1514_v16, %v1513_v17  ;;  %v1502_v58 = vadd.f32 %v2163_v24, %v1501_v19 }
 0x50d   :  { %2166 = vtanh.f32 %v3098_v28  ;;  %v1506_v0 = vsel %vm1505_vm2, %v2163_v24, %v1502_v58 }
 0x50e   :  { %v1511_v42 = vsel %vm1508_vm3, %v1510_v27, %v1506_v0 }
 0x513   :  { %v2167_v5 = vpop.eup %2166 }
 0x514   :  { %v1517_v62 = vmul.f32 %v2167_v5, %v1511_v42 }
 0x516   :  { %v1520_v6 = vpack.c.bf16 %v1517_v62, %v1517_v62 }
 0x518   :  { %1522 = vst [vmem:[#allocation5 + $0x18] sm:$0xf] %v1520_v6  ;;  %1539 = vmatmul.bf16.vlgmr.msra.gmra.mxu0 %v1520_v6  ;;  %1552 = vmatmul.bf16.vlgmr.msra.gmra.mxu1 %v1520_v6 }
 0x519   :  { %1565 = vmatmul.bf16.vlgmr.msra.gmra.mxu2 %v1520_v6  ;;  %1578 = vmatmul.bf16.vlgmr.msra.gmra.mxu3 %v1520_v6 }
 0x595   :  { %v1540_v54 = vpop.f32.mrf.mxu0  ;;  %v1553_v18 = vpop.f32.mrf.mxu1 }
 0x596   :  { %v1583_v38 = vadd.f32 %v1540_v54, %v3160_v23  ;;  %v1584_v41 = vadd.f32 %v1553_v18, %v3161_v37 }
 0x598   :  { %v1981_v47 = vmul.f32 -1.442695, %v1583_v38  ;;  %v1982_v48 = vmul.f32 -1.442695, %v1584_v41 }
 0x59a   :  { %2168 = vpow2.f32 %v1981_v47 }
 0x59b   :  { %2170 = vpow2.f32 %v1982_v48 }
 0x59c   :  { %v1566_v49 = vpop.f32.mrf.mxu2  ;;  %v1579_v53 = vpop.f32.mrf.mxu3 }
 0x59d   :  { %v1586_v60 = vadd.f32 %v1579_v53, %v3162_v59  ;;  %v1542_v61 = vpop.f32.mrf.mxu0  ;;  %v1555_v1 = vpop.f32.mrf.mxu1  ;;  %v1585_v35 = vadd.f32 %v1566_v49, %v3163_v34 }
 0x59f   :  { %v1983_v7 = vmul.f32 -1.442695, %v1586_v60 }
 0x5a0   :  { %v2169_v8 = vpop.eup %2168 }
 0x5a1   :  { %v2171_v9 = vpop.eup %2170  ;;  %v1590_v13 = vadd.f32 1.0, %v2169_v8  ;;  %2172 = vpow2.f32 %v1983_v7 }
 0x5a2   :  { %v1609_v20 = vadd.f32 1.0, %v2171_v9 }
 0x5a3   :  { %2174 = vrcp.f32 %v1590_v13  ;;  %v1602_v3 = vand.u32 2147483648, %v1590_v13  ;;  %v1600_v14 = vand.u32 2147483647, %v1590_v13  ;;  %vm1596_vm6 = vweird.f32 %v1590_v13 }
 0x5a4   :  { %2176 = vrcp.f32 %v1609_v20  ;;  %v1568_v21 = vpop.f32.mrf.mxu2  ;;  %v1581_v22 = vpop.f32.mrf.mxu3  ;;  %v1621_v4 = vand.u32 2147483648, %v1609_v20  ;;  %v1619_v31 = vand.u32 2147483647, %v1609_v20  ;;  %vm1615_vm7 = vweird.f32 %v1609_v20 }
 0x5a5   :  { %v1603_v24 = vor.u32 1.1754944e-38, %v1602_v3  ;;  %vm1601_vm10 = vcmp.eq.f32.partialorder %v1600_v14, 8.507059e+37 }
 0x5a6   :  { %v1622_v30 = vor.u32 1.1754944e-38, %v1621_v4  ;;  %vm1620_vm11 = vcmp.eq.f32.partialorder %v1619_v31, 8.507059e+37 }
 0x5a7   :  { %v2173_v26 = vpop.eup %2172 }
 0x5a8   :  { %v1629_v32 = vadd.f32 1.0, %v2173_v26 }
 0x5a9   :  { %v2175_v33 = vpop.eup %2174 }
 0x5aa   :  { %v2177_v43 = vpop.eup %2176  ;;  %v1592_v44 = vmul.f32 %v2175_v33, %v1590_v13  ;;  %2178 = vrcp.f32 %v1629_v32  ;;  %vm1597_vm4 = vweird.f32 %v2175_v33  ;;  %v1641_v58 = vand.u32 2147483648, %v1629_v32 }
 0x5ab   :  { %v1611_v51 = vmul.f32 %v2177_v43, %v1609_v20  ;;  %2180 = vtanh.f32 %v1585_v35  ;;  %vm1616_vm5 = vweird.f32 %v2177_v43  ;;  %vm1598_vm8 = vmor %vm1596_vm6, %vm1597_vm4  ;;  %vm1635_vm13 = vweird.f32 %v1629_v32 }
 0x5ac   :  { %v1593_v52 = vsub.f32 1.0, %v1592_v44  ;;  %vm1617_vm9 = vmor %vm1615_vm7, %vm1616_vm5  ;;  %v1639_v46 = vand.u32 2147483647, %v1629_v32  ;;  %v1642_v0 = vor.u32 1.1754944e-38, %v1641_v58 }
 0x5ad   :  { %v1612_v2 = vsub.f32 1.0, %v1611_v51 }
 0x5ae   :  { %v1594_v10 = vmul.f32 %v2175_v33, %v1593_v52  ;;  %vm1640_vm15 = vcmp.eq.f32.partialorder %v1639_v46, 8.507059e+37 }
 0x5af   :  { %v1613_v15 = vmul.f32 %v2177_v43, %v1612_v2 }
 0x5b0   :  { %v2179_v55 = vpop.eup %2178  ;;  %v1595_v56 = vadd.f32 %v2175_v33, %v1594_v10 }
 0x5b1   :  { %v1614_v63 = vadd.f32 %v2177_v43, %v1613_v15  ;;  %v1631_v39 = vmul.f32 %v2179_v55, %v1629_v32  ;;  %v2181_v25 = vpop.eup %2180  ;;  %vm1636_vm12 = vweird.f32 %v2179_v55 }
 0x5b2   :  { %v1599_v29 = vsel %vm1598_vm8, %v2175_v33, %v1595_v56  ;;  %vm1637_vm14 = vmor %vm1635_vm13, %vm1636_vm12 }
 0x5b3   :  { %v1604_v12 = vsel %vm1601_vm10, %v1603_v24, %v1599_v29  ;;  %v1618_v11 = vsel %vm1617_vm9, %v2177_v43, %v1614_v63  ;;  %v1632_v50 = vsub.f32 1.0, %v1631_v39 }
 0x5b4   :  { %v1623_v45 = vsel %vm1620_vm11, %v1622_v30, %v1618_v11  ;;  %v1646_v36 = vmul.f32 %v2181_v25, %v1604_v12 }
 0x5b5   :  { %v1645_v40 = vmul.f32 %v1623_v45, %v3098_v28  ;;  %v1633_v16 = vmul.f32 %v2179_v55, %v1632_v50 }
 0x5b7   :  { %v1647_v17 = vadd.f32 %v1646_v36, %v1645_v40  ;;  %v1634_v19 = vadd.f32 %v2179_v55, %v1633_v16 }
 0x5b9   :  { %2182 = vtanh.f32 %v1647_v17  ;;  %1661 = vst [vmem:[%s3121_s6] sm:$0xff] %v1647_v17  ;;  %v1638_v57 = vsel %vm1637_vm14, %v2179_v55, %v1634_v19 }
 0x5ba   :  { %v1643_v27 = vsel %vm1640_vm15, %v1642_v0, %v1638_v57 }
 0x5bf   :  { %v2183_v28 = vpop.eup %2182 }
 0x5c0   :  { %v1649_v5 = vmul.f32 %v2183_v28, %v1643_v27 }
 0x5c2   :  { %v1652_v42 = vpack.c.bf16 %v1649_v5, %v1649_v5  ;;  %1659 = vst [vmem:[%s3120_s5] sm:$0xff] %v1649_v5 }
 0x5c4   :  { %1654 = vst [vmem:[#allocation5 + $0x1c] sm:$0xf] %v1652_v42 }
 0x5c5   :  { %1674 = dma.vmem_to_hbm [thread:$0]  %s1667_s17, 512, %s1669_s20, [#allocation6], %s2212_s22, %s2212_s22, %s2213_s23  }
 0x5c6   :  { %2208 = dma.done.wait [#allocation6], 512  }
 0x5c7   :  { %2209 = vsyncadd [#allocation6], 4294966784 }
 0x5c8   :  { %1687 = vsyncpa [#allocation6], 1 }

// kernel: encoder_lstm_forward.2
= control target key start
LH: loop header
LB: loop body
LE: loop exit
PB: predicated region body
PF: predicated region fallthrough
CT: control target
= control target key end

     0   :  { %s3096_s1 = inlined_call_operand.vmem [shape: bf16[128,512], index: 1, kind: input, shape index: {}]   ;;  %s3097_s2 = inlined_call_operand.vmem [shape: bf16[128,512], index: 2, kind: input, shape index: {}]   ;;  %s3098_s0 = inlined_call_operand.vmem [shape: bf16[8,8,128], index: 0, kind: input, shape index: {}]   ;;  %s3099_s3 = inlined_call_operand.vmem [shape: f32[1,512], index: 3, kind: input, shape index: {}]   ;;  %s3100_s4 = inlined_call_operand.vmem [shape: bf16[8,8,128], index: 4, kind: output, shape index: {0}]   ;;  %s3101_s6 = inlined_call_operand.vmem [shape: f32[8,128], index: 6, kind: output, shape index: {2}]   ;;  %s3102_s5 = inlined_call_operand.vmem [shape: f32[8,128], index: 5, kind: output, shape index: {1}]  }
   0x1   :  { %v1803_v0 = vld [vmem:[%s3096_s1 + $0xe0] sm:$0xf]  ;;  %v2010_v1 = vld [vmem:[%s3096_s1 + $0xec] sm:$0xf0]  ;;  %v2008_v2 = vld [vmem:[%s3096_s1 + $0xe4] sm:$0xf] }
   0x2   :  { %v1804_v3 = vor.u32 %v2010_v1, %v1803_v0  ;;  %v1805_v4 = vld [vmem:[%s3096_s1 + $0xf0] sm:$0xf0]  ;;  %v1811_v5 = vld [vmem:[%s3096_s1 + $0xe8] sm:$0xf]  ;;  %v2011_v6 = vld [vmem:[%s3096_s1 + $0xf4] sm:$0xf0] }
   0x3   :  { %v1808_v7 = vor.u32 %v2008_v2, %v1805_v4  ;;  %v1812_v8 = vor.u32 %v2011_v6, %v1811_v5  ;;  %v2009_v9 = vld [vmem:[%s3096_s1 + $0xec] sm:$0xf]  ;;  %v1813_v10 = vld [vmem:[%s3096_s1 + $0xf8] sm:$0xf0]  ;;  %v1787_v11 = vld [vmem:[%s3096_s1 + $0xc0] sm:$0xf] }
   0x4   :  { %260 = vmatpush.bf16.msra.mxu0 %v1804_v3  ;;  %v1816_v12 = vor.u32 %v2009_v9, %v1813_v10  ;;  %v2006_v13 = vld [vmem:[%s3096_s1 + $0xcc] sm:$0xf0]  ;;  %v2004_v14 = vld [vmem:[%s3096_s1 + $0xc4] sm:$0xf]  ;;  %v1789_v15 = vld [vmem:[%s3096_s1 + $0xd0] sm:$0xf0] }
   0x5   :  { %289 = vmatpush.bf16.msra.mxu1 %v1808_v7  ;;  %318 = vmatpush.bf16.msra.mxu2 %v1812_v8  ;;  %v1788_v16 = vor.u32 %v2006_v13, %v1787_v11  ;;  %v1792_v17 = vor.u32 %v2004_v14, %v1789_v15  ;;  %v1795_v18 = vld [vmem:[%s3096_s1 + $0xc8] sm:$0xf]  ;;  %v2007_v19 = vld [vmem:[%s3096_s1 + $0xd4] sm:$0xf0]  ;;  %v2005_v20 = vld [vmem:[%s3096_s1 + $0xcc] sm:$0xf] }
   0x6   :  { %347 = vmatpush.bf16.msra.mxu3 %v1816_v12  ;;  %v1796_v21 = vor.u32 %v2007_v19, %v1795_v18  ;;  %v1797_v22 = vld [vmem:[%s3096_s1 + $0xd8] sm:$0xf0]  ;;  %v1771_v23 = vld [vmem:[%s3096_s1 + $0xa0] sm:$0xf]  ;;  %v2002_v24 = vld [vmem:[%s3096_s1 + $0xac] sm:$0xf0] }
   0x7   :  { %v1800_v25 = vor.u32 %v2005_v20, %v1797_v22  ;;  %v2000_v26 = vld [vmem:[%s3096_s1 + $0xa4] sm:$0xf]  ;;  %v1773_v27 = vld [vmem:[%s3096_s1 + $0xb0] sm:$0xf0]  ;;  %v1779_v28 = vld [vmem:[%s3096_s1 + $0xa8] sm:$0xf]  ;;  %v1772_v29 = vor.u32 %v2002_v24, %v1771_v23 }
   0x8   :  { %261 = vmatpush.bf16.msra.mxu0 %v1788_v16  ;;  %v2003_v30 = vld [vmem:[%s3096_s1 + $0xb4] sm:$0xf0]  ;;  %v2001_v31 = vld [vmem:[%s3096_s1 + $0xac] sm:$0xf]  ;;  %v1781_v32 = vld [vmem:[%s3096_s1 + $0xb8] sm:$0xf0]  ;;  %v1776_v33 = vor.u32 %v2000_v26, %v1773_v27 }
   0x9   :  { %290 = vmatpush.bf16.msra.mxu1 %v1792_v17  ;;  %319 = vmatpush.bf16.msra.mxu2 %v1796_v21  ;;  %v1780_v34 = vor.u32 %v2003_v30, %v1779_v28  ;;  %v1755_v35 = vld [vmem:[%s3096_s1 + $0x80] sm:$0xf]  ;;  %v1998_v36 = vld [vmem:[%s3096_s1 + $0x8c] sm:$0xf0]  ;;  %v1996_v37 = vld [vmem:[%s3096_s1 + $0x84] sm:$0xf]  ;;  %v1784_v38 = vor.u32 %v2001_v31, %v1781_v32 }
   0xa   :  { %348 = vmatpush.bf16.msra.mxu3 %v1800_v25  ;;  %v1757_v39 = vld [vmem:[%s3096_s1 + $0x90] sm:$0xf0]  ;;  %v1763_v40 = vld [vmem:[%s3096_s1 + $0x88] sm:$0xf]  ;;  %v1999_v41 = vld [vmem:[%s3096_s1 + $0x94] sm:$0xf0]  ;;  %v1756_v44 = vor.u32 %v1998_v36, %v1755_v35 }
   0xb   :  { %v1997_v42 = vld [vmem:[%s3096_s1 + $0x8c] sm:$0xf]  ;;  %v1765_v43 = vld [vmem:[%s3096_s1 + $0x98] sm:$0xf0]  ;;  %v1760_v45 = vor.u32 %v1996_v37, %v1757_v39  ;;  %v1764_v46 = vor.u32 %v1999_v41, %v1763_v40  ;;  %v1739_v47 = vld [vmem:[%s3096_s1 + $0x60] sm:$0xf] }
   0xc   :  { %262 = vmatpush.bf16.msra.mxu0 %v1772_v29  ;;  %v1994_v48 = vld [vmem:[%s3096_s1 + $0x6c] sm:$0xf0]  ;;  %v1992_v49 = vld [vmem:[%s3096_s1 + $0x64] sm:$0xf]  ;;  %v1768_v50 = vor.u32 %v1997_v42, %v1765_v43  ;;  %v1741_v51 = vld [vmem:[%s3096_s1 + $0x70] sm:$0xf0] }
   0xd   :  { %291 = vmatpush.bf16.msra.mxu1 %v1776_v33  ;;  %320 = vmatpush.bf16.msra.mxu2 %v1780_v34  ;;  %v1747_v52 = vld [vmem:[%s3096_s1 + $0x68] sm:$0xf]  ;;  %v1995_v53 = vld [vmem:[%s3096_s1 + $0x74] sm:$0xf0]  ;;  %v1993_v54 = vld [vmem:[%s3096_s1 + $0x6c] sm:$0xf]  ;;  %v1740_v56 = vor.u32 %v1994_v48, %v1739_v47  ;;  %v1744_v57 = vor.u32 %v1992_v49, %v1741_v51 }
   0xe   :  { %349 = vmatpush.bf16.msra.mxu3 %v1784_v38  ;;  %v1749_v55 = vld [vmem:[%s3096_s1 + $0x78] sm:$0xf0]  ;;  %v1748_v58 = vor.u32 %v1995_v53, %v1747_v52  ;;  %v1723_v59 = vld [vmem:[%s3096_s1 + $0x40] sm:$0xf]  ;;  %v1990_v60 = vld [vmem:[%s3096_s1 + $0x4c] sm:$0xf0] }
   0xf   :  { %v1988_v61 = vld [vmem:[%s3096_s1 + $0x44] sm:$0xf]  ;;  %v1752_v62 = vor.u32 %v1993_v54, %v1749_v55  ;;  %v1725_v63 = vld [vmem:[%s3096_s1 + $0x50] sm:$0xf0]  ;;  %v1731_v0 = vld [vmem:[%s3096_s1 + $0x48] sm:$0xf]  ;;  %v1724_v4 = vor.u32 %v1990_v60, %v1723_v59 }
  0x10   :  { %263 = vmatpush.bf16.msra.mxu0 %v1756_v44  ;;  %v1991_v1 = vld [vmem:[%s3096_s1 + $0x54] sm:$0xf0]  ;;  %v1989_v2 = vld [vmem:[%s3096_s1 + $0x4c] sm:$0xf]  ;;  %v1733_v3 = vld [vmem:[%s3096_s1 + $0x58] sm:$0xf0]  ;;  %v1728_v5 = vor.u32 %v1988_v61, %v1725_v63 }
  0x11   :  { %292 = vmatpush.bf16.msra.mxu1 %v1760_v45  ;;  %321 = vmatpush.bf16.msra.mxu2 %v1764_v46  ;;  %v1732_v6 = vor.u32 %v1991_v1, %v1731_v0  ;;  %v1707_v7 = vld [vmem:[%s3096_s1 + $0x20] sm:$0xf]  ;;  %v1986_v8 = vld [vmem:[%s3096_s1 + $0x2c] sm:$0xf0]  ;;  %v1984_v9 = vld [vmem:[%s3096_s1 + $0x24] sm:$0xf]  ;;  %v1736_v10 = vor.u32 %v1989_v2, %v1733_v3 }
  0x12   :  { %350 = vmatpush.bf16.msra.mxu3 %v1768_v50  ;;  %v1709_v11 = vld [vmem:[%s3096_s1 + $0x30] sm:$0xf0]  ;;  %v1715_v12 = vld [vmem:[%s3096_s1 + $0x28] sm:$0xf]  ;;  %v1987_v13 = vld [vmem:[%s3096_s1 + $0x34] sm:$0xf0]  ;;  %v1708_v16 = vor.u32 %v1986_v8, %v1707_v7 }
  0x13   :  { %v1985_v14 = vld [vmem:[%s3096_s1 + $0x2c] sm:$0xf]  ;;  %v1717_v15 = vld [vmem:[%s3096_s1 + $0x38] sm:$0xf0]  ;;  %v1691_v17 = vld [vmem:[%s3096_s1] sm:$0xf]  ;;  %v1712_v18 = vor.u32 %v1984_v9, %v1709_v11  ;;  %v1716_v19 = vor.u32 %v1987_v13, %v1715_v12 }
  0x14   :  { %264 = vmatpush.bf16.msra.mxu0 %v1740_v56  ;;  %v1982_v20 = vld [vmem:[%s3096_s1 + $0xc] sm:$0xf0]  ;;  %v1980_v21 = vld [vmem:[%s3096_s1 + $0x4] sm:$0xf]  ;;  %v1693_v22 = vld [vmem:[%s3096_s1 + $0x10] sm:$0xf0]  ;;  %v1720_v23 = vor.u32 %v1985_v14, %v1717_v15 }
  0x15   :  { %293 = vmatpush.bf16.msra.mxu1 %v1744_v57  ;;  %322 = vmatpush.bf16.msra.mxu2 %v1748_v58  ;;  %v1699_v24 = vld [vmem:[%s3096_s1 + $0x8] sm:$0xf]  ;;  %v1983_v25 = vld [vmem:[%s3096_s1 + $0x14] sm:$0xf0]  ;;  %v1981_v26 = vld [vmem:[%s3096_s1 + $0xc] sm:$0xf]  ;;  %v1692_v30 = vor.u32 %v1982_v20, %v1691_v17  ;;  %v1696_v33 = vor.u32 %v1980_v21, %v1693_v22 }
  0x16   :  { %351 = vmatpush.bf16.msra.mxu3 %v1752_v62  ;;  %v1701_v27 = vld [vmem:[%s3096_s1 + $0x18] sm:$0xf0]  ;;  %v1931_v28 = vld [vmem:[%s3097_s2 + $0xe0] sm:$0xf]  ;;  %v2042_v29 = vld [vmem:[%s3097_s2 + $0xec] sm:$0xf0]  ;;  %v1700_v34 = vor.u32 %v1983_v25, %v1699_v24 }
  0x17   :  { %v2040_v31 = vld [vmem:[%s3097_s2 + $0xe4] sm:$0xf]  ;;  %v1933_v32 = vld [vmem:[%s3097_s2 + $0xf0] sm:$0xf0]  ;;  %v1704_v36 = vor.u32 %v1981_v26, %v1701_v27  ;;  %v2416_v37 = vor.u32 %v2042_v29, %v1931_v28  ;;  %v2041_v38 = vld [vmem:[%s3097_s2 + $0xec] sm:$0xf] }
  0x18   :  { %265 = vmatpush.bf16.msra.mxu0 %v1724_v4  ;;  %v1976_v35 = vld [vmem:[%s3098_s0] sm:$0xff]  ;;  %v1939_v39 = vld [vmem:[%s3097_s2 + $0xe8] sm:$0xf]  ;;  %v2043_v40 = vld [vmem:[%s3097_s2 + $0xf4] sm:$0xf0]  ;;  %v2427_v41 = vor.u32 %v2040_v31, %v1933_v32 }
  0x19   :  { %294 = vmatpush.bf16.msra.mxu1 %v1728_v5  ;;  %323 = vmatpush.bf16.msra.mxu2 %v1732_v6  ;;  %v1941_v42 = vld [vmem:[%s3097_s2 + $0xf8] sm:$0xf0]  ;;  %v1915_v43 = vld [vmem:[%s3097_s2 + $0xc0] sm:$0xf]  ;;  %v2038_v44 = vld [vmem:[%s3097_s2 + $0xcc] sm:$0xf0]  ;;  %v2444_v47 = vor.u32 %v2043_v40, %v1939_v39 }
  0x1a   :  { %352 = vmatpush.bf16.msra.mxu3 %v1736_v10  ;;  %v2036_v45 = vld [vmem:[%s3097_s2 + $0xc4] sm:$0xf]  ;;  %v1917_v46 = vld [vmem:[%s3097_s2 + $0xd0] sm:$0xf0]  ;;  %v2447_v48 = vor.u32 %v2041_v38, %v1941_v42  ;;  %v2449_v49 = vor.u32 %v2038_v44, %v1915_v43  ;;  %v2037_v50 = vld [vmem:[%s3097_s2 + $0xcc] sm:$0xf] }
  0x1b   :  { %v1923_v51 = vld [vmem:[%s3097_s2 + $0xc8] sm:$0xf]  ;;  %v2039_v52 = vld [vmem:[%s3097_s2 + $0xd4] sm:$0xf0]  ;;  %v2461_v53 = vor.u32 %v2036_v45, %v1917_v46  ;;  %v1925_v54 = vld [vmem:[%s3097_s2 + $0xd8] sm:$0xf0] }
  0x1c   :  { %266 = vmatpush.bf16.msra.mxu0 %v1708_v16  ;;  %v1899_v55 = vld [vmem:[%s3097_s2 + $0xa0] sm:$0xf]  ;;  %v2034_v56 = vld [vmem:[%s3097_s2 + $0xac] sm:$0xf0]  ;;  %v2032_v57 = vld [vmem:[%s3097_s2 + $0xa4] sm:$0xf]  ;;  %v2479_v59 = vor.u32 %v2039_v52, %v1923_v51  ;;  %v2483_v60 = vor.u32 %v2037_v50, %v1925_v54 }
  0x1d   :  { %295 = vmatpush.bf16.msra.mxu1 %v1712_v18  ;;  %324 = vmatpush.bf16.msra.mxu2 %v1716_v19  ;;  %v1901_v58 = vld [vmem:[%s3097_s2 + $0xb0] sm:$0xf0]  ;;  %v2485_v61 = vor.u32 %v2034_v56, %v1899_v55  ;;  %v2033_v62 = vld [vmem:[%s3097_s2 + $0xac] sm:$0xf]  ;;  %v1907_v63 = vld [vmem:[%s3097_s2 + $0xa8] sm:$0xf] }
  0x1e   :  { %353 = vmatpush.bf16.msra.mxu3 %v1720_v23  ;;  %v2035_v0 = vld [vmem:[%s3097_s2 + $0xb4] sm:$0xf0]  ;;  %v2497_v1 = vor.u32 %v2032_v57, %v1901_v58  ;;  %v1909_v2 = vld [vmem:[%s3097_s2 + $0xb8] sm:$0xf0]  ;;  %v1883_v3 = vld [vmem:[%s3097_s2 + $0x80] sm:$0xf] }
  0x1f   :  { %v2030_v4 = vld [vmem:[%s3097_s2 + $0x8c] sm:$0xf0]  ;;  %v2028_v5 = vld [vmem:[%s3097_s2 + $0x84] sm:$0xf]  ;;  %v1885_v6 = vld [vmem:[%s3097_s2 + $0x90] sm:$0xf0]  ;;  %v2515_v7 = vor.u32 %v2035_v0, %v1907_v63  ;;  %v2519_v8 = vor.u32 %v2033_v62, %v1909_v2 }
  0x20   :  { %267 = vmatpush.bf16.msra.mxu0 %v1692_v30  ;;  %v2521_v9 = vor.u32 %v2030_v4, %v1883_v3  ;;  %v2029_v10 = vld [vmem:[%s3097_s2 + $0x8c] sm:$0xf]  ;;  %v1891_v11 = vld [vmem:[%s3097_s2 + $0x88] sm:$0xf]  ;;  %v2031_v12 = vld [vmem:[%s3097_s2 + $0x94] sm:$0xf0]  ;;  %v2533_v13 = vor.u32 %v2028_v5, %v1885_v6 }
  0x21   :  { %296 = vmatpush.bf16.msra.mxu1 %v1696_v33  ;;  %325 = vmatpush.bf16.msra.mxu2 %v1700_v34  ;;  %v1893_v14 = vld [vmem:[%s3097_s2 + $0x98] sm:$0xf0]  ;;  %v1867_v15 = vld [vmem:[%s3097_s2 + $0x60] sm:$0xf]  ;;  %v2026_v16 = vld [vmem:[%s3097_s2 + $0x6c] sm:$0xf0]  ;;  %v2554_v20 = vor.u32 %v2031_v12, %v1891_v11 }
  0x22   :  { %354 = vmatpush.bf16.msra.mxu3 %v1704_v36  ;;  %v2024_v17 = vld [vmem:[%s3097_s2 + $0x64] sm:$0xf]  ;;  %v1869_v18 = vld [vmem:[%s3097_s2 + $0x70] sm:$0xf0]  ;;  %v1977_v19 = vld [vmem:[%s3098_s0 + $0x8] sm:$0xff]  ;;  %v2558_v21 = vor.u32 %v2029_v10, %v1893_v14  ;;  %v2560_v22 = vor.u32 %v2026_v16, %v1867_v15 }
  0x23   :  { %268 = vmatmul.bf16.vlgmr.msra.gmra.mxu0 %v1976_v35  ;;  %v2025_v23 = vld [vmem:[%s3097_s2 + $0x6c] sm:$0xf]  ;;  %v1875_v24 = vld [vmem:[%s3097_s2 + $0x68] sm:$0xf]  ;;  %v2027_v25 = vld [vmem:[%s3097_s2 + $0x74] sm:$0xf0]  ;;  %v2572_v26 = vor.u32 %v2024_v17, %v1869_v18 }
  0x24   :  { %607 = vmatpush.bf16.msrb.mxu0 %v2416_v37  ;;  %297 = vmatmul.bf16.vlgmr.msra.gmra.mxu1 %v1976_v35  ;;  %v1877_v27 = vld [vmem:[%s3097_s2 + $0x78] sm:$0xf0]  ;;  %v1851_v28 = vld [vmem:[%s3097_s2 + $0x40] sm:$0xf]  ;;  %v2022_v29 = vld [vmem:[%s3097_s2 + $0x4c] sm:$0xf0]  ;;  %v2590_v32 = vor.u32 %v2027_v25, %v1875_v24 }
  0x25   :  { %620 = vmatpush.bf16.msrb.mxu1 %v2427_v41  ;;  %326 = vmatmul.bf16.vlgmr.msra.gmra.mxu2 %v1976_v35  ;;  %v2020_v30 = vld [vmem:[%s3097_s2 + $0x44] sm:$0xf]  ;;  %v1853_v31 = vld [vmem:[%s3097_s2 + $0x50] sm:$0xf0]  ;;  %v2594_v33 = vor.u32 %v2025_v23, %v1877_v27  ;;  %v2596_v34 = vor.u32 %v2022_v29, %v1851_v28  ;;  %v2021_v36 = vld [vmem:[%s3097_s2 + $0x4c] sm:$0xf] }
  0x26   :  { %355 = vmatmul.bf16.vlgmr.msra.gmra.mxu3 %v1976_v35  ;;  %633 = vmatpush.bf16.msrb.mxu2 %v2444_v47  ;;  %v2599_v35 = vor.u32 %v2020_v30, %v1853_v31  ;;  %v1861_v38 = vld [vmem:[%s3097_s2 + $0x58] sm:$0xf0]  ;;  %v1835_v39 = vld [vmem:[%s3097_s2 + $0x20] sm:$0xf]  ;;  %v2018_v40 = vld [vmem:[%s3097_s2 + $0x2c] sm:$0xf0] }
  0x27   :  { %646 = vmatpush.bf16.msrb.mxu3 %v2447_v48  ;;  %v2016_v42 = vld [vmem:[%s3097_s2 + $0x24] sm:$0xf]  ;;  %v2619_v43 = vor.u32 %v2021_v36, %v1861_v38  ;;  %v2621_v44 = vor.u32 %v2018_v40, %v1835_v39  ;;  %v1837_v45 = vld [vmem:[%s3097_s2 + $0x30] sm:$0xf0]  ;;  %v1859_v46 = vld [vmem:[%s3097_s2 + $0x48] sm:$0xf] }
  0x28   :  { %608 = vmatpush.bf16.msrb.mxu0 %v2449_v49  ;;  %v2023_v50 = vld [vmem:[%s3097_s2 + $0x54] sm:$0xf0]  ;;  %v2633_v51 = vor.u32 %v2016_v42, %v1837_v45  ;;  %v2017_v54 = vld [vmem:[%s3097_s2 + $0x2c] sm:$0xf]  ;;  %v1845_v55 = vld [vmem:[%s3097_s2 + $0x38] sm:$0xf0] }
  0x29   :  { %621 = vmatpush.bf16.msrb.mxu1 %v2461_v53  ;;  %v2635_v52 = vor.u32 %v2023_v50, %v1859_v46  ;;  %v1819_v56 = vld [vmem:[%s3097_s2] sm:$0xf]  ;;  %v2014_v57 = vld [vmem:[%s3097_s2 + $0xc] sm:$0xf0]  ;;  %v2012_v58 = vld [vmem:[%s3097_s2 + $0x4] sm:$0xf]  ;;  %v2664_v2 = vor.u32 %v2017_v54, %v1845_v55 }
  0x2a   :  { %634 = vmatpush.bf16.msrb.mxu2 %v2479_v59  ;;  %v1821_v62 = vld [vmem:[%s3097_s2 + $0x10] sm:$0xf0]  ;;  %v1843_v63 = vld [vmem:[%s3097_s2 + $0x28] sm:$0xf]  ;;  %v2019_v0 = vld [vmem:[%s3097_s2 + $0x34] sm:$0xf0]  ;;  %v2666_v3 = vor.u32 %v2014_v57, %v1819_v56 }
  0x2b   :  { %647 = vmatpush.bf16.msrb.mxu3 %v2483_v60  ;;  %v2668_v4 = vor.u32 %v2019_v0, %v1843_v63  ;;  %v1827_v5 = vld [vmem:[%s3097_s2 + $0x8] sm:$0xf]  ;;  %v2015_v6 = vld [vmem:[%s3097_s2 + $0x14] sm:$0xf0]  ;;  %v2677_v10 = vor.u32 %v2012_v58, %v1821_v62  ;;  %v2013_v11 = vld [vmem:[%s3097_s2 + $0xc] sm:$0xf] }
  0x2c   :  { %609 = vmatpush.bf16.msrb.mxu0 %v2485_v61  ;;  %v1829_v12 = vld [vmem:[%s3097_s2 + $0x18] sm:$0xf0]  ;;  %v2686_v14 = vor.u32 %v2015_v6, %v1827_v5  ;;  %v1978_v16 = vld [vmem:[%s3098_s0 + $0x10] sm:$0xff]  ;;  %v2173_v18 = vmov 0.0|0.0   ;;  %v66_v24 = vld [vmem:[%s3099_s3] sm:$0xf] }
  0x2d   :  { %622 = vmatpush.bf16.msrb.mxu1 %v2497_v1  ;;  %v2690_v15 = vor.u32 %v2013_v11, %v1829_v12  ;;  %v1979_v17 = vld [vmem:[%s3098_s0 + $0x18] sm:$0xff]  ;;  %v68_v25 = vperm.slane %v66_v24, 0  ;;  %v69_v28 = vperm.slane %v66_v24, 1  ;;  %v2776_v39 = vperm.slane %v66_v24, 2 }
  0x2e   :  { %635 = vmatpush.bf16.msrb.mxu2 %v2515_v7  ;;  %v2778_v40 = vperm.slane %v66_v24, 3 }
  0x2f   :  { %648 = vmatpush.bf16.msrb.mxu3 %v2519_v8 }
  0x30   :  { %610 = vmatpush.bf16.msrb.mxu0 %v2521_v9 }
  0x31   :  { %623 = vmatpush.bf16.msrb.mxu1 %v2533_v13 }
  0x32   :  { %636 = vmatpush.bf16.msrb.mxu2 %v2554_v20 }
  0x33   :  { %649 = vmatpush.bf16.msrb.mxu3 %v2558_v21  ;;  %273 = vmatmul.bf16.gmra.mxu0 %v1977_v19 }
  0x34   :  { %611 = vmatpush.bf16.msrb.mxu0 %v2560_v22  ;;  %302 = vmatmul.bf16.gmra.mxu1 %v1977_v19 }
  0x35   :  { %624 = vmatpush.bf16.msrb.mxu1 %v2572_v26  ;;  %331 = vmatmul.bf16.gmra.mxu2 %v1977_v19 }
  0x36   :  { %360 = vmatmul.bf16.gmra.mxu3 %v1977_v19  ;;  %637 = vmatpush.bf16.msrb.mxu2 %v2590_v32 }
  0x37   :  { %650 = vmatpush.bf16.msrb.mxu3 %v2594_v33 }
  0x38   :  { %612 = vmatpush.bf16.msrb.mxu0 %v2596_v34 }
  0x39   :  { %625 = vmatpush.bf16.msrb.mxu1 %v2599_v35 }
  0x3a   :  { %638 = vmatpush.bf16.msrb.mxu2 %v2635_v52 }
  0x3b   :  { %651 = vmatpush.bf16.msrb.mxu3 %v2619_v43 }
  0x3c   :  { %613 = vmatpush.bf16.msrb.mxu0 %v2621_v44 }
  0x3d   :  { %626 = vmatpush.bf16.msrb.mxu1 %v2633_v51 }
  0x3e   :  { %639 = vmatpush.bf16.msrb.mxu2 %v2668_v4 }
  0x3f   :  { %652 = vmatpush.bf16.msrb.mxu3 %v2664_v2 }
  0x40   :  { %614 = vmatpush.bf16.msrb.mxu0 %v2666_v3 }
  0x41   :  { %627 = vmatpush.bf16.msrb.mxu1 %v2677_v10 }
  0x42   :  { %640 = vmatpush.bf16.msrb.mxu2 %v2686_v14 }
  0x43   :  { %653 = vmatpush.bf16.msrb.mxu3 %v2690_v15  ;;  %278 = vmatmul.bf16.gmra.mxu0 %v1978_v16 }
  0x44   :  { %738 = vmatpush.bf16.msra.mxu0 %v2416_v37  ;;  %307 = vmatmul.bf16.gmra.mxu1 %v1978_v16 }
  0x45   :  { %751 = vmatpush.bf16.msra.mxu1 %v2427_v41  ;;  %336 = vmatmul.bf16.gmra.mxu2 %v1978_v16 }
  0x46   :  { %764 = vmatpush.bf16.msra.mxu2 %v2444_v47  ;;  %365 = vmatmul.bf16.gmra.mxu3 %v1978_v16 }
  0x47   :  { %777 = vmatpush.bf16.msra.mxu3 %v2447_v48 }
  0x48   :  { %739 = vmatpush.bf16.msra.mxu0 %v2449_v49 }
  0x49   :  { %752 = vmatpush.bf16.msra.mxu1 %v2461_v53 }
  0x4a   :  { %765 = vmatpush.bf16.msra.mxu2 %v2479_v59 }
  0x4b   :  { %778 = vmatpush.bf16.msra.mxu3 %v2483_v60 }
  0x4c   :  { %740 = vmatpush.bf16.msra.mxu0 %v2485_v61 }
  0x4d   :  { %753 = vmatpush.bf16.msra.mxu1 %v2497_v1 }
  0x4e   :  { %766 = vmatpush.bf16.msra.mxu2 %v2515_v7 }
  0x4f   :  { %779 = vmatpush.bf16.msra.mxu3 %v2519_v8 }
  0x50   :  { %741 = vmatpush.bf16.msra.mxu0 %v2521_v9 }
  0x51   :  { %754 = vmatpush.bf16.msra.mxu1 %v2533_v13 }
  0x52   :  { %767 = vmatpush.bf16.msra.mxu2 %v2554_v20 }
  0x53   :  { %780 = vmatpush.bf16.msra.mxu3 %v2558_v21  ;;  %283 = vmatmul.bf16.gmra.mxu0 %v1979_v17 }
  0x54   :  { %742 = vmatpush.bf16.msra.mxu0 %v2560_v22  ;;  %312 = vmatmul.bf16.gmra.mxu1 %v1979_v17 }
  0x55   :  { %755 = vmatpush.bf16.msra.mxu1 %v2572_v26  ;;  %341 = vmatmul.bf16.gmra.mxu2 %v1979_v17 }
  0x56   :  { %768 = vmatpush.bf16.msra.mxu2 %v2590_v32  ;;  %370 = vmatmul.bf16.gmra.mxu3 %v1979_v17 }
  0x57   :  { %781 = vmatpush.bf16.msra.mxu3 %v2594_v33 }
  0x58   :  { %743 = vmatpush.bf16.msra.mxu0 %v2596_v34 }
  0x59   :  { %756 = vmatpush.bf16.msra.mxu1 %v2599_v35 }
  0x5a   :  { %769 = vmatpush.bf16.msra.mxu2 %v2635_v52 }
  0x5b   :  { %782 = vmatpush.bf16.msra.mxu3 %v2619_v43 }
  0x5c   :  { %744 = vmatpush.bf16.msra.mxu0 %v2621_v44 }
  0x5d   :  { %757 = vmatpush.bf16.msra.mxu1 %v2633_v51 }
  0x5e   :  { %770 = vmatpush.bf16.msra.mxu2 %v2668_v4 }
  0x5f   :  { %783 = vmatpush.bf16.msra.mxu3 %v2664_v2 }
  0x60   :  { %745 = vmatpush.bf16.msra.mxu0 %v2666_v3 }
  0x61   :  { %758 = vmatpush.bf16.msra.mxu1 %v2677_v10 }
  0x62   :  { %771 = vmatpush.bf16.msra.mxu2 %v2686_v14 }
  0x63   :  { %784 = vmatpush.bf16.msra.mxu3 %v2690_v15  ;;  %615 = vmatmul.bf16.vlgmr.msrb.gmra.mxu0 %v2173_v18 }
  0x64   :  { %628 = vmatmul.bf16.vlgmr.msrb.gmra.mxu1 %v2173_v18  ;;  %870 = vmatpush.bf16.msrb.mxu0 %v2416_v37 }
  0x65   :  { %641 = vmatmul.bf16.vlgmr.msrb.gmra.mxu2 %v2173_v18  ;;  %883 = vmatpush.bf16.msrb.mxu1 %v2427_v41 }
  0x66   :  { %654 = vmatmul.bf16.vlgmr.msrb.gmra.mxu3 %v2173_v18  ;;  %896 = vmatpush.bf16.msrb.mxu2 %v2444_v47 }
  0x67   :  { %909 = vmatpush.bf16.msrb.mxu3 %v2447_v48 }
  0x68   :  { %871 = vmatpush.bf16.msrb.mxu0 %v2449_v49 }
  0x69   :  { %884 = vmatpush.bf16.msrb.mxu1 %v2461_v53 }
  0x6a   :  { %897 = vmatpush.bf16.msrb.mxu2 %v2479_v59 }
  0x6b   :  { %910 = vmatpush.bf16.msrb.mxu3 %v2483_v60 }
  0x6c   :  { %872 = vmatpush.bf16.msrb.mxu0 %v2485_v61 }
  0x6d   :  { %885 = vmatpush.bf16.msrb.mxu1 %v2497_v1 }
  0x6e   :  { %898 = vmatpush.bf16.msrb.mxu2 %v2515_v7 }
  0x6f   :  { %911 = vmatpush.bf16.msrb.mxu3 %v2519_v8 }
  0x70   :  { %873 = vmatpush.bf16.msrb.mxu0 %v2521_v9 }
  0x71   :  { %886 = vmatpush.bf16.msrb.mxu1 %v2533_v13 }
  0x72   :  { %899 = vmatpush.bf16.msrb.mxu2 %v2554_v20 }
  0x73   :  { %912 = vmatpush.bf16.msrb.mxu3 %v2558_v21 }
  0x74   :  { %874 = vmatpush.bf16.msrb.mxu0 %v2560_v22 }
  0x75   :  { %887 = vmatpush.bf16.msrb.mxu1 %v2572_v26 }
  0x76   :  { %900 = vmatpush.bf16.msrb.mxu2 %v2590_v32 }
  0x77   :  { %913 = vmatpush.bf16.msrb.mxu3 %v2594_v33 }
  0x78   :  { %875 = vmatpush.bf16.msrb.mxu0 %v2596_v34 }
  0x79   :  { %888 = vmatpush.bf16.msrb.mxu1 %v2599_v35 }
  0x7a   :  { %901 = vmatpush.bf16.msrb.mxu2 %v2635_v52 }
  0x7b   :  { %914 = vmatpush.bf16.msrb.mxu3 %v2619_v43 }
  0x7c   :  { %876 = vmatpush.bf16.msrb.mxu0 %v2621_v44 }
  0x7d   :  { %889 = vmatpush.bf16.msrb.mxu1 %v2633_v51 }
  0x7e   :  { %902 = vmatpush.bf16.msrb.mxu2 %v2668_v4 }
  0x7f   :  { %915 = vmatpush.bf16.msrb.mxu3 %v2664_v2 }
  0x80   :  { %877 = vmatpush.bf16.msrb.mxu0 %v2666_v3 }
  0x81   :  { %890 = vmatpush.bf16.msrb.mxu1 %v2677_v10 }
  0x82   :  { %903 = vmatpush.bf16.msrb.mxu2 %v2686_v14 }
  0x83   :  { %916 = vmatpush.bf16.msrb.mxu3 %v2690_v15 }
  0xa0   :  { %v269_v19 = vpop.f32.mrf.mxu0 }
  0xa1   :  { %v298_v23 = vpop.f32.mrf.mxu1 }
  0xa8   :  { %v2768_v27 = vpop.f32.mrf.mxu2  ;;  %v271_v30 = vpop.f32.mrf.mxu0 }
  0xa9   :  { %v2770_v29 = vpop.f32.mrf.mxu3  ;;  %v2772_v31 = vadd.f32 %v271_v30, %v68_v25  ;;  %v300_v36 = vpop.f32.mrf.mxu1 }
  0xaa   :  { %v2774_v38 = vadd.f32 %v300_v36, %v69_v28 }
  0xb0   :  { %v329_v42 = vpop.f32.mrf.mxu2  ;;  %v274_v50 = vpop.f32.mrf.mxu0 }
  0xb1   :  { %v2781_v45 = vadd.f32 %v329_v42, %v2776_v39  ;;  %v358_v46 = vpop.f32.mrf.mxu3  ;;  %v2786_v55 = vadd.f32 %v274_v50, %v68_v25  ;;  %v303_v56 = vpop.f32.mrf.mxu1 }
  0xb2   :  { %v2784_v54 = vadd.f32 %v358_v46, %v2778_v40  ;;  %v2788_v57 = vadd.f32 %v303_v56, %v69_v28 }
  0xb8   :  { %v332_v58 = vpop.f32.mrf.mxu2  ;;  %v276_v0 = vpop.f32.mrf.mxu0 }
  0xb9   :  { %v2791_v62 = vadd.f32 %v332_v58, %v2776_v39  ;;  %v361_v63 = vpop.f32.mrf.mxu3  ;;  %v2796_v6 = vadd.f32 %v276_v0, %v68_v25  ;;  %v305_v11 = vpop.f32.mrf.mxu1 }
  0xba   :  { %v2794_v5 = vadd.f32 %v361_v63, %v2778_v40  ;;  %v2798_v12 = vadd.f32 %v305_v11, %v69_v28 }
  0xbb   :  { %3103 = vst [vmem:[#allocation5_spill] sm:$0xff] %v2791_v62 }
  0xbc   :  { %3104 = vst [vmem:[#allocation6_spill] sm:$0xff] %v2796_v6 }
  0xbd   :  { %3105 = vst [vmem:[#allocation7_spill] sm:$0xff] %v2798_v12 }
  0xc0   :  { %v334_v16 = vpop.f32.mrf.mxu2  ;;  %v279_v24 = vpop.f32.mrf.mxu0 }
  0xc1   :  { %v2801_v17 = vadd.f32 %v334_v16, %v2776_v39  ;;  %v363_v18 = vpop.f32.mrf.mxu3  ;;  %v2806_v36 = vadd.f32 %v279_v24, %v68_v25  ;;  %v308_v42 = vpop.f32.mrf.mxu1 }
  0xc2   :  { %v2804_v30 = vadd.f32 %v363_v18, %v2778_v40  ;;  %v2808_v46 = vadd.f32 %v308_v42, %v69_v28 }
  0xc3   :  { %3106 = vst [vmem:[#allocation8_spill] sm:$0xff] %v2801_v17 }
  0xc4   :  { %3107 = vst [vmem:[#allocation9_spill] sm:$0xff] %v2804_v30 }
  0xc5   :  { %3108 = vst [vmem:[#allocation10_spill] sm:$0xff] %v2806_v36 }
  0xc6   :  { %3109 = vst [vmem:[#allocation11_spill] sm:$0xff] %v2808_v46 }
  0xc8   :  { %v337_v50 = vpop.f32.mrf.mxu2  ;;  %v281_v63 = vpop.f32.mrf.mxu0 }
  0xc9   :  { %v2811_v56 = vadd.f32 %v337_v50, %v2776_v39  ;;  %v366_v58 = vpop.f32.mrf.mxu3  ;;  %v2816_v11 = vadd.f32 %v281_v63, %v68_v25  ;;  %v310_v16 = vpop.f32.mrf.mxu1 }
  0xca   :  { %v2814_v0 = vadd.f32 %v366_v58, %v2778_v40  ;;  %v2818_v17 = vadd.f32 %v310_v16, %v69_v28 }
  0xcb   :  { %3110 = vst [vmem:[#allocation12_spill] sm:$0xff] %v2811_v56 }
  0xcc   :  { %3111 = vst [vmem:[#allocation13_spill] sm:$0xff] %v2814_v0 }
  0xcd   :  { %3112 = vst [vmem:[#allocation14_spill] sm:$0xff] %v2816_v11 }
  0xce   :  { %3113 = vst [vmem:[#allocation15_spill] sm:$0xff] %v2818_v17 }
  0xd0   :  { %v339_v18 = vpop.f32.mrf.mxu2  ;;  %v284_v46 = vpop.f32.mrf.mxu0 }
  0xd1   :  { %v2821_v24 = vadd.f32 %v339_v18, %v2776_v39  ;;  %v368_v42 = vpop.f32.mrf.mxu3  ;;  %v2826_v50 = vadd.f32 %v284_v46, %v68_v25  ;;  %v313_v56 = vpop.f32.mrf.mxu1 }
  0xd2   :  { %v2824_v36 = vadd.f32 %v368_v42, %v2778_v40  ;;  %v2828_v30 = vadd.f32 %v313_v56, %v69_v28  ;;  %v270_v42 = vadd.f32 %v269_v19, %v68_v25  ;;  %v357_v19 = vadd.f32 %v2770_v29, %v2778_v40 }
  0xd3   :  { %3114 = vst [vmem:[#allocation16_spill] sm:$0xff] %v2821_v24 }
  0xd4   :  { %3115 = vst [vmem:[#allocation17_spill] sm:$0xff] %v2824_v36 }
  0xd5   :  { %3116 = vst [vmem:[#allocation18_spill] sm:$0xff] %v2826_v50  ;;  %v299_v50 = vadd.f32 %v298_v23, %v69_v28 }
  0xd6   :  { %3117 = vst [vmem:[#allocation19_spill] sm:$0xff] %v2828_v30 }
  0xd8   :  { %v342_v58 = vpop.f32.mrf.mxu2  ;;  %v286_v17 = vpop.f32.mrf.mxu0 }
  0xd9   :  { %v2831_v63 = vadd.f32 %v342_v58, %v2776_v39  ;;  %v371_v16 = vpop.f32.mrf.mxu3  ;;  %v2836_v18 = vadd.f32 %v286_v17, %v68_v25  ;;  %v315_v24 = vpop.f32.mrf.mxu1 }
  0xda   :  { %v2834_v11 = vadd.f32 %v371_v16, %v2778_v40  ;;  %v2838_v0 = vadd.f32 %v315_v24, %v69_v28 }
  0xdb   :  { %3118 = vst [vmem:[#allocation20_spill] sm:$0xff] %v2831_v63 }
  0xdc   :  { %3119 = vst [vmem:[#allocation21_spill] sm:$0xff] %v2834_v11 }
  0xdd   :  { %3120 = vst [vmem:[#allocation22_spill] sm:$0xff] %v2836_v18 }
  0xde   :  { %3121 = vst [vmem:[#allocation23_spill] sm:$0xff] %v2838_v0 }
  0xe0   :  { %v344_v46 = vpop.f32.mrf.mxu2  ;;  %v616_v36 = vpop.f32.mrf.mxu0 }
  0xe1   :  { %v2841_v56 = vadd.f32 %v344_v46, %v2776_v39  ;;  %v373_v30 = vpop.f32.mrf.mxu3  ;;  %v659_v63 = vadd.f32 %v616_v36, %v270_v42  ;;  %v629_v12 = vpop.f32.mrf.mxu1 }
  0xe2   :  { %v2844_v58 = vadd.f32 %v373_v30, %v2778_v40  ;;  %v660_v16 = vadd.f32 %v629_v12, %v299_v50 }
  0xe3   :  { %3122 = vst [vmem:[#allocation24_spill] sm:$0xff] %v2841_v56  ;;  %v1945_v11 = vmul.f32 -1.442695, %v659_v63 }
  0xe4   :  { %3123 = vst [vmem:[#allocation25_spill] sm:$0xff] %v2844_v58  ;;  %v1946_v17 = vmul.f32 -1.442695, %v660_v16 }
  0xe5   :  { %2045 = vpow2.f32 %v1945_v11  ;;  %v328_v11 = vadd.f32 %v2768_v27, %v2776_v39 }
  0xe6   :  { %2047 = vpow2.f32 %v1946_v17 }
  0xe8   :  { %v642_v25 = vpop.f32.mrf.mxu2  ;;  %v618_v28 = vpop.f32.mrf.mxu0 }
  0xe9   :  { %v655_v23 = vpop.f32.mrf.mxu3  ;;  %v631_v46 = vpop.f32.mrf.mxu1  ;;  %v661_v40 = vadd.f32 %v642_v25, %v328_v11 }
  0xea   :  { %v662_v24 = vadd.f32 %v655_v23, %v357_v19 }
  0xeb   :  { %v2046_v56 = vpop.eup %2045 }
  0xec   :  { %v1947_v0 = vmul.f32 -1.442695, %v662_v24  ;;  %v2048_v18 = vpop.eup %2047  ;;  %v666_v30 = vadd.f32 1.0, %v2046_v56 }
  0xed   :  { %v685_v58 = vadd.f32 1.0, %v2048_v18 }
  0xee   :  { %2049 = vpow2.f32 %v1947_v0  ;;  %v678_v56 = vand.u32 2147483648, %v666_v30  ;;  %v676_v28 = vand.u32 2147483647, %v666_v30  ;;  %vm672_vm2 = vweird.f32 %v666_v30 }
  0xef   :  { %2051 = vrcp.f32 %v666_v30  ;;  %v697_v0 = vand.u32 2147483648, %v685_v58  ;;  %v695_v46 = vand.u32 2147483647, %v685_v58  ;;  %vm691_vm3 = vweird.f32 %v685_v58 }
  0xf0   :  { %2053 = vrcp.f32 %v685_v58  ;;  %v644_v12 = vpop.f32.mrf.mxu2  ;;  %v679_v25 = vor.u32 1.1754944e-38, %v678_v56  ;;  %vm677_vm5 = vcmp.eq.f32.partialorder %v676_v28, 8.507059e+37 }
  0xf1   :  { %v657_v36 = vpop.f32.mrf.mxu3  ;;  %vm696_vm7 = vcmp.eq.f32.partialorder %v695_v46, 8.507059e+37 }
  0xf2   :  { %v698_v36 = vor.u32 1.1754944e-38, %v697_v0 }
  0xf4   :  { %v2050_v50 = vpop.eup %2049 }
  0xf5   :  { %v2052_v29 = vpop.eup %2051  ;;  %v705_v63 = vadd.f32 1.0, %v2050_v50 }
  0xf6   :  { %v2054_v42 = vpop.eup %2053  ;;  %v668_v16 = vmul.f32 %v2052_v29, %v666_v30  ;;  %vm673_vm0 = vweird.f32 %v2052_v29 }
  0xf7   :  { %v687_v17 = vmul.f32 %v2054_v42, %v685_v58  ;;  %2055 = vrcp.f32 %v705_v63  ;;  %vm692_vm1 = vweird.f32 %v2054_v42  ;;  %vm674_vm4 = vmor %vm672_vm2, %vm673_vm0  ;;  %v717_v56 = vand.u32 2147483648, %v705_v63 }
  0xf8   :  { %v669_v19 = vsub.f32 1.0, %v668_v16  ;;  %2057 = vtanh.f32 %v661_v40  ;;  %vm693_vm6 = vmor %vm691_vm3, %vm692_vm1  ;;  %vm711_vm9 = vweird.f32 %v705_v63 }
  0xf9   :  { %v688_v23 = vsub.f32 1.0, %v687_v17  ;;  %v718_v28 = vor.u32 1.1754944e-38, %v717_v56 }
  0xfa   :  { %v670_v18 = vmul.f32 %v2052_v29, %v669_v19 }
  0xfb   :  { %v689_v24 = vmul.f32 %v2054_v42, %v688_v23 }
  0xfc   :  { %v671_v27 = vadd.f32 %v2052_v29, %v670_v18 }
  0xfd   :  { %v2056_v39 = vpop.eup %2055  ;;  %v690_v12 = vadd.f32 %v2054_v42, %v689_v24 }
  0xfe   :  { %v675_v11 = vsel %vm674_vm4, %v2052_v29, %v671_v27  ;;  %v707_v50 = vmul.f32 %v2056_v39, %v705_v63  ;;  %v2058_v40 = vpop.eup %2057  ;;  %vm712_vm8 = vweird.f32 %v2056_v39  ;;  %v715_v29 = vand.u32 2147483647, %v705_v63 }
  0xff   :  { %v680_v16 = vsel %vm677_vm5, %v679_v25, %v675_v11  ;;  %v694_v17 = vsel %vm693_vm6, %v2054_v42, %v690_v12  ;;  %vm713_vm10 = vmor %vm711_vm9, %vm712_vm8 }
 0x100   :  { %v699_v19 = vsel %vm696_vm7, %v698_v36, %v694_v17  ;;  %v722_v23 = vmul.f32 %v2058_v40, %v680_v16  ;;  %v708_v6 = vsub.f32 1.0, %v707_v50  ;;  %vm716_vm11 = vcmp.eq.f32.partialorder %v715_v29, 8.507059e+37 }
 0x101   :  { %v721_v62 = vmul.f32 0.0, %v699_v19 }
 0x102   :  { %v709_v18 = vmul.f32 %v2056_v39, %v708_v6 }
 0x103   :  { %v2850_v30 = vadd.f32 %v722_v23, %v721_v62 }
 0x104   :  { %v710_v58 = vadd.f32 %v2056_v39, %v709_v18 }
 0x105   :  { %2059 = vtanh.f32 %v2850_v30 }
 0x106   :  { %v714_v0 = vsel %vm713_vm10, %v2056_v39, %v710_v58 }
 0x107   :  { %v719_v24 = vsel %vm716_vm11, %v718_v28, %v714_v0 }
 0x10b   :  { %v2060_v42 = vpop.eup %2059 }
 0x10c   :  { %v725_v46 = vmul.f32 %v2060_v42, %v719_v24 }
 0x10e   :  { %v728_v27 = vpack.c.bf16 %v725_v46, %v725_v46 }
 0x110   :  { %729 = vst [vmem:[%s3100_s4] sm:$0xf] %v728_v27  ;;  %746 = vmatmul.bf16.vlgmr.msra.gmra.mxu0 %v728_v27  ;;  %759 = vmatmul.bf16.vlgmr.msra.gmra.mxu1 %v728_v27 }
 0x111   :  { %772 = vmatmul.bf16.vlgmr.msra.gmra.mxu2 %v728_v27  ;;  %785 = vmatmul.bf16.vlgmr.msra.gmra.mxu3 %v728_v27 }
 0x112   :  { %1002 = vmatpush.bf16.msra.mxu0 %v2416_v37  ;;  %1015 = vmatpush.bf16.msra.mxu1 %v2427_v41 }
 0x113   :  { %1028 = vmatpush.bf16.msra.mxu2 %v2444_v47  ;;  %1041 = vmatpush.bf16.msra.mxu3 %v2447_v48 }
 0x116   :  { %1003 = vmatpush.bf16.msra.mxu0 %v2449_v49  ;;  %1016 = vmatpush.bf16.msra.mxu1 %v2461_v53 }
 0x117   :  { %1029 = vmatpush.bf16.msra.mxu2 %v2479_v59  ;;  %1042 = vmatpush.bf16.msra.mxu3 %v2483_v60 }
 0x11a   :  { %1004 = vmatpush.bf16.msra.mxu0 %v2485_v61  ;;  %1017 = vmatpush.bf16.msra.mxu1 %v2497_v1 }
 0x11b   :  { %1030 = vmatpush.bf16.msra.mxu2 %v2515_v7  ;;  %1043 = vmatpush.bf16.msra.mxu3 %v2519_v8 }
 0x11e   :  { %1005 = vmatpush.bf16.msra.mxu0 %v2521_v9  ;;  %1018 = vmatpush.bf16.msra.mxu1 %v2533_v13 }
 0x11f   :  { %1031 = vmatpush.bf16.msra.mxu2 %v2554_v20  ;;  %1044 = vmatpush.bf16.msra.mxu3 %v2558_v21 }
 0x122   :  { %1006 = vmatpush.bf16.msra.mxu0 %v2560_v22  ;;  %1019 = vmatpush.bf16.msra.mxu1 %v2572_v26 }
 0x123   :  { %1032 = vmatpush.bf16.msra.mxu2 %v2590_v32  ;;  %1045 = vmatpush.bf16.msra.mxu3 %v2594_v33 }
 0x126   :  { %1007 = vmatpush.bf16.msra.mxu0 %v2596_v34  ;;  %1020 = vmatpush.bf16.msra.mxu1 %v2599_v35 }
 0x127   :  { %1033 = vmatpush.bf16.msra.mxu2 %v2635_v52  ;;  %1046 = vmatpush.bf16.msra.mxu3 %v2619_v43 }
 0x12a   :  { %1008 = vmatpush.bf16.msra.mxu0 %v2621_v44  ;;  %1021 = vmatpush.bf16.msra.mxu1 %v2633_v51 }
 0x12b   :  { %1034 = vmatpush.bf16.msra.mxu2 %v2668_v4  ;;  %1047 = vmatpush.bf16.msra.mxu3 %v2664_v2 }
 0x12e   :  { %1009 = vmatpush.bf16.msra.mxu0 %v2666_v3  ;;  %1022 = vmatpush.bf16.msra.mxu1 %v2677_v10 }
 0x12f   :  { %1035 = vmatpush.bf16.msra.mxu2 %v2686_v14  ;;  %1048 = vmatpush.bf16.msra.mxu3 %v2690_v15 }
 0x18d   :  { %v747_v62 = vpop.f32.mrf.mxu0  ;;  %v760_v6 = vpop.f32.mrf.mxu1 }
 0x18e   :  { %v790_v63 = vadd.f32 %v747_v62, %v2772_v31  ;;  %v791_v39 = vadd.f32 %v760_v6, %v2774_v38 }
 0x190   :  { %v1948_v25 = vmul.f32 -1.442695, %v790_v63  ;;  %v1949_v12 = vmul.f32 -1.442695, %v791_v39 }
 0x192   :  { %2061 = vpow2.f32 %v1948_v25 }
 0x193   :  { %2063 = vpow2.f32 %v1949_v12 }
 0x194   :  { %v773_v36 = vpop.f32.mrf.mxu2  ;;  %v786_v11 = vpop.f32.mrf.mxu3 }
 0x195   :  { %v793_v50 = vadd.f32 %v786_v11, %v2784_v54  ;;  %v749_v40 = vpop.f32.mrf.mxu0  ;;  %v762_v16 = vpop.f32.mrf.mxu1  ;;  %v792_v28 = vadd.f32 %v773_v36, %v2781_v45 }
 0x197   :  { %v1950_v17 = vmul.f32 -1.442695, %v793_v50 }
 0x198   :  { %v2062_v19 = vpop.eup %2061 }
 0x199   :  { %v2064_v23 = vpop.eup %2063  ;;  %v797_v18 = vadd.f32 1.0, %v2062_v19  ;;  %2065 = vpow2.f32 %v1950_v17 }
 0x19a   :  { %v816_v58 = vadd.f32 1.0, %v2064_v23 }
 0x19b   :  { %2067 = vrcp.f32 %v797_v18  ;;  %v809_v62 = vand.u32 2147483648, %v797_v18  ;;  %v807_v39 = vand.u32 2147483647, %v797_v18  ;;  %vm803_vm14 = vweird.f32 %v797_v18 }
 0x19c   :  { %2069 = vrcp.f32 %v816_v58  ;;  %v775_v31 = vpop.f32.mrf.mxu2  ;;  %v788_v38 = vpop.f32.mrf.mxu3  ;;  %v828_v6 = vand.u32 2147483648, %v816_v58  ;;  %v826_v12 = vand.u32 2147483647, %v816_v58  ;;  %vm822_vm15 = vweird.f32 %v816_v58 }
 0x19d   :  { %v810_v45 = vor.u32 1.1754944e-38, %v809_v62  ;;  %vm808_vm2 = vcmp.eq.f32.partialorder %v807_v39, 8.507059e+37 }
 0x19e   :  { %v829_v16 = vor.u32 1.1754944e-38, %v828_v6  ;;  %vm827_vm3 = vcmp.eq.f32.partialorder %v826_v12, 8.507059e+37 }
 0x19f   :  { %v2066_v56 = vpop.eup %2065 }
 0x1a0   :  { %v836_v29 = vadd.f32 1.0, %v2066_v56 }
 0x1a1   :  { %v2068_v0 = vpop.eup %2067 }
 0x1a2   :  { %v2070_v42 = vpop.eup %2069  ;;  %v799_v24 = vmul.f32 %v2068_v0, %v797_v18  ;;  %2071 = vrcp.f32 %v836_v29  ;;  %vm804_vm12 = vweird.f32 %v2068_v0  ;;  %vm842_vm5 = vweird.f32 %v836_v29 }
 0x1a3   :  { %v818_v54 = vmul.f32 %v2070_v42, %v816_v58  ;;  %2073 = vtanh.f32 %v792_v28  ;;  %vm823_vm13 = vweird.f32 %v2070_v42  ;;  %vm805_vm0 = vmor %vm803_vm14, %vm804_vm12 }
 0x1a4   :  { %v800_v46 = vsub.f32 1.0, %v799_v24  ;;  %vm824_vm1 = vmor %vm822_vm15, %vm823_vm13 }
 0x1a5   :  { %v819_v27 = vsub.f32 1.0, %v818_v54 }
 0x1a6   :  { %v801_v63 = vmul.f32 %v2068_v0, %v800_v46  ;;  %v848_v46 = vand.u32 2147483648, %v836_v29 }
 0x1a7   :  { %v820_v25 = vmul.f32 %v2070_v42, %v819_v27 }
 0x1a8   :  { %v2072_v11 = vpop.eup %2071  ;;  %v802_v50 = vadd.f32 %v2068_v0, %v801_v63  ;;  %v849_v62 = vor.u32 1.1754944e-38, %v848_v46 }
 0x1a9   :  { %v821_v36 = vadd.f32 %v2070_v42, %v820_v25  ;;  %v838_v40 = vmul.f32 %v2072_v11, %v836_v29  ;;  %v2074_v19 = vpop.eup %2073  ;;  %vm843_vm4 = vweird.f32 %v2072_v11 }
 0x1aa   :  { %v806_v17 = vsel %vm805_vm0, %v2068_v0, %v802_v50  ;;  %v846_v0 = vand.u32 2147483647, %v836_v29  ;;  %vm844_vm6 = vmor %vm842_vm5, %vm843_vm4 }
 0x1ab   :  { %v811_v23 = vsel %vm808_vm2, %v810_v45, %v806_v17  ;;  %v825_v31 = vsel %vm824_vm1, %v2070_v42, %v821_v36  ;;  %v839_v38 = vsub.f32 1.0, %v838_v40 }
 0x1ac   :  { %v830_v56 = vsel %vm827_vm3, %v829_v16, %v825_v31  ;;  %v853_v28 = vmul.f32 %v2074_v19, %v811_v23  ;;  %vm847_vm7 = vcmp.eq.f32.partialorder %v846_v0, 8.507059e+37 }
 0x1ad   :  { %v852_v24 = vmul.f32 %v830_v56, %v2850_v30  ;;  %v840_v54 = vmul.f32 %v2072_v11, %v839_v38 }
 0x1af   :  { %v2893_v18 = vadd.f32 %v853_v28, %v852_v24  ;;  %v841_v58 = vadd.f32 %v2072_v11, %v840_v54 }
 0x1b1   :  { %2075 = vtanh.f32 %v2893_v18  ;;  %v845_v27 = vsel %vm844_vm6, %v2072_v11, %v841_v58  ;;  %v3124_v58 = vld [vmem:[#allocation5_spill] sm:$0xff] }
 0x1b2   :  { %v850_v6 = vsel %vm847_vm7, %v849_v62, %v845_v27 }
 0x1b7   :  { %v2076_v42 = vpop.eup %2075 }
 0x1b8   :  { %v856_v63 = vmul.f32 %v2076_v42, %v850_v6 }
 0x1ba   :  { %v859_v39 = vpack.c.bf16 %v856_v63, %v856_v63 }
 0x1bc   :  { %1951 = vst [vmem:[%s3100_s4 + $0x4] sm:$0xf] %v859_v39  ;;  %878 = vmatmul.bf16.vlgmr.msrb.gmra.mxu0 %v859_v39  ;;  %891 = vmatmul.bf16.vlgmr.msrb.gmra.mxu1 %v859_v39 }
 0x1bd   :  { %904 = vmatmul.bf16.vlgmr.msrb.gmra.mxu2 %v859_v39  ;;  %917 = vmatmul.bf16.vlgmr.msrb.gmra.mxu3 %v859_v39 }
 0x1be   :  { %1134 = vmatpush.bf16.msrb.mxu0 %v2416_v37  ;;  %1147 = vmatpush.bf16.msrb.mxu1 %v2427_v41 }
 0x1bf   :  { %1160 = vmatpush.bf16.msrb.mxu2 %v2444_v47  ;;  %1173 = vmatpush.bf16.msrb.mxu3 %v2447_v48 }
 0x1c2   :  { %1135 = vmatpush.bf16.msrb.mxu0 %v2449_v49  ;;  %1148 = vmatpush.bf16.msrb.mxu1 %v2461_v53 }
 0x1c3   :  { %1161 = vmatpush.bf16.msrb.mxu2 %v2479_v59  ;;  %1174 = vmatpush.bf16.msrb.mxu3 %v2483_v60 }
 0x1c6   :  { %1136 = vmatpush.bf16.msrb.mxu0 %v2485_v61  ;;  %1149 = vmatpush.bf16.msrb.mxu1 %v2497_v1 }
 0x1c7   :  { %1162 = vmatpush.bf16.msrb.mxu2 %v2515_v7  ;;  %1175 = vmatpush.bf16.msrb.mxu3 %v2519_v8 }
 0x1ca   :  { %1137 = vmatpush.bf16.msrb.mxu0 %v2521_v9  ;;  %1150 = vmatpush.bf16.msrb.mxu1 %v2533_v13 }
 0x1cb   :  { %1163 = vmatpush.bf16.msrb.mxu2 %v2554_v20  ;;  %1176 = vmatpush.bf16.msrb.mxu3 %v2558_v21 }
 0x1ce   :  { %1138 = vmatpush.bf16.msrb.mxu0 %v2560_v22  ;;  %1151 = vmatpush.bf16.msrb.mxu1 %v2572_v26 }
 0x1cf   :  { %1164 = vmatpush.bf16.msrb.mxu2 %v2590_v32  ;;  %1177 = vmatpush.bf16.msrb.mxu3 %v2594_v33 }
 0x1d2   :  { %1139 = vmatpush.bf16.msrb.mxu0 %v2596_v34  ;;  %1152 = vmatpush.bf16.msrb.mxu1 %v2599_v35 }
 0x1d3   :  { %1165 = vmatpush.bf16.msrb.mxu2 %v2635_v52  ;;  %1178 = vmatpush.bf16.msrb.mxu3 %v2619_v43 }
 0x1d6   :  { %1140 = vmatpush.bf16.msrb.mxu0 %v2621_v44  ;;  %1153 = vmatpush.bf16.msrb.mxu1 %v2633_v51 }
 0x1d7   :  { %1166 = vmatpush.bf16.msrb.mxu2 %v2668_v4  ;;  %1179 = vmatpush.bf16.msrb.mxu3 %v2664_v2 }
 0x1da   :  { %1141 = vmatpush.bf16.msrb.mxu0 %v2666_v3  ;;  %1154 = vmatpush.bf16.msrb.mxu1 %v2677_v10 }
 0x1db   :  { %1167 = vmatpush.bf16.msrb.mxu2 %v2686_v14  ;;  %1180 = vmatpush.bf16.msrb.mxu3 %v2690_v15 }
 0x239   :  { %v879_v30 = vpop.f32.mrf.mxu0  ;;  %v892_v29 = vpop.f32.mrf.mxu1 }
 0x23a   :  { %v922_v25 = vadd.f32 %v879_v30, %v2786_v55  ;;  %v923_v12 = vadd.f32 %v892_v29, %v2788_v57 }
 0x23c   :  { %v1952_v11 = vmul.f32 -1.442695, %v922_v25  ;;  %v1953_v50 = vmul.f32 -1.442695, %v923_v12 }
 0x23e   :  { %2077 = vpow2.f32 %v1952_v11 }
 0x23f   :  { %2079 = vpow2.f32 %v1953_v50 }
 0x240   :  { %v905_v45 = vpop.f32.mrf.mxu2  ;;  %v918_v36 = vpop.f32.mrf.mxu3 }
 0x241   :  { %v925_v40 = vadd.f32 %v918_v36, %v2794_v5  ;;  %v881_v16 = vpop.f32.mrf.mxu0  ;;  %v894_v17 = vpop.f32.mrf.mxu1  ;;  %v924_v46 = vadd.f32 %v905_v45, %v3124_v58 }
 0x243   :  { %v1954_v19 = vmul.f32 -1.442695, %v925_v40 }
 0x244   :  { %v2078_v23 = vpop.eup %2077 }
 0x245   :  { %v2080_v31 = vpop.eup %2079  ;;  %v929_v38 = vadd.f32 1.0, %v2078_v23  ;;  %2081 = vpow2.f32 %v1954_v19 }
 0x246   :  { %v948_v56 = vadd.f32 1.0, %v2080_v31 }
 0x247   :  { %2083 = vrcp.f32 %v929_v38  ;;  %v941_v6 = vand.u32 2147483648, %v929_v38  ;;  %v939_v30 = vand.u32 2147483647, %v929_v38  ;;  %vm935_vm10 = vweird.f32 %v929_v38 }
 0x248   :  { %2085 = vrcp.f32 %v948_v56  ;;  %v907_v55 = vpop.f32.mrf.mxu2  ;;  %v920_v57 = vpop.f32.mrf.mxu3  ;;  %v960_v63 = vand.u32 2147483648, %v948_v56  ;;  %v958_v25 = vand.u32 2147483647, %v948_v56  ;;  %vm954_vm11 = vweird.f32 %v948_v56 }
 0x249   :  { %v942_v50 = vor.u32 1.1754944e-38, %v941_v6  ;;  %vm940_vm14 = vcmp.eq.f32.partialorder %v939_v30, 8.507059e+37  ;;  %v3126_v30 = vld [vmem:[#allocation7_spill] sm:$0xff] }
 0x24a   :  { %v961_v40 = vor.u32 1.1754944e-38, %v960_v63  ;;  %vm959_vm15 = vcmp.eq.f32.partialorder %v958_v25, 8.507059e+37  ;;  %v3125_v63 = vld [vmem:[#allocation6_spill] sm:$0xff] }
 0x24b   :  { %v2082_v28 = vpop.eup %2081 }
 0x24c   :  { %v968_v24 = vadd.f32 1.0, %v2082_v28 }
 0x24d   :  { %v2084_v54 = vpop.eup %2083 }
 0x24e   :  { %v2086_v0 = vpop.eup %2085  ;;  %v931_v27 = vmul.f32 %v2084_v54, %v929_v38  ;;  %2087 = vrcp.f32 %v968_v24  ;;  %vm936_vm8 = vweird.f32 %v2084_v54  ;;  %vm974_vm1 = vweird.f32 %v968_v24 }
 0x24f   :  { %v950_v5 = vmul.f32 %v2086_v0, %v948_v56  ;;  %2089 = vtanh.f32 %v924_v46  ;;  %vm955_vm9 = vweird.f32 %v2086_v0  ;;  %vm937_vm12 = vmor %vm935_vm10, %vm936_vm8  ;;  %v980_v46 = vand.u32 2147483648, %v968_v24 }
 0x250   :  { %v932_v62 = vsub.f32 1.0, %v931_v27  ;;  %vm956_vm13 = vmor %vm954_vm11, %vm955_vm9 }
 0x251   :  { %v951_v42 = vsub.f32 1.0, %v950_v5  ;;  %v981_v5 = vor.u32 1.1754944e-38, %v980_v46 }
 0x252   :  { %v933_v39 = vmul.f32 %v2084_v54, %v932_v62 }
 0x253   :  { %v952_v29 = vmul.f32 %v2086_v0, %v951_v42 }
 0x254   :  { %v2088_v12 = vpop.eup %2087  ;;  %v934_v11 = vadd.f32 %v2084_v54, %v933_v39 }
 0x255   :  { %v953_v45 = vadd.f32 %v2086_v0, %v952_v29  ;;  %v970_v36 = vmul.f32 %v2088_v12, %v968_v24  ;;  %v2090_v17 = vpop.eup %2089  ;;  %vm975_vm0 = vweird.f32 %v2088_v12 }
 0x256   :  { %v938_v16 = vsel %vm937_vm12, %v2084_v54, %v934_v11  ;;  %v978_v54 = vand.u32 2147483647, %v968_v24  ;;  %vm976_vm2 = vmor %vm974_vm1, %vm975_vm0 }
 0x257   :  { %v943_v19 = vsel %vm940_vm14, %v942_v50, %v938_v16  ;;  %v957_v23 = vsel %vm956_vm13, %v2086_v0, %v953_v45  ;;  %v971_v31 = vsub.f32 1.0, %v970_v36  ;;  %v3127_v45 = vld [vmem:[#allocation9_spill] sm:$0xff] }
 0x258   :  { %v962_v55 = vsel %vm959_vm15, %v961_v40, %v957_v23  ;;  %v985_v57 = vmul.f32 %v2090_v17, %v943_v19  ;;  %vm979_vm3 = vcmp.eq.f32.partialorder %v978_v54, 8.507059e+37  ;;  %v3128_v54 = vld [vmem:[#allocation8_spill] sm:$0xff] }
 0x259   :  { %v984_v28 = vmul.f32 %v962_v55, %v2893_v18  ;;  %v972_v58 = vmul.f32 %v2088_v12, %v971_v31 }
 0x25b   :  { %v2936_v38 = vadd.f32 %v985_v57, %v984_v28  ;;  %v973_v56 = vadd.f32 %v2088_v12, %v972_v58 }
 0x25d   :  { %2091 = vtanh.f32 %v2936_v38  ;;  %v977_v27 = vsel %vm976_vm2, %v2088_v12, %v973_v56 }
 0x25e   :  { %v982_v62 = vsel %vm979_vm3, %v981_v5, %v977_v27 }
 0x263   :  { %v2092_v0 = vpop.eup %2091 }
 0x264   :  { %v988_v42 = vmul.f32 %v2092_v0, %v982_v62 }
 0x266   :  { %v991_v6 = vpack.c.bf16 %v988_v42, %v988_v42 }
 0x268   :  { %1955 = vst [vmem:[%s3100_s4 + $0x8] sm:$0xf] %v991_v6  ;;  %1010 = vmatmul.bf16.vlgmr.msra.gmra.mxu0 %v991_v6  ;;  %1023 = vmatmul.bf16.vlgmr.msra.gmra.mxu1 %v991_v6 }
 0x269   :  { %1036 = vmatmul.bf16.vlgmr.msra.gmra.mxu2 %v991_v6  ;;  %1049 = vmatmul.bf16.vlgmr.msra.gmra.mxu3 %v991_v6 }
 0x26a   :  { %1266 = vmatpush.bf16.msra.mxu0 %v2416_v37  ;;  %1279 = vmatpush.bf16.msra.mxu1 %v2427_v41 }
 0x26b   :  { %1292 = vmatpush.bf16.msra.mxu2 %v2444_v47  ;;  %1305 = vmatpush.bf16.msra.mxu3 %v2447_v48 }
 0x26e   :  { %1267 = vmatpush.bf16.msra.mxu0 %v2449_v49  ;;  %1280 = vmatpush.bf16.msra.mxu1 %v2461_v53 }
 0x26f   :  { %1293 = vmatpush.bf16.msra.mxu2 %v2479_v59  ;;  %1306 = vmatpush.bf16.msra.mxu3 %v2483_v60 }
 0x272   :  { %1268 = vmatpush.bf16.msra.mxu0 %v2485_v61  ;;  %1281 = vmatpush.bf16.msra.mxu1 %v2497_v1 }
 0x273   :  { %1294 = vmatpush.bf16.msra.mxu2 %v2515_v7  ;;  %1307 = vmatpush.bf16.msra.mxu3 %v2519_v8 }
 0x276   :  { %1269 = vmatpush.bf16.msra.mxu0 %v2521_v9  ;;  %1282 = vmatpush.bf16.msra.mxu1 %v2533_v13 }
 0x277   :  { %1295 = vmatpush.bf16.msra.mxu2 %v2554_v20  ;;  %1308 = vmatpush.bf16.msra.mxu3 %v2558_v21 }
 0x27a   :  { %1270 = vmatpush.bf16.msra.mxu0 %v2560_v22  ;;  %1283 = vmatpush.bf16.msra.mxu1 %v2572_v26 }
 0x27b   :  { %1296 = vmatpush.bf16.msra.mxu2 %v2590_v32  ;;  %1309 = vmatpush.bf16.msra.mxu3 %v2594_v33 }
 0x27e   :  { %1271 = vmatpush.bf16.msra.mxu0 %v2596_v34  ;;  %1284 = vmatpush.bf16.msra.mxu1 %v2599_v35 }
 0x27f   :  { %1297 = vmatpush.bf16.msra.mxu2 %v2635_v52  ;;  %1310 = vmatpush.bf16.msra.mxu3 %v2619_v43 }
 0x282   :  { %1272 = vmatpush.bf16.msra.mxu0 %v2621_v44  ;;  %1285 = vmatpush.bf16.msra.mxu1 %v2633_v51 }
 0x283   :  { %1298 = vmatpush.bf16.msra.mxu2 %v2668_v4  ;;  %1311 = vmatpush.bf16.msra.mxu3 %v2664_v2 }
 0x286   :  { %1273 = vmatpush.bf16.msra.mxu0 %v2666_v3  ;;  %1286 = vmatpush.bf16.msra.mxu1 %v2677_v10 }
 0x287   :  { %1299 = vmatpush.bf16.msra.mxu2 %v2686_v14  ;;  %1312 = vmatpush.bf16.msra.mxu3 %v2690_v15 }
 0x2e5   :  { %v1011_v18 = vpop.f32.mrf.mxu0  ;;  %v1024_v24 = vpop.f32.mrf.mxu1 }
 0x2e6   :  { %v1054_v39 = vadd.f32 %v1011_v18, %v3125_v63  ;;  %v1055_v29 = vadd.f32 %v1024_v24, %v3126_v30 }
 0x2e8   :  { %v1956_v25 = vmul.f32 -1.442695, %v1054_v39  ;;  %v1957_v12 = vmul.f32 -1.442695, %v1055_v29 }
 0x2ea   :  { %2093 = vpow2.f32 %v1956_v25 }
 0x2eb   :  { %2095 = vpow2.f32 %v1957_v12 }
 0x2ec   :  { %v1037_v11 = vpop.f32.mrf.mxu2  ;;  %v1050_v50 = vpop.f32.mrf.mxu3 }
 0x2ed   :  { %v1057_v36 = vadd.f32 %v1050_v50, %v3127_v45  ;;  %v1013_v40 = vpop.f32.mrf.mxu0  ;;  %v1026_v16 = vpop.f32.mrf.mxu1  ;;  %v1056_v27 = vadd.f32 %v1037_v11, %v3128_v54 }
 0x2ef   :  { %v1958_v17 = vmul.f32 -1.442695, %v1057_v36 }
 0x2f0   :  { %v2094_v19 = vpop.eup %2093 }
 0x2f1   :  { %v2096_v23 = vpop.eup %2095  ;;  %v1061_v31 = vadd.f32 1.0, %v2094_v19  ;;  %2097 = vpow2.f32 %v1958_v17 }
 0x2f2   :  { %v1080_v55 = vadd.f32 1.0, %v2096_v23 }
 0x2f3   :  { %2099 = vrcp.f32 %v1061_v31  ;;  %v1073_v18 = vand.u32 2147483648, %v1061_v31  ;;  %v1071_v39 = vand.u32 2147483647, %v1061_v31  ;;  %vm1067_vm6 = vweird.f32 %v1061_v31 }
 0x2f4   :  { %2101 = vrcp.f32 %v1080_v55  ;;  %v1039_v57 = vpop.f32.mrf.mxu2  ;;  %v1052_v28 = vpop.f32.mrf.mxu3  ;;  %v1092_v24 = vand.u32 2147483648, %v1080_v55  ;;  %v1090_v29 = vand.u32 2147483647, %v1080_v55  ;;  %vm1086_vm7 = vweird.f32 %v1080_v55 }
 0x2f5   :  { %v1074_v11 = vor.u32 1.1754944e-38, %v1073_v18  ;;  %vm1072_vm10 = vcmp.eq.f32.partialorder %v1071_v39, 8.507059e+37  ;;  %v3130_v39 = vld [vmem:[#allocation11_spill] sm:$0xff] }
 0x2f6   :  { %v1093_v36 = vor.u32 1.1754944e-38, %v1092_v24  ;;  %vm1091_vm11 = vcmp.eq.f32.partialorder %v1090_v29, 8.507059e+37  ;;  %v3129_v24 = vld [vmem:[#allocation10_spill] sm:$0xff] }
 0x2f7   :  { %v2098_v58 = vpop.eup %2097 }
 0x2f8   :  { %v1100_v56 = vadd.f32 1.0, %v2098_v58 }
 0x2f9   :  { %v2100_v46 = vpop.eup %2099 }
 0x2fa   :  { %v2102_v5 = vpop.eup %2101  ;;  %v1063_v0 = vmul.f32 %v2100_v46, %v1061_v31  ;;  %2103 = vrcp.f32 %v1100_v56  ;;  %vm1068_vm4 = vweird.f32 %v2100_v46  ;;  %vm1106_vm13 = vweird.f32 %v1100_v56 }
 0x2fb   :  { %v1082_v62 = vmul.f32 %v2102_v5, %v1080_v55  ;;  %2105 = vtanh.f32 %v1056_v27  ;;  %vm1087_vm5 = vweird.f32 %v2102_v5  ;;  %vm1069_vm8 = vmor %vm1067_vm6, %vm1068_vm4  ;;  %v1112_v27 = vand.u32 2147483648, %v1100_v56 }
 0x2fc   :  { %v1064_v42 = vsub.f32 1.0, %v1063_v0  ;;  %vm1088_vm9 = vmor %vm1086_vm7, %vm1087_vm5 }
 0x2fd   :  { %v1083_v6 = vsub.f32 1.0, %v1082_v62  ;;  %v1113_v62 = vor.u32 1.1754944e-38, %v1112_v27 }
 0x2fe   :  { %v1065_v63 = vmul.f32 %v2100_v46, %v1064_v42 }
 0x2ff   :  { %v1084_v30 = vmul.f32 %v2102_v5, %v1083_v6 }
 0x300   :  { %v2104_v25 = vpop.eup %2103  ;;  %v1066_v12 = vadd.f32 %v2100_v46, %v1065_v63 }
 0x301   :  { %v1085_v50 = vadd.f32 %v2102_v5, %v1084_v30  ;;  %v1102_v45 = vmul.f32 %v2104_v25, %v1100_v56  ;;  %v2106_v16 = vpop.eup %2105  ;;  %vm1107_vm12 = vweird.f32 %v2104_v25 }
 0x302   :  { %v1070_v40 = vsel %vm1069_vm8, %v2100_v46, %v1066_v12  ;;  %v1110_v46 = vand.u32 2147483647, %v1100_v56  ;;  %vm1108_vm14 = vmor %vm1106_vm13, %vm1107_vm12 }
 0x303   :  { %v1075_v17 = vsel %vm1072_vm10, %v1074_v11, %v1070_v40  ;;  %v1089_v19 = vsel %vm1088_vm9, %v2102_v5, %v1085_v50  ;;  %v1103_v23 = vsub.f32 1.0, %v1102_v45  ;;  %v3131_v50 = vld [vmem:[#allocation13_spill] sm:$0xff] }
 0x304   :  { %v1094_v57 = vsel %vm1091_vm11, %v1093_v36, %v1089_v19  ;;  %v1117_v28 = vmul.f32 %v2106_v16, %v1075_v17  ;;  %vm1111_vm15 = vcmp.eq.f32.partialorder %v1110_v46, 8.507059e+37  ;;  %v3132_v46 = vld [vmem:[#allocation12_spill] sm:$0xff] }
 0x305   :  { %v1116_v58 = vmul.f32 %v1094_v57, %v2936_v38  ;;  %v1104_v54 = vmul.f32 %v2104_v25, %v1103_v23 }
 0x307   :  { %v2979_v31 = vadd.f32 %v1117_v28, %v1116_v58  ;;  %v1105_v55 = vadd.f32 %v2104_v25, %v1104_v54 }
 0x309   :  { %2107 = vtanh.f32 %v2979_v31  ;;  %v1109_v0 = vsel %vm1108_vm14, %v2104_v25, %v1105_v55 }
 0x30a   :  { %v1114_v42 = vsel %vm1111_vm15, %v1113_v62, %v1109_v0 }
 0x30f   :  { %v2108_v5 = vpop.eup %2107 }
 0x310   :  { %v1120_v6 = vmul.f32 %v2108_v5, %v1114_v42 }
 0x312   :  { %v1123_v18 = vpack.c.bf16 %v1120_v6, %v1120_v6 }
 0x314   :  { %1959 = vst [vmem:[%s3100_s4 + $0xc] sm:$0xf] %v1123_v18  ;;  %1142 = vmatmul.bf16.vlgmr.msrb.gmra.mxu0 %v1123_v18  ;;  %1155 = vmatmul.bf16.vlgmr.msrb.gmra.mxu1 %v1123_v18 }
 0x315   :  { %1168 = vmatmul.bf16.vlgmr.msrb.gmra.mxu2 %v1123_v18  ;;  %1181 = vmatmul.bf16.vlgmr.msrb.gmra.mxu3 %v1123_v18 }
 0x316   :  { %1398 = vmatpush.bf16.msrb.mxu0 %v2416_v37  ;;  %1411 = vmatpush.bf16.msrb.mxu1 %v2427_v41 }
 0x317   :  { %1424 = vmatpush.bf16.msrb.mxu2 %v2444_v47  ;;  %1437 = vmatpush.bf16.msrb.mxu3 %v2447_v48 }
 0x31a   :  { %1399 = vmatpush.bf16.msrb.mxu0 %v2449_v49  ;;  %1412 = vmatpush.bf16.msrb.mxu1 %v2461_v53 }
 0x31b   :  { %1425 = vmatpush.bf16.msrb.mxu2 %v2479_v59  ;;  %1438 = vmatpush.bf16.msrb.mxu3 %v2483_v60 }
 0x31e   :  { %1400 = vmatpush.bf16.msrb.mxu0 %v2485_v61  ;;  %1413 = vmatpush.bf16.msrb.mxu1 %v2497_v1 }
 0x31f   :  { %1426 = vmatpush.bf16.msrb.mxu2 %v2515_v7  ;;  %1439 = vmatpush.bf16.msrb.mxu3 %v2519_v8 }
 0x322   :  { %1401 = vmatpush.bf16.msrb.mxu0 %v2521_v9  ;;  %1414 = vmatpush.bf16.msrb.mxu1 %v2533_v13 }
 0x323   :  { %1427 = vmatpush.bf16.msrb.mxu2 %v2554_v20  ;;  %1440 = vmatpush.bf16.msrb.mxu3 %v2558_v21 }
 0x326   :  { %1402 = vmatpush.bf16.msrb.mxu0 %v2560_v22  ;;  %1415 = vmatpush.bf16.msrb.mxu1 %v2572_v26 }
 0x327   :  { %1428 = vmatpush.bf16.msrb.mxu2 %v2590_v32  ;;  %1441 = vmatpush.bf16.msrb.mxu3 %v2594_v33 }
 0x32a   :  { %1403 = vmatpush.bf16.msrb.mxu0 %v2596_v34  ;;  %1416 = vmatpush.bf16.msrb.mxu1 %v2599_v35 }
 0x32b   :  { %1429 = vmatpush.bf16.msrb.mxu2 %v2635_v52  ;;  %1442 = vmatpush.bf16.msrb.mxu3 %v2619_v43 }
 0x32e   :  { %1404 = vmatpush.bf16.msrb.mxu0 %v2621_v44  ;;  %1417 = vmatpush.bf16.msrb.mxu1 %v2633_v51 }
 0x32f   :  { %1430 = vmatpush.bf16.msrb.mxu2 %v2668_v4  ;;  %1443 = vmatpush.bf16.msrb.mxu3 %v2664_v2 }
 0x332   :  { %1405 = vmatpush.bf16.msrb.mxu0 %v2666_v3  ;;  %1418 = vmatpush.bf16.msrb.mxu1 %v2677_v10 }
 0x333   :  { %1431 = vmatpush.bf16.msrb.mxu2 %v2686_v14  ;;  %1444 = vmatpush.bf16.msrb.mxu3 %v2690_v15 }
 0x391   :  { %v1143_v38 = vpop.f32.mrf.mxu0  ;;  %v1156_v56 = vpop.f32.mrf.mxu1 }
 0x392   :  { %v1186_v63 = vadd.f32 %v1143_v38, %v3129_v24  ;;  %v1187_v30 = vadd.f32 %v1156_v56, %v3130_v39 }
 0x394   :  { %v1960_v29 = vmul.f32 -1.442695, %v1186_v63  ;;  %v1961_v25 = vmul.f32 -1.442695, %v1187_v30 }
 0x396   :  { %2109 = vpow2.f32 %v1960_v29 }
 0x397   :  { %2111 = vpow2.f32 %v1961_v25 }
 0x398   :  { %v1169_v12 = vpop.f32.mrf.mxu2  ;;  %v1182_v11 = vpop.f32.mrf.mxu3 }
 0x399   :  { %v1189_v45 = vadd.f32 %v1182_v11, %v3131_v50  ;;  %v1145_v36 = vpop.f32.mrf.mxu0  ;;  %v1158_v40 = vpop.f32.mrf.mxu1  ;;  %v1188_v0 = vadd.f32 %v1169_v12, %v3132_v46 }
 0x39b   :  { %v1962_v16 = vmul.f32 -1.442695, %v1189_v45 }
 0x39c   :  { %v2110_v17 = vpop.eup %2109 }
 0x39d   :  { %v2112_v19 = vpop.eup %2111  ;;  %v1193_v23 = vadd.f32 1.0, %v2110_v17  ;;  %2113 = vpow2.f32 %v1962_v16 }
 0x39e   :  { %v1212_v57 = vadd.f32 1.0, %v2112_v19 }
 0x39f   :  { %2115 = vrcp.f32 %v1193_v23  ;;  %v1205_v38 = vand.u32 2147483648, %v1193_v23  ;;  %v1203_v63 = vand.u32 2147483647, %v1193_v23  ;;  %vm1199_vm2 = vweird.f32 %v1193_v23 }
 0x3a0   :  { %2117 = vrcp.f32 %v1212_v57  ;;  %v1171_v28 = vpop.f32.mrf.mxu2  ;;  %v1184_v58 = vpop.f32.mrf.mxu3  ;;  %v1224_v56 = vand.u32 2147483648, %v1212_v57  ;;  %v1222_v30 = vand.u32 2147483647, %v1212_v57  ;;  %vm1218_vm3 = vweird.f32 %v1212_v57 }
 0x3a1   :  { %v1206_v12 = vor.u32 1.1754944e-38, %v1205_v38  ;;  %vm1204_vm6 = vcmp.eq.f32.partialorder %v1203_v63, 8.507059e+37 }
 0x3a2   :  { %v1225_v45 = vor.u32 1.1754944e-38, %v1224_v56  ;;  %vm1223_vm7 = vcmp.eq.f32.partialorder %v1222_v30, 8.507059e+37 }
 0x3a3   :  { %v2114_v54 = vpop.eup %2113 }
 0x3a4   :  { %v1232_v55 = vadd.f32 1.0, %v2114_v54 }
 0x3a5   :  { %v2116_v27 = vpop.eup %2115 }
 0x3a6   :  { %v2118_v62 = vpop.eup %2117  ;;  %v1195_v5 = vmul.f32 %v2116_v27, %v1193_v23  ;;  %2119 = vrcp.f32 %v1232_v55  ;;  %vm1200_vm0 = vweird.f32 %v2116_v27  ;;  %vm1238_vm9 = vweird.f32 %v1232_v55 }
 0x3a7   :  { %v1214_v42 = vmul.f32 %v2118_v62, %v1212_v57  ;;  %2121 = vtanh.f32 %v1188_v0  ;;  %vm1219_vm1 = vweird.f32 %v2118_v62  ;;  %vm1201_vm4 = vmor %vm1199_vm2, %vm1200_vm0  ;;  %v1244_v0 = vand.u32 2147483648, %v1232_v55 }
 0x3a8   :  { %v1196_v6 = vsub.f32 1.0, %v1195_v5  ;;  %vm1220_vm5 = vmor %vm1218_vm3, %vm1219_vm1 }
 0x3a9   :  { %v1215_v18 = vsub.f32 1.0, %v1214_v42  ;;  %v1245_v42 = vor.u32 1.1754944e-38, %v1244_v0 }
 0x3aa   :  { %v1197_v24 = vmul.f32 %v2116_v27, %v1196_v6 }
 0x3ab   :  { %v1216_v39 = vmul.f32 %v2118_v62, %v1215_v18 }
 0x3ac   :  { %v2120_v29 = vpop.eup %2119  ;;  %v1198_v25 = vadd.f32 %v2116_v27, %v1197_v24 }
 0x3ad   :  { %v1217_v11 = vadd.f32 %v2118_v62, %v1216_v39  ;;  %v1234_v50 = vmul.f32 %v2120_v29, %v1232_v55  ;;  %v2122_v40 = vpop.eup %2121  ;;  %vm1239_vm8 = vweird.f32 %v2120_v29 }
 0x3ae   :  { %v1202_v36 = vsel %vm1201_vm4, %v2116_v27, %v1198_v25  ;;  %v1242_v27 = vand.u32 2147483647, %v1232_v55  ;;  %vm1240_vm10 = vmor %vm1238_vm9, %vm1239_vm8 }
 0x3af   :  { %v1207_v16 = vsel %vm1204_vm6, %v1206_v12, %v1202_v36  ;;  %v1221_v17 = vsel %vm1220_vm5, %v2118_v62, %v1217_v11  ;;  %v1235_v19 = vsub.f32 1.0, %v1234_v50 }
 0x3b0   :  { %v1226_v28 = vsel %vm1223_vm7, %v1225_v45, %v1221_v17  ;;  %v1249_v58 = vmul.f32 %v2122_v40, %v1207_v16  ;;  %vm1243_vm11 = vcmp.eq.f32.partialorder %v1242_v27, 8.507059e+37 }
 0x3b1   :  { %v1248_v54 = vmul.f32 %v1226_v28, %v2979_v31  ;;  %v1236_v46 = vmul.f32 %v2120_v29, %v1235_v19 }
 0x3b3   :  { %v3022_v23 = vadd.f32 %v1249_v58, %v1248_v54  ;;  %v1237_v57 = vadd.f32 %v2120_v29, %v1236_v46 }
 0x3b5   :  { %2123 = vtanh.f32 %v3022_v23  ;;  %v1241_v5 = vsel %vm1240_vm10, %v2120_v29, %v1237_v57 }
 0x3b6   :  { %v1246_v6 = vsel %vm1243_vm11, %v1245_v42, %v1241_v5 }
 0x3bb   :  { %v2124_v62 = vpop.eup %2123 }
 0x3bc   :  { %v1252_v18 = vmul.f32 %v2124_v62, %v1246_v6 }
 0x3be   :  { %v1255_v38 = vpack.c.bf16 %v1252_v18, %v1252_v18 }
 0x3c0   :  { %1963 = vst [vmem:[%s3100_s4 + $0x10] sm:$0xf] %v1255_v38  ;;  %1274 = vmatmul.bf16.vlgmr.msra.gmra.mxu0 %v1255_v38  ;;  %1287 = vmatmul.bf16.vlgmr.msra.gmra.mxu1 %v1255_v38 }
 0x3c1   :  { %1300 = vmatmul.bf16.vlgmr.msra.gmra.mxu2 %v1255_v38  ;;  %1313 = vmatmul.bf16.vlgmr.msra.gmra.mxu3 %v1255_v38 }
 0x3c2   :  { %1530 = vmatpush.bf16.msra.mxu0 %v2416_v37  ;;  %1543 = vmatpush.bf16.msra.mxu1 %v2427_v41 }
 0x3c3   :  { %1556 = vmatpush.bf16.msra.mxu2 %v2444_v47  ;;  %1569 = vmatpush.bf16.msra.mxu3 %v2447_v48  ;;  %v3133_v47 = vld [vmem:[#allocation14_spill] sm:$0xff] }
 0x3c6   :  { %1531 = vmatpush.bf16.msra.mxu0 %v2449_v49  ;;  %1544 = vmatpush.bf16.msra.mxu1 %v2461_v53  ;;  %v3134_v49 = vld [vmem:[#allocation15_spill] sm:$0xff] }
 0x3c7   :  { %1557 = vmatpush.bf16.msra.mxu2 %v2479_v59  ;;  %1570 = vmatpush.bf16.msra.mxu3 %v2483_v60 }
 0x3ca   :  { %1532 = vmatpush.bf16.msra.mxu0 %v2485_v61  ;;  %1545 = vmatpush.bf16.msra.mxu1 %v2497_v1 }
 0x3cb   :  { %1558 = vmatpush.bf16.msra.mxu2 %v2515_v7  ;;  %1571 = vmatpush.bf16.msra.mxu3 %v2519_v8  ;;  %v3135_v7 = vld [vmem:[#allocation17_spill] sm:$0xff] }
 0x3ce   :  { %1533 = vmatpush.bf16.msra.mxu0 %v2521_v9  ;;  %1546 = vmatpush.bf16.msra.mxu1 %v2533_v13 }
 0x3cf   :  { %1559 = vmatpush.bf16.msra.mxu2 %v2554_v20  ;;  %1572 = vmatpush.bf16.msra.mxu3 %v2558_v21 }
 0x3d2   :  { %1534 = vmatpush.bf16.msra.mxu0 %v2560_v22  ;;  %1547 = vmatpush.bf16.msra.mxu1 %v2572_v26 }
 0x3d3   :  { %1560 = vmatpush.bf16.msra.mxu2 %v2590_v32  ;;  %1573 = vmatpush.bf16.msra.mxu3 %v2594_v33 }
 0x3d6   :  { %1535 = vmatpush.bf16.msra.mxu0 %v2596_v34  ;;  %1548 = vmatpush.bf16.msra.mxu1 %v2599_v35 }
 0x3d7   :  { %1561 = vmatpush.bf16.msra.mxu2 %v2635_v52  ;;  %1574 = vmatpush.bf16.msra.mxu3 %v2619_v43 }
 0x3da   :  { %1536 = vmatpush.bf16.msra.mxu0 %v2621_v44  ;;  %1549 = vmatpush.bf16.msra.mxu1 %v2633_v51  ;;  %v3136_v51 = vld [vmem:[#allocation16_spill] sm:$0xff] }
 0x3db   :  { %1562 = vmatpush.bf16.msra.mxu2 %v2668_v4  ;;  %1575 = vmatpush.bf16.msra.mxu3 %v2664_v2 }
 0x3de   :  { %1537 = vmatpush.bf16.msra.mxu0 %v2666_v3  ;;  %1550 = vmatpush.bf16.msra.mxu1 %v2677_v10 }
 0x3df   :  { %1563 = vmatpush.bf16.msra.mxu2 %v2686_v14  ;;  %1576 = vmatpush.bf16.msra.mxu3 %v2690_v15 }
 0x43d   :  { %v1275_v37 = vpop.f32.mrf.mxu0  ;;  %v1288_v41 = vpop.f32.mrf.mxu1 }
 0x43e   :  { %v1318_v48 = vadd.f32 %v1275_v37, %v3133_v47  ;;  %v1319_v53 = vadd.f32 %v1288_v41, %v3134_v49  ;;  %v3137_v37 = vld [vmem:[#allocation18_spill] sm:$0xff]  ;;  %v3138_v47 = vld [vmem:[#allocation19_spill] sm:$0xff] }
 0x440   :  { %v1964_v59 = vmul.f32 -1.442695, %v1318_v48  ;;  %v1965_v60 = vmul.f32 -1.442695, %v1319_v53 }
 0x442   :  { %2125 = vpow2.f32 %v1964_v59 }
 0x443   :  { %2127 = vpow2.f32 %v1965_v60 }
 0x444   :  { %v1301_v61 = vpop.f32.mrf.mxu2  ;;  %v1314_v1 = vpop.f32.mrf.mxu3 }
 0x445   :  { %v1321_v8 = vadd.f32 %v1314_v1, %v3135_v7  ;;  %v1277_v9 = vpop.f32.mrf.mxu0  ;;  %v1290_v13 = vpop.f32.mrf.mxu1  ;;  %v1320_v52 = vadd.f32 %v1301_v61, %v3136_v51  ;;  %v3139_v61 = vld [vmem:[#allocation21_spill] sm:$0xff] }
 0x447   :  { %v1966_v20 = vmul.f32 -1.442695, %v1321_v8 }
 0x448   :  { %v2126_v21 = vpop.eup %2125 }
 0x449   :  { %v2128_v22 = vpop.eup %2127  ;;  %v1325_v26 = vadd.f32 1.0, %v2126_v21  ;;  %2129 = vpow2.f32 %v1966_v20 }
 0x44a   :  { %v1344_v32 = vadd.f32 1.0, %v2128_v22 }
 0x44b   :  { %2131 = vrcp.f32 %v1325_v26  ;;  %v1337_v15 = vand.u32 2147483648, %v1325_v26  ;;  %v1335_v56 = vand.u32 2147483647, %v1325_v26  ;;  %vm1331_vm14 = vweird.f32 %v1325_v26 }
 0x44c   :  { %2133 = vrcp.f32 %v1344_v32  ;;  %v1303_v33 = vpop.f32.mrf.mxu2  ;;  %v1316_v34 = vpop.f32.mrf.mxu3  ;;  %v1356_v31 = vand.u32 2147483648, %v1344_v32  ;;  %v1354_v63 = vand.u32 2147483647, %v1344_v32  ;;  %vm1350_vm15 = vweird.f32 %v1344_v32 }
 0x44d   :  { %v1338_v29 = vor.u32 1.1754944e-38, %v1337_v15  ;;  %vm1336_vm2 = vcmp.eq.f32.partialorder %v1335_v56, 8.507059e+37 }
 0x44e   :  { %v1357_v11 = vor.u32 1.1754944e-38, %v1356_v31  ;;  %vm1355_vm3 = vcmp.eq.f32.partialorder %v1354_v63, 8.507059e+37 }
 0x44f   :  { %v2130_v35 = vpop.eup %2129 }
 0x450   :  { %v1364_v43 = vadd.f32 1.0, %v2130_v35 }
 0x451   :  { %v2132_v44 = vpop.eup %2131 }
 0x452   :  { %v2134_v2 = vpop.eup %2133  ;;  %v1327_v3 = vmul.f32 %v2132_v44, %v1325_v26  ;;  %2135 = vrcp.f32 %v1364_v43  ;;  %vm1332_vm12 = vweird.f32 %v2132_v44  ;;  %v1376_v57 = vand.u32 2147483648, %v1364_v43 }
 0x453   :  { %v1346_v4 = vmul.f32 %v2134_v2, %v1344_v32  ;;  %2137 = vtanh.f32 %v1320_v52  ;;  %vm1351_vm13 = vweird.f32 %v2134_v2  ;;  %vm1333_vm0 = vmor %vm1331_vm14, %vm1332_vm12  ;;  %vm1370_vm5 = vweird.f32 %v1364_v43 }
 0x454   :  { %v1328_v10 = vsub.f32 1.0, %v1327_v3  ;;  %vm1352_vm1 = vmor %vm1350_vm15, %vm1351_vm13  ;;  %v1374_v0 = vand.u32 2147483647, %v1364_v43  ;;  %v1377_v5 = vor.u32 1.1754944e-38, %v1376_v57 }
 0x455   :  { %v1347_v14 = vsub.f32 1.0, %v1346_v4 }
 0x456   :  { %v1329_v55 = vmul.f32 %v2132_v44, %v1328_v10  ;;  %vm1375_vm7 = vcmp.eq.f32.partialorder %v1374_v0, 8.507059e+37 }
 0x457   :  { %v1348_v24 = vmul.f32 %v2134_v2, %v1347_v14 }
 0x458   :  { %v2136_v39 = vpop.eup %2135  ;;  %v1330_v30 = vadd.f32 %v2132_v44, %v1329_v55 }
 0x459   :  { %v1349_v25 = vadd.f32 %v2134_v2, %v1348_v24  ;;  %v1366_v12 = vmul.f32 %v2136_v39, %v1364_v43  ;;  %v2138_v45 = vpop.eup %2137  ;;  %vm1371_vm4 = vweird.f32 %v2136_v39  ;;  %v3140_v43 = vld [vmem:[#allocation20_spill] sm:$0xff] }
 0x45a   :  { %v1334_v50 = vsel %vm1333_vm0, %v2132_v44, %v1330_v30  ;;  %vm1372_vm6 = vmor %vm1370_vm5, %vm1371_vm4 }
 0x45b   :  { %v1339_v36 = vsel %vm1336_vm2, %v1338_v29, %v1334_v50  ;;  %v1353_v40 = vsel %vm1352_vm1, %v2134_v2, %v1349_v25  ;;  %v1367_v16 = vsub.f32 1.0, %v1366_v12 }
 0x45c   :  { %v1358_v17 = vsel %vm1355_vm3, %v1357_v11, %v1353_v40  ;;  %v1381_v19 = vmul.f32 %v2138_v45, %v1339_v36 }
 0x45d   :  { %v1380_v28 = vmul.f32 %v1358_v17, %v3022_v23  ;;  %v1368_v58 = vmul.f32 %v2136_v39, %v1367_v16 }
 0x45f   :  { %v3065_v54 = vadd.f32 %v1381_v19, %v1380_v28  ;;  %v1369_v46 = vadd.f32 %v2136_v39, %v1368_v58 }
 0x461   :  { %2139 = vtanh.f32 %v3065_v54  ;;  %v1373_v27 = vsel %vm1372_vm6, %v2136_v39, %v1369_v46 }
 0x462   :  { %v1378_v62 = vsel %vm1375_vm7, %v1377_v5, %v1373_v27 }
 0x467   :  { %v2140_v42 = vpop.eup %2139 }
 0x468   :  { %v1384_v6 = vmul.f32 %v2140_v42, %v1378_v62 }
 0x46a   :  { %v1387_v18 = vpack.c.bf16 %v1384_v6, %v1384_v6 }
 0x46c   :  { %1967 = vst [vmem:[%s3100_s4 + $0x14] sm:$0xf] %v1387_v18  ;;  %1406 = vmatmul.bf16.vlgmr.msrb.gmra.mxu0 %v1387_v18  ;;  %1419 = vmatmul.bf16.vlgmr.msrb.gmra.mxu1 %v1387_v18 }
 0x46d   :  { %1432 = vmatmul.bf16.vlgmr.msrb.gmra.mxu2 %v1387_v18  ;;  %1445 = vmatmul.bf16.vlgmr.msrb.gmra.mxu3 %v1387_v18 }
 0x4e9   :  { %v1407_v23 = vpop.f32.mrf.mxu0  ;;  %v1420_v38 = vpop.f32.mrf.mxu1 }
 0x4ea   :  { %v1450_v41 = vadd.f32 %v1407_v23, %v3137_v37  ;;  %v1451_v48 = vadd.f32 %v1420_v38, %v3138_v47  ;;  %v3141_v23 = vld [vmem:[#allocation22_spill] sm:$0xff]  ;;  %v3142_v37 = vld [vmem:[#allocation23_spill] sm:$0xff] }
 0x4ec   :  { %v1968_v49 = vmul.f32 -1.442695, %v1450_v41  ;;  %v1969_v53 = vmul.f32 -1.442695, %v1451_v48 }
 0x4ee   :  { %2141 = vpow2.f32 %v1968_v49 }
 0x4ef   :  { %2143 = vpow2.f32 %v1969_v53 }
 0x4f0   :  { %v1433_v59 = vpop.f32.mrf.mxu2  ;;  %v1446_v60 = vpop.f32.mrf.mxu3 }
 0x4f1   :  { %v1453_v1 = vadd.f32 %v1446_v60, %v3139_v61  ;;  %v1409_v7 = vpop.f32.mrf.mxu0  ;;  %v1422_v8 = vpop.f32.mrf.mxu1  ;;  %v1452_v44 = vadd.f32 %v1433_v59, %v3140_v43  ;;  %v3143_v59 = vld [vmem:[#allocation25_spill] sm:$0xff] }
 0x4f3   :  { %v1970_v9 = vmul.f32 -1.442695, %v1453_v1 }
 0x4f4   :  { %v2142_v13 = vpop.eup %2141 }
 0x4f5   :  { %v2144_v20 = vpop.eup %2143  ;;  %v1457_v21 = vadd.f32 1.0, %v2142_v13  ;;  %2145 = vpow2.f32 %v1970_v9 }
 0x4f6   :  { %v1476_v22 = vadd.f32 1.0, %v2144_v20 }
 0x4f7   :  { %2147 = vrcp.f32 %v1457_v21  ;;  %v1469_v10 = vand.u32 2147483648, %v1457_v21  ;;  %v1467_v31 = vand.u32 2147483647, %v1457_v21  ;;  %vm1463_vm10 = vweird.f32 %v1457_v21 }
 0x4f8   :  { %2149 = vrcp.f32 %v1476_v22  ;;  %v1435_v26 = vpop.f32.mrf.mxu2  ;;  %v1448_v32 = vpop.f32.mrf.mxu3  ;;  %v1488_v14 = vand.u32 2147483648, %v1476_v22  ;;  %v1486_v56 = vand.u32 2147483647, %v1476_v22  ;;  %vm1482_vm11 = vweird.f32 %v1476_v22 }
 0x4f9   :  { %v1470_v39 = vor.u32 1.1754944e-38, %v1469_v10  ;;  %vm1468_vm14 = vcmp.eq.f32.partialorder %v1467_v31, 8.507059e+37 }
 0x4fa   :  { %v1489_v25 = vor.u32 1.1754944e-38, %v1488_v14  ;;  %vm1487_vm15 = vcmp.eq.f32.partialorder %v1486_v56, 8.507059e+37 }
 0x4fb   :  { %v2146_v33 = vpop.eup %2145 }
 0x4fc   :  { %v1496_v34 = vadd.f32 1.0, %v2146_v33 }
 0x4fd   :  { %v2148_v35 = vpop.eup %2147 }
 0x4fe   :  { %v2150_v51 = vpop.eup %2149  ;;  %v1459_v52 = vmul.f32 %v2148_v35, %v1457_v21  ;;  %2151 = vrcp.f32 %v1496_v34  ;;  %vm1464_vm8 = vweird.f32 %v2148_v35  ;;  %v1508_v46 = vand.u32 2147483648, %v1496_v34 }
 0x4ff   :  { %v1478_v2 = vmul.f32 %v2150_v51, %v1476_v22  ;;  %2153 = vtanh.f32 %v1452_v44  ;;  %vm1483_vm9 = vweird.f32 %v2150_v51  ;;  %vm1465_vm12 = vmor %vm1463_vm10, %vm1464_vm8  ;;  %vm1502_vm1 = vweird.f32 %v1496_v34 }
 0x500   :  { %v1460_v3 = vsub.f32 1.0, %v1459_v52  ;;  %vm1484_vm13 = vmor %vm1482_vm11, %vm1483_vm9  ;;  %v1506_v57 = vand.u32 2147483647, %v1496_v34  ;;  %v1509_v27 = vor.u32 1.1754944e-38, %v1508_v46 }
 0x501   :  { %v1479_v4 = vsub.f32 1.0, %v1478_v2 }
 0x502   :  { %v1461_v15 = vmul.f32 %v2148_v35, %v1460_v3  ;;  %vm1507_vm3 = vcmp.eq.f32.partialorder %v1506_v57, 8.507059e+37 }
 0x503   :  { %v1480_v55 = vmul.f32 %v2150_v51, %v1479_v4 }
 0x504   :  { %v2152_v24 = vpop.eup %2151  ;;  %v1462_v63 = vadd.f32 %v2148_v35, %v1461_v15 }
 0x505   :  { %v1481_v30 = vadd.f32 %v2150_v51, %v1480_v55  ;;  %v1498_v29 = vmul.f32 %v2152_v24, %v1496_v34  ;;  %v2154_v11 = vpop.eup %2153  ;;  %vm1503_vm0 = vweird.f32 %v2152_v24  ;;  %v3144_v34 = vld [vmem:[#allocation24_spill] sm:$0xff] }
 0x506   :  { %v1466_v12 = vsel %vm1465_vm12, %v2148_v35, %v1462_v63  ;;  %vm1504_vm2 = vmor %vm1502_vm1, %vm1503_vm0 }
 0x507   :  { %v1471_v50 = vsel %vm1468_vm14, %v1470_v39, %v1466_v12  ;;  %v1485_v45 = vsel %vm1484_vm13, %v2150_v51, %v1481_v30  ;;  %v1499_v36 = vsub.f32 1.0, %v1498_v29 }
 0x508   :  { %v1490_v40 = vsel %vm1487_vm15, %v1489_v25, %v1485_v45  ;;  %v1513_v16 = vmul.f32 %v2154_v11, %v1471_v50 }
 0x509   :  { %v1512_v17 = vmul.f32 %v1490_v40, %v3065_v54  ;;  %v1500_v19 = vmul.f32 %v2152_v24, %v1499_v36 }
 0x50b   :  { %v3076_v28 = vadd.f32 %v1513_v16, %v1512_v17  ;;  %v1501_v58 = vadd.f32 %v2152_v24, %v1500_v19 }
 0x50d   :  { %2155 = vtanh.f32 %v3076_v28  ;;  %v1505_v0 = vsel %vm1504_vm2, %v2152_v24, %v1501_v58 }
 0x50e   :  { %v1510_v42 = vsel %vm1507_vm3, %v1509_v27, %v1505_v0 }
 0x513   :  { %v2156_v5 = vpop.eup %2155 }
 0x514   :  { %v1516_v62 = vmul.f32 %v2156_v5, %v1510_v42 }
 0x516   :  { %v1519_v6 = vpack.c.bf16 %v1516_v62, %v1516_v62 }
 0x518   :  { %1971 = vst [vmem:[%s3100_s4 + $0x18] sm:$0xf] %v1519_v6  ;;  %1538 = vmatmul.bf16.vlgmr.msra.gmra.mxu0 %v1519_v6  ;;  %1551 = vmatmul.bf16.vlgmr.msra.gmra.mxu1 %v1519_v6 }
 0x519   :  { %1564 = vmatmul.bf16.vlgmr.msra.gmra.mxu2 %v1519_v6  ;;  %1577 = vmatmul.bf16.vlgmr.msra.gmra.mxu3 %v1519_v6 }
 0x595   :  { %v1539_v54 = vpop.f32.mrf.mxu0  ;;  %v1552_v18 = vpop.f32.mrf.mxu1 }
 0x596   :  { %v1582_v38 = vadd.f32 %v1539_v54, %v3141_v23  ;;  %v1583_v41 = vadd.f32 %v1552_v18, %v3142_v37 }
 0x598   :  { %v1972_v47 = vmul.f32 -1.442695, %v1582_v38  ;;  %v1973_v48 = vmul.f32 -1.442695, %v1583_v41 }
 0x59a   :  { %2157 = vpow2.f32 %v1972_v47 }
 0x59b   :  { %2159 = vpow2.f32 %v1973_v48 }
 0x59c   :  { %v1565_v49 = vpop.f32.mrf.mxu2  ;;  %v1578_v53 = vpop.f32.mrf.mxu3 }
 0x59d   :  { %v1585_v60 = vadd.f32 %v1578_v53, %v3143_v59  ;;  %v1541_v61 = vpop.f32.mrf.mxu0  ;;  %v1554_v1 = vpop.f32.mrf.mxu1  ;;  %v1584_v35 = vadd.f32 %v1565_v49, %v3144_v34 }
 0x59f   :  { %v1974_v7 = vmul.f32 -1.442695, %v1585_v60 }
 0x5a0   :  { %v2158_v8 = vpop.eup %2157 }
 0x5a1   :  { %v2160_v9 = vpop.eup %2159  ;;  %v1589_v13 = vadd.f32 1.0, %v2158_v8  ;;  %2161 = vpow2.f32 %v1974_v7 }
 0x5a2   :  { %v1608_v20 = vadd.f32 1.0, %v2160_v9 }
 0x5a3   :  { %2163 = vrcp.f32 %v1589_v13  ;;  %v1601_v3 = vand.u32 2147483648, %v1589_v13  ;;  %v1599_v14 = vand.u32 2147483647, %v1589_v13  ;;  %vm1595_vm6 = vweird.f32 %v1589_v13 }
 0x5a4   :  { %2165 = vrcp.f32 %v1608_v20  ;;  %v1567_v21 = vpop.f32.mrf.mxu2  ;;  %v1580_v22 = vpop.f32.mrf.mxu3  ;;  %v1620_v4 = vand.u32 2147483648, %v1608_v20  ;;  %v1618_v31 = vand.u32 2147483647, %v1608_v20  ;;  %vm1614_vm7 = vweird.f32 %v1608_v20 }
 0x5a5   :  { %v1602_v24 = vor.u32 1.1754944e-38, %v1601_v3  ;;  %vm1600_vm10 = vcmp.eq.f32.partialorder %v1599_v14, 8.507059e+37 }
 0x5a6   :  { %v1621_v30 = vor.u32 1.1754944e-38, %v1620_v4  ;;  %vm1619_vm11 = vcmp.eq.f32.partialorder %v1618_v31, 8.507059e+37 }
 0x5a7   :  { %v2162_v26 = vpop.eup %2161 }
 0x5a8   :  { %v1628_v32 = vadd.f32 1.0, %v2162_v26 }
 0x5a9   :  { %v2164_v33 = vpop.eup %2163 }
 0x5aa   :  { %v2166_v43 = vpop.eup %2165  ;;  %v1591_v44 = vmul.f32 %v2164_v33, %v1589_v13  ;;  %2167 = vrcp.f32 %v1628_v32  ;;  %vm1596_vm4 = vweird.f32 %v2164_v33  ;;  %v1640_v58 = vand.u32 2147483648, %v1628_v32 }
 0x5ab   :  { %v1610_v51 = vmul.f32 %v2166_v43, %v1608_v20  ;;  %2169 = vtanh.f32 %v1584_v35  ;;  %vm1615_vm5 = vweird.f32 %v2166_v43  ;;  %vm1597_vm8 = vmor %vm1595_vm6, %vm1596_vm4  ;;  %vm1634_vm13 = vweird.f32 %v1628_v32 }
 0x5ac   :  { %v1592_v52 = vsub.f32 1.0, %v1591_v44  ;;  %vm1616_vm9 = vmor %vm1614_vm7, %vm1615_vm5  ;;  %v1638_v46 = vand.u32 2147483647, %v1628_v32  ;;  %v1641_v0 = vor.u32 1.1754944e-38, %v1640_v58 }
 0x5ad   :  { %v1611_v2 = vsub.f32 1.0, %v1610_v51 }
 0x5ae   :  { %v1593_v10 = vmul.f32 %v2164_v33, %v1592_v52  ;;  %vm1639_vm15 = vcmp.eq.f32.partialorder %v1638_v46, 8.507059e+37 }
 0x5af   :  { %v1612_v15 = vmul.f32 %v2166_v43, %v1611_v2 }
 0x5b0   :  { %v2168_v55 = vpop.eup %2167  ;;  %v1594_v56 = vadd.f32 %v2164_v33, %v1593_v10 }
 0x5b1   :  { %v1613_v63 = vadd.f32 %v2166_v43, %v1612_v15  ;;  %v1630_v39 = vmul.f32 %v2168_v55, %v1628_v32  ;;  %v2170_v25 = vpop.eup %2169  ;;  %vm1635_vm12 = vweird.f32 %v2168_v55 }
 0x5b2   :  { %v1598_v29 = vsel %vm1597_vm8, %v2164_v33, %v1594_v56  ;;  %vm1636_vm14 = vmor %vm1634_vm13, %vm1635_vm12 }
 0x5b3   :  { %v1603_v12 = vsel %vm1600_vm10, %v1602_v24, %v1598_v29  ;;  %v1617_v11 = vsel %vm1616_vm9, %v2166_v43, %v1613_v63  ;;  %v1631_v50 = vsub.f32 1.0, %v1630_v39 }
 0x5b4   :  { %v1622_v45 = vsel %vm1619_vm11, %v1621_v30, %v1617_v11  ;;  %v1645_v36 = vmul.f32 %v2170_v25, %v1603_v12 }
 0x5b5   :  { %v1644_v40 = vmul.f32 %v1622_v45, %v3076_v28  ;;  %v1632_v16 = vmul.f32 %v2168_v55, %v1631_v50 }
 0x5b7   :  { %v1646_v17 = vadd.f32 %v1645_v36, %v1644_v40  ;;  %v1633_v19 = vadd.f32 %v2168_v55, %v1632_v16 }
 0x5b9   :  { %2171 = vtanh.f32 %v1646_v17  ;;  %1660 = vst [vmem:[%s3101_s6] sm:$0xff] %v1646_v17  ;;  %v1637_v57 = vsel %vm1636_vm14, %v2168_v55, %v1633_v19 }
 0x5ba   :  { %v1642_v5 = vsel %vm1639_vm15, %v1641_v0, %v1637_v57 }
 0x5bf   :  { %v2172_v27 = vpop.eup %2171 }
 0x5c0   :  { %v1648_v42 = vmul.f32 %v2172_v27, %v1642_v5 }
 0x5c2   :  { %v1651_v28 = vpack.c.bf16 %v1648_v42, %v1648_v42  ;;  %1658 = vst [vmem:[%s3102_s5] sm:$0xff] %v1648_v42 }
 0x5c4   :  { %1975 = vst [vmem:[%s3100_s4 + $0x1c] sm:$0xf] %v1651_v28 }

</bundles_post_ra>
